<compile_context>
chip_gen: v7x
topology: tpu7x:2x2x1
jax: 0.10.0
libtpu: 0.0.40
codegen_flags: <defaults>
</compile_context>

<pallas_src>
import math
import functools

import jax
import jax.numpy as jnp
from jax import lax
from jax.experimental import pallas as pl
from jax.experimental.pallas import tpu as pltpu


def _normalize(z, eps=1e-5):
    """LayerNorm normalize step only (gamma/beta are folded into the weights)."""
    mu = jnp.mean(z, axis=-1, keepdims=True)
    var = jnp.mean((z - mu) ** 2, axis=-1, keepdims=True)
    return (z - mu) * lax.rsqrt(var + eps)


def block_kernel(x_ref,
                 wqkv_ref, bqkv_ref, wp_ref, bp_ref,
                 w1_ref, b1_ref, w2_ref, b2_ref,
                 o_ref, yctx_ref, *, n_head, block_b, seq_len):
    # One grid step == `block_b` batch elements, flattened to (M, C) rows.
    x = x_ref[0].astype(jnp.float32)                     # (M, C), M = block_b*T
    M, C = x.shape
    T = seq_len
    hd = C // n_head
    cdt = wqkv_ref.dtype                                 # matmul compute dtype (bf16)

    # ---- attention branch: x + proj(MHSA(LN1(x))) ----
    # LN1 gamma/beta and 1/sqrt(hd) are folded into wqkv / bqkv host-side.
    h = _normalize(x)
    qkv = jnp.dot(h.astype(cdt), wqkv_ref[...],
                  preferred_element_type=jnp.float32) + bqkv_ref[0]     # (M, 3C)
    q = qkv[:, 0 * C:1 * C].astype(cdt)                  # already scaled
    k = qkv[:, 1 * C:2 * C].astype(cdt)
    v = qkv[:, 2 * C:3 * C].astype(cdt)

    # Attention per (batch, head); stage each head's context into the bf16
    # scratch at its lane slice, then do ONE full-K Wp matmul afterwards.
    for b in range(block_b):                             # static, small
        rs = slice(b * T, (b + 1) * T)
        for hh in range(n_head):                         # static, small
            cs = slice(hh * hd, (hh + 1) * hd)
            # scores: q_h @ k_h^T without materializing a transpose
            s = lax.dot_general(q[rs, cs], k[rs, cs],
                                (((1,), (1,)), ((), ())),
                                preferred_element_type=jnp.float32)     # (T, T)
            # softmax: exp on EUP, approx reciprocal instead of a VALU divide
            s = s - jnp.max(s, axis=-1, keepdims=True)
            e = jnp.exp(s)
            p = e * pl.reciprocal(jnp.sum(e, axis=-1, keepdims=True), approx=True)
            yctx_ref[rs, cs] = jnp.dot(p.astype(cdt), v[rs, cs],
                                       preferred_element_type=jnp.float32
                                       ).astype(cdt)

    proj = jnp.dot(yctx_ref[...], wp_ref[...],
                   preferred_element_type=jnp.float32) + bp_ref[0]      # (M, C)
    x1 = x + proj

    # ---- MLP branch: x1 + W2(relu(W1(LN2(x1)))) ----
    # LN2 gamma/beta are folded into w1 / b1 host-side.
    h2 = _normalize(x1)
    m1 = jnp.dot(h2.astype(cdt), w1_ref[...],
                 preferred_element_type=jnp.float32) + b1_ref[0]        # (M, H)
    m1 = jnp.maximum(m1, 0.0)
    m2 = jnp.dot(m1.astype(cdt), w2_ref[...],
                 preferred_element_type=jnp.float32) + b2_ref[0]        # (M, C)

    o_ref[0] = (x1 + m2).astype(o_ref.dtype)


def prepare_block_params(params, *, n_head, compute_dtype=jnp.bfloat16):
    """One-time host-side parameter preparation (reused across calls/layers)."""
    f32 = jnp.float32
    C = params['wq'].shape[0]
    hd = C // n_head
    scale = 1.0 / math.sqrt(hd)

    g1 = params['ln1w'].astype(f32).reshape(C, 1)
    be1 = params['ln1b'].astype(f32).reshape(1, C)
    g2 = params['ln2w'].astype(f32).reshape(C, 1)
    be2 = params['ln2b'].astype(f32).reshape(1, C)

    # Fused QKV weight with 1/sqrt(hd) folded into the Q third.
    wqkv = jnp.concatenate([params['wq'].astype(f32) * scale,
                            params['wk'].astype(f32),
                            params['wv'].astype(f32)], axis=1)          # (C, 3C)
    bqkv = jnp.concatenate([params['bq'].astype(f32) * scale,
                            params['bk'].astype(f32),
                            params['bv'].astype(f32)], axis=1)          # (1, 3C)
    # Fold LN1 affine:  (norm(x)*g1 + be1) @ W + b  ==  norm(x) @ (g1*W) + (be1@W + b)
    wqkv_f = g1 * wqkv
    bqkv_f = bqkv + be1 @ wqkv

    # Fold LN2 affine into the first MLP layer.
    w1 = params['w1'].astype(f32)
    w1_f = g2 * w1
    b1_f = params['b1'].astype(f32) + be2 @ w1

    return {
        'wqkv': wqkv_f.astype(compute_dtype), 'bqkv': bqkv_f,
        'wp': params['wp'].astype(compute_dtype), 'bp': params['bp'].astype(f32),
        'w1': w1_f.astype(compute_dtype), 'b1': b1_f,
        'w2': params['w2'].astype(compute_dtype), 'b2': params['b2'].astype(f32),
    }


def transformer_block(x, fused, *, n_head, block_b=None):
    B, T, C = x.shape
    H = fused['w1'].shape[1]
    hd = C // n_head
    cdt = fused['wqkv'].dtype
    # Lane-density / divisibility guards (previously silent assumptions).
    assert C % n_head == 0, "n_embd must be divisible by n_head"
    assert C % 128 == 0, "n_embd must be a multiple of 128 (lane width)"
    assert hd % 128 == 0, "head_dim must be a multiple of 128 for lane-aligned slices"
    assert T % 8 == 0, "sequence length must be a multiple of 8 (sublanes)"

    # Block several batch elements per grid step (amortize per-step overhead,
    # give the MXU a larger M).  Bound rows per step to keep VMEM in check.
    if block_b is None:
        block_b = 1
        for cand in range(1, B + 1):
            if B % cand == 0 and cand * T <= max(T, 512):
                block_b = cand
    assert B % block_b == 0
    nb = B // block_b
    Mb = block_b * T

    weights = [fused[k] for k in ('wqkv', 'bqkv', 'wp', 'bp', 'w1', 'b1', 'w2', 'b2')]

    def w_spec(arr):  # whole-array block, constant index map, single-buffered
        nd = arr.ndim
        return pl.BlockSpec(arr.shape, lambda i, _nd=nd: (0,) * _nd,
                            pipeline_mode=pl.Buffered(1))

    # Explicit VMEM budget: single-buffered weights + double-buffered I/O
    # blocks + bf16 context scratch + live f32 activations (rough), with
    # headroom; capped at 64 MiB so the limit is meaningful on v7x too.
    weight_bytes = sum(int(w.size) * w.dtype.itemsize for w in weights)
    io_bytes = 2 * 2 * Mb * C * x.dtype.itemsize
    scratch_bytes = Mb * C * jnp.dtype(cdt).itemsize
    act_bytes = Mb * (7 * C + 2 * H) * 4 + 2 * T * T * 4
    vmem_limit = int(min(64 * 2 ** 20,
                         max(16 * 2 ** 20,
                             2 * (weight_bytes + io_bytes + scratch_bytes + act_bytes))))

    flops = 2 * B * T * C * (3 * C + C + 2 * H) + 4 * B * n_head * T * T * hd
    cost = pl.CostEstimate(
        flops=int(flops),
        transcendentals=int(B * n_head * T * T),
        bytes_accessed=int(2 * B * T * C * x.dtype.itemsize + weight_bytes))

    kernel = functools.partial(block_kernel, n_head=n_head,
                               block_b=block_b, seq_len=T)

    x_m = x.reshape(nb, Mb, C)                 # free layout reshape (row-major)
    out = pl.pallas_call(
        kernel,
        out_shape=jax.ShapeDtypeStruct((nb, Mb, C), x.dtype),
        grid=(nb,),
        in_specs=[pl.BlockSpec((1, Mb, C), lambda i: (i, 0, 0))]
                 + [w_spec(w) for w in weights],
        out_specs=pl.BlockSpec((1, Mb, C), lambda i: (i, 0, 0)),
        scratch_shapes=[pltpu.VMEM((Mb, C), cdt)],          # staged head contexts
        compiler_params=pltpu.CompilerParams(
            dimension_semantics=("parallel",),               # megacore over batch blocks
            vmem_limit_bytes=vmem_limit),
        cost_estimate=cost,
    )(x_m, *weights)
    return out.reshape(B, T, C)


# ---------------- pure-JAX reference (for correctness check) ----------------
def ref_block(x, p, n_head):
    def ln(z, w, b):
        mu = z.mean(-1, keepdims=True)
        var = ((z - mu) ** 2).mean(-1, keepdims=True)
        return (z - mu) / jnp.sqrt(var + 1e-5) * w + b

    B, T, C = x.shape
    hd = C // n_head
    h = ln(x, p['ln1w'][0], p['ln1b'][0])
    q = (h @ p['wq'] + p['bq'][0]).reshape(B, T, n_head, hd).transpose(0, 2, 1, 3)
    k = (h @ p['wk'] + p['bk'][0]).reshape(B, T, n_head, hd).transpose(0, 2, 1, 3)
    v = (h @ p['wv'] + p['bv'][0]).reshape(B, T, n_head, hd).transpose(0, 2, 1, 3)
    att = jax.nn.softmax(jnp.einsum('bhqd,bhkd->bhqk', q, k) / math.sqrt(hd), axis=-1)
    y = jnp.einsum('bhqk,bhkd->bhqd', att, v).transpose(0, 2, 1, 3).reshape(B, T, C)
    x1 = x + y @ p['wp'] + p['bp'][0]
    h2 = ln(x1, p['ln2w'][0], p['ln2b'][0])
    m = jnp.maximum(h2 @ p['w1'] + p['b1'][0], 0.0) @ p['w2'] + p['b2'][0]
    return x1 + m


def make_params(key, n_embd, n_head, block_exp):
    C, H = n_embd, block_exp * n_embd
    ks = jax.random.split(key, 10)
    nrm = lambda k, shape: (0.02 * jax.random.normal(k, shape)).astype(jnp.float32)
    return {
        # Non-trivial LayerNorm affines so the weight-folding path is exercised.
        'ln1w': (1.0 + 0.05 * jax.random.normal(ks[6], (1, C))).astype(jnp.float32),
        'ln1b': (0.05 * jax.random.normal(ks[7], (1, C))).astype(jnp.float32),
        'wq': nrm(ks[0], (C, C)), 'bq': nrm(ks[8], (1, C)),
        'wk': nrm(ks[1], (C, C)), 'bk': jnp.zeros((1, C), jnp.float32),
        'wv': nrm(ks[2], (C, C)), 'bv': jnp.zeros((1, C), jnp.float32),
        'wp': nrm(ks[3], (C, C)), 'bp': jnp.zeros((1, C), jnp.float32),
        'ln2w': (1.0 + 0.05 * jax.random.normal(ks[9], (1, C))).astype(jnp.float32),
        'ln2b': (0.05 * jax.random.normal(ks[5], (1, C))).astype(jnp.float32),
        'w1': nrm(ks[4], (C, H)), 'b1': jnp.zeros((1, H), jnp.float32),
        'w2': nrm(ks[5], (H, C)), 'b2': jnp.zeros((1, C), jnp.float32),
    }


if __name__ == "__main__":
    # Lane-dense small shapes: C % 128 == 0, head_dim == 128, T % 8 == 0.
    B, T, C = 2, 16, 256
    n_head, block_exp = 2, 4

    key = jax.random.PRNGKey(0)
    kx, kp = jax.random.split(key)
    x = jax.random.normal(kx, (B, T, C), dtype=jnp.float32)
    params = make_params(kp, C, n_head, block_exp)

    # One-time parameter preparation (fuse QKV, fold LN affines + 1/sqrt(hd),
    # cast to bf16); reused across calls.
    fused = prepare_block_params(params, n_head=n_head)

    out = jax.block_until_ready(transformer_block(x, fused, n_head=n_head))
    ref = ref_block(x, params, n_head)
    assert out.shape == (B, T, C)
    # bf16 matmul inputs with f32 accumulation -> loosened tolerance vs f32 ref
    assert jnp.allclose(out, ref, atol=2e-2, rtol=2e-2), \
        float(jnp.max(jnp.abs(out - ref)))
    print("KERNEL_OK")
</pallas_src>

<mosaic_0001>
module attributes {stable_mosaic.version = 11 : i64} {
  func.func @block_kernel(%arg0: i32, %arg1: memref<1x32x256xf32, #tpu.memory_space<vmem>>, %arg2: memref<256x768xbf16, #tpu.memory_space<vmem>>, %arg3: memref<1x768xf32, #tpu.memory_space<vmem>>, %arg4: memref<256x256xbf16, #tpu.memory_space<vmem>>, %arg5: memref<1x256xf32, #tpu.memory_space<vmem>>, %arg6: memref<256x1024xbf16, #tpu.memory_space<vmem>>, %arg7: memref<1x1024xf32, #tpu.memory_space<vmem>>, %arg8: memref<1024x256xbf16, #tpu.memory_space<vmem>>, %arg9: memref<1x256xf32, #tpu.memory_space<vmem>>, %arg10: memref<1x32x256xf32, #tpu.memory_space<vmem>>, %arg11: memref<32x256xbf16, #tpu.memory_space<vmem>>) attributes {dimension_semantics = [#tpu.dimension_semantics<parallel>], iteration_bounds = array<i64: 1>, scalar_prefetch = 0 : i64, scratch_operands = 1 : i64, tpu.core_type = #tpu.core_type<tc>, window_params = [{transform_indices = @transform_0, window_bounds = array<i64: 1, 32, 256>}, {pipeline_mode = #tpu.pipeline_mode<synchronous>, transform_indices = @transform_1, window_bounds = array<i64: 256, 768>}, {pipeline_mode = #tpu.pipeline_mode<synchronous>, transform_indices = @transform_2, window_bounds = array<i64: 1, 768>}, {pipeline_mode = #tpu.pipeline_mode<synchronous>, transform_indices = @transform_3, window_bounds = array<i64: 256, 256>}, {pipeline_mode = #tpu.pipeline_mode<synchronous>, transform_indices = @transform_4, window_bounds = array<i64: 1, 256>}, {pipeline_mode = #tpu.pipeline_mode<synchronous>, transform_indices = @transform_5, window_bounds = array<i64: 256, 1024>}, {pipeline_mode = #tpu.pipeline_mode<synchronous>, transform_indices = @transform_6, window_bounds = array<i64: 1, 1024>}, {pipeline_mode = #tpu.pipeline_mode<synchronous>, transform_indices = @transform_7, window_bounds = array<i64: 1024, 256>}, {pipeline_mode = #tpu.pipeline_mode<synchronous>, transform_indices = @transform_8, window_bounds = array<i64: 1, 256>}, {transform_indices = @transform_9, window_bounds = array<i64: 1, 32, 256>}]} {
    %c0 = arith.constant 0 : index
    %c0_0 = arith.constant 0 : index
    %c0_1 = arith.constant 0 : index
    %0 = vector.load %arg1[%c0, %c0_0, %c0_1] : memref<1x32x256xf32, #tpu.memory_space<vmem>>, vector<1x32x256xf32>
    %1 = vector.shape_cast %0 : vector<1x32x256xf32> to vector<32x256xf32>
    %cst = arith.constant dense<0.000000e+00> : vector<32xf32>
    %2 = vector.multi_reduction <add>, %1, %cst [1] : vector<32x256xf32> to vector<32xf32>
    %3 = vector.shape_cast %2 : vector<32xf32> to vector<32x1xf32>
    %cst_2 = arith.constant 2.560000e+02 : f32
    %4 = vector.broadcast %cst_2 : f32 to vector<32x1xf32>
    %5 = arith.divf %3, %4 : vector<32x1xf32>
    %6 = vector.broadcast %5 : vector<32x1xf32> to vector<32x256xf32>
    %7 = arith.subf %1, %6 : vector<32x256xf32>
    %8 = arith.mulf %7, %7 : vector<32x256xf32>
    %cst_3 = arith.constant dense<0.000000e+00> : vector<32xf32>
    %9 = vector.multi_reduction <add>, %8, %cst_3 [1] : vector<32x256xf32> to vector<32xf32>
    %10 = vector.shape_cast %9 : vector<32xf32> to vector<32x1xf32>
    %cst_4 = arith.constant 2.560000e+02 : f32
    %11 = vector.broadcast %cst_4 : f32 to vector<32x1xf32>
    %12 = arith.divf %10, %11 : vector<32x1xf32>
    %13 = vector.broadcast %5 : vector<32x1xf32> to vector<32x256xf32>
    %14 = arith.subf %1, %13 : vector<32x256xf32>
    %cst_5 = arith.constant 9.99999974E-6 : f32
    %15 = vector.broadcast %cst_5 : f32 to vector<32x1xf32>
    %16 = arith.addf %12, %15 : vector<32x1xf32>
    %17 = math.rsqrt %16 : vector<32x1xf32>
    %18 = vector.broadcast %17 : vector<32x1xf32> to vector<32x256xf32>
    %19 = arith.mulf %14, %18 : vector<32x256xf32>
    %20 = arith.truncf %19 : vector<32x256xf32> to vector<32x256xbf16>
    %c0_6 = arith.constant 0 : index
    %c0_7 = arith.constant 0 : index
    %21 = vector.load %arg2[%c0_6, %c0_7] : memref<256x768xbf16, #tpu.memory_space<vmem>>, vector<256x768xbf16>
    %cst_8 = arith.constant dense<0.000000e+00> : vector<32x768xf32>
    %22 = tpu.matmul %20, %21, %cst_8 {dimension_numbers = #tpu.dot_dimension_numbers<[1], [0], [0], [1], [0, 0, 1, 1], [], []>} : vector<32x256xbf16>, vector<256x768xbf16>, vector<32x768xf32> -> vector<32x768xf32>
    %c0_9 = arith.constant 0 : index
    %c0_10 = arith.constant 0 : index
    %23 = vector.load %arg3[%c0_9, %c0_10] : memref<1x768xf32, #tpu.memory_space<vmem>>, vector<1x768xf32>
    %24 = vector.shape_cast %23 : vector<1x768xf32> to vector<768xf32>
    %25 = vector.shape_cast %24 : vector<768xf32> to vector<1x768xf32>
    %26 = vector.broadcast %25 : vector<1x768xf32> to vector<32x768xf32>
    %27 = arith.addf %22, %26 : vector<32x768xf32>
    %28 = vector.extract_strided_slice %27 {offsets = [0, 0], sizes = [32, 256], strides = [1, 1]} : vector<32x768xf32> to vector<32x256xf32>
    %29 = arith.truncf %28 : vector<32x256xf32> to vector<32x256xbf16>
    %30 = vector.extract_strided_slice %27 {offsets = [0, 256], sizes = [32, 256], strides = [1, 1]} : vector<32x768xf32> to vector<32x256xf32>
    %31 = arith.truncf %30 : vector<32x256xf32> to vector<32x256xbf16>
    %32 = vector.extract_strided_slice %27 {offsets = [0, 512], sizes = [32, 256], strides = [1, 1]} : vector<32x768xf32> to vector<32x256xf32>
    %33 = arith.truncf %32 : vector<32x256xf32> to vector<32x256xbf16>
    %34 = vector.extract_strided_slice %29 {offsets = [0, 0], sizes = [16, 128], strides = [1, 1]} : vector<32x256xbf16> to vector<16x128xbf16>
    %35 = vector.extract_strided_slice %31 {offsets = [0, 0], sizes = [16, 128], strides = [1, 1]} : vector<32x256xbf16> to vector<16x128xbf16>
    %cst_11 = arith.constant dense<0.000000e+00> : vector<16x16xf32>
    %36 = tpu.matmul %34, %35, %cst_11 {dimension_numbers = #tpu.dot_dimension_numbers<[1], [1], [0], [0], [0, 0, 1, 0], [], []>} : vector<16x128xbf16>, vector<16x128xbf16>, vector<16x16xf32> -> vector<16x16xf32>
    %cst_12 = arith.constant dense<0xFF800000> : vector<16xf32>
    %37 = vector.multi_reduction <maximumf>, %36, %cst_12 [1] : vector<16x16xf32> to vector<16xf32>
    %38 = vector.shape_cast %37 : vector<16xf32> to vector<16x1xf32>
    %39 = vector.broadcast %38 : vector<16x1xf32> to vector<16x16xf32>
    %40 = arith.subf %36, %39 : vector<16x16xf32>
    %41 = math.exp %40 : vector<16x16xf32>
    %cst_13 = arith.constant dense<0.000000e+00> : vector<16xf32>
    %42 = vector.multi_reduction <add>, %41, %cst_13 [1] : vector<16x16xf32> to vector<16xf32>
    %43 = vector.shape_cast %42 : vector<16xf32> to vector<16x1xf32>
    %44 = tpu.reciprocal %43 {approx = true} : vector<16x1xf32> -> vector<16x1xf32>
    %45 = vector.broadcast %44 : vector<16x1xf32> to vector<16x16xf32>
    %46 = arith.mulf %41, %45 : vector<16x16xf32>
    %47 = arith.truncf %46 : vector<16x16xf32> to vector<16x16xbf16>
    %48 = vector.extract_strided_slice %33 {offsets = [0, 0], sizes = [16, 128], strides = [1, 1]} : vector<32x256xbf16> to vector<16x128xbf16>
    %cst_14 = arith.constant dense<0.000000e+00> : vector<16x128xf32>
    %49 = tpu.matmul %47, %48, %cst_14 {dimension_numbers = #tpu.dot_dimension_numbers<[1], [0], [0], [1], [0, 0, 1, 1], [], []>} : vector<16x16xbf16>, vector<16x128xbf16>, vector<16x128xf32> -> vector<16x128xf32>
    %50 = arith.truncf %49 : vector<16x128xf32> to vector<16x128xbf16>
    %c0_15 = arith.constant 0 : index
    %c0_16 = arith.constant 0 : index
    %51 = vector.load %arg11[%c0_15, %c0_16] : memref<32x256xbf16, #tpu.memory_space<vmem>>, vector<16x128xbf16>
    tpu.vector_store %arg11[%c0_15, %c0_16], %50 {strides = array<i32>} : memref<32x256xbf16, #tpu.memory_space<vmem>>, vector<16x128xbf16>,
    %52 = vector.extract_strided_slice %29 {offsets = [0, 128], sizes = [16, 128], strides = [1, 1]} : vector<32x256xbf16> to vector<16x128xbf16>
    %53 = vector.extract_strided_slice %31 {offsets = [0, 128], sizes = [16, 128], strides = [1, 1]} : vector<32x256xbf16> to vector<16x128xbf16>
    %cst_17 = arith.constant dense<0.000000e+00> : vector<16x16xf32>
    %54 = tpu.matmul %52, %53, %cst_17 {dimension_numbers = #tpu.dot_dimension_numbers<[1], [1], [0], [0], [0, 0, 1, 0], [], []>} : vector<16x128xbf16>, vector<16x128xbf16>, vector<16x16xf32> -> vector<16x16xf32>
    %cst_18 = arith.constant dense<0xFF800000> : vector<16xf32>
    %55 = vector.multi_reduction <maximumf>, %54, %cst_18 [1] : vector<16x16xf32> to vector<16xf32>
    %56 = vector.shape_cast %55 : vector<16xf32> to vector<16x1xf32>
    %57 = vector.broadcast %56 : vector<16x1xf32> to vector<16x16xf32>
    %58 = arith.subf %54, %57 : vector<16x16xf32>
    %59 = math.exp %58 : vector<16x16xf32>
    %cst_19 = arith.constant dense<0.000000e+00> : vector<16xf32>
    %60 = vector.multi_reduction <add>, %59, %cst_19 [1] : vector<16x16xf32> to vector<16xf32>
    %61 = vector.shape_cast %60 : vector<16xf32> to vector<16x1xf32>
    %62 = tpu.reciprocal %61 {approx = true} : vector<16x1xf32> -> vector<16x1xf32>
    %63 = vector.broadcast %62 : vector<16x1xf32> to vector<16x16xf32>
    %64 = arith.mulf %59, %63 : vector<16x16xf32>
    %65 = arith.truncf %64 : vector<16x16xf32> to vector<16x16xbf16>
    %66 = vector.extract_strided_slice %33 {offsets = [0, 128], sizes = [16, 128], strides = [1, 1]} : vector<32x256xbf16> to vector<16x128xbf16>
    %cst_20 = arith.constant dense<0.000000e+00> : vector<16x128xf32>
    %67 = tpu.matmul %65, %66, %cst_20 {dimension_numbers = #tpu.dot_dimension_numbers<[1], [0], [0], [1], [0, 0, 1, 1], [], []>} : vector<16x16xbf16>, vector<16x128xbf16>, vector<16x128xf32> -> vector<16x128xf32>
    %68 = arith.truncf %67 : vector<16x128xf32> to vector<16x128xbf16>
    %c0_21 = arith.constant 0 : index
    %c128 = arith.constant 128 : index
    %69 = vector.load %arg11[%c0_21, %c128] : memref<32x256xbf16, #tpu.memory_space<vmem>>, vector<16x128xbf16>
    tpu.vector_store %arg11[%c0_21, %c128], %68 {strides = array<i32>} : memref<32x256xbf16, #tpu.memory_space<vmem>>, vector<16x128xbf16>,
    %70 = vector.extract_strided_slice %29 {offsets = [16, 0], sizes = [16, 128], strides = [1, 1]} : vector<32x256xbf16> to vector<16x128xbf16>
    %71 = vector.extract_strided_slice %31 {offsets = [16, 0], sizes = [16, 128], strides = [1, 1]} : vector<32x256xbf16> to vector<16x128xbf16>
    %cst_22 = arith.constant dense<0.000000e+00> : vector<16x16xf32>
    %72 = tpu.matmul %70, %71, %cst_22 {dimension_numbers = #tpu.dot_dimension_numbers<[1], [1], [0], [0], [0, 0, 1, 0], [], []>} : vector<16x128xbf16>, vector<16x128xbf16>, vector<16x16xf32> -> vector<16x16xf32>
    %cst_23 = arith.constant dense<0xFF800000> : vector<16xf32>
    %73 = vector.multi_reduction <maximumf>, %72, %cst_23 [1] : vector<16x16xf32> to vector<16xf32>
    %74 = vector.shape_cast %73 : vector<16xf32> to vector<16x1xf32>
    %75 = vector.broadcast %74 : vector<16x1xf32> to vector<16x16xf32>
    %76 = arith.subf %72, %75 : vector<16x16xf32>
    %77 = math.exp %76 : vector<16x16xf32>
    %cst_24 = arith.constant dense<0.000000e+00> : vector<16xf32>
    %78 = vector.multi_reduction <add>, %77, %cst_24 [1] : vector<16x16xf32> to vector<16xf32>
    %79 = vector.shape_cast %78 : vector<16xf32> to vector<16x1xf32>
    %80 = tpu.reciprocal %79 {approx = true} : vector<16x1xf32> -> vector<16x1xf32>
    %81 = vector.broadcast %80 : vector<16x1xf32> to vector<16x16xf32>
    %82 = arith.mulf %77, %81 : vector<16x16xf32>
    %83 = arith.truncf %82 : vector<16x16xf32> to vector<16x16xbf16>
    %84 = vector.extract_strided_slice %33 {offsets = [16, 0], sizes = [16, 128], strides = [1, 1]} : vector<32x256xbf16> to vector<16x128xbf16>
    %cst_25 = arith.constant dense<0.000000e+00> : vector<16x128xf32>
    %85 = tpu.matmul %83, %84, %cst_25 {dimension_numbers = #tpu.dot_dimension_numbers<[1], [0], [0], [1], [0, 0, 1, 1], [], []>} : vector<16x16xbf16>, vector<16x128xbf16>, vector<16x128xf32> -> vector<16x128xf32>
    %86 = arith.truncf %85 : vector<16x128xf32> to vector<16x128xbf16>
    %c16 = arith.constant 16 : index
    %c0_26 = arith.constant 0 : index
    %87 = vector.load %arg11[%c16, %c0_26] : memref<32x256xbf16, #tpu.memory_space<vmem>>, vector<16x128xbf16>
    tpu.vector_store %arg11[%c16, %c0_26], %86 {strides = array<i32>} : memref<32x256xbf16, #tpu.memory_space<vmem>>, vector<16x128xbf16>,
    %88 = vector.extract_strided_slice %29 {offsets = [16, 128], sizes = [16, 128], strides = [1, 1]} : vector<32x256xbf16> to vector<16x128xbf16>
    %89 = vector.extract_strided_slice %31 {offsets = [16, 128], sizes = [16, 128], strides = [1, 1]} : vector<32x256xbf16> to vector<16x128xbf16>
    %cst_27 = arith.constant dense<0.000000e+00> : vector<16x16xf32>
    %90 = tpu.matmul %88, %89, %cst_27 {dimension_numbers = #tpu.dot_dimension_numbers<[1], [1], [0], [0], [0, 0, 1, 0], [], []>} : vector<16x128xbf16>, vector<16x128xbf16>, vector<16x16xf32> -> vector<16x16xf32>
    %cst_28 = arith.constant dense<0xFF800000> : vector<16xf32>
    %91 = vector.multi_reduction <maximumf>, %90, %cst_28 [1] : vector<16x16xf32> to vector<16xf32>
    %92 = vector.shape_cast %91 : vector<16xf32> to vector<16x1xf32>
    %93 = vector.broadcast %92 : vector<16x1xf32> to vector<16x16xf32>
    %94 = arith.subf %90, %93 : vector<16x16xf32>
    %95 = math.exp %94 : vector<16x16xf32>
    %cst_29 = arith.constant dense<0.000000e+00> : vector<16xf32>
    %96 = vector.multi_reduction <add>, %95, %cst_29 [1] : vector<16x16xf32> to vector<16xf32>
    %97 = vector.shape_cast %96 : vector<16xf32> to vector<16x1xf32>
    %98 = tpu.reciprocal %97 {approx = true} : vector<16x1xf32> -> vector<16x1xf32>
    %99 = vector.broadcast %98 : vector<16x1xf32> to vector<16x16xf32>
    %100 = arith.mulf %95, %99 : vector<16x16xf32>
    %101 = arith.truncf %100 : vector<16x16xf32> to vector<16x16xbf16>
    %102 = vector.extract_strided_slice %33 {offsets = [16, 128], sizes = [16, 128], strides = [1, 1]} : vector<32x256xbf16> to vector<16x128xbf16>
    %cst_30 = arith.constant dense<0.000000e+00> : vector<16x128xf32>
    %103 = tpu.matmul %101, %102, %cst_30 {dimension_numbers = #tpu.dot_dimension_numbers<[1], [0], [0], [1], [0, 0, 1, 1], [], []>} : vector<16x16xbf16>, vector<16x128xbf16>, vector<16x128xf32> -> vector<16x128xf32>
    %104 = arith.truncf %103 : vector<16x128xf32> to vector<16x128xbf16>
    %c16_31 = arith.constant 16 : index
    %c128_32 = arith.constant 128 : index
    %105 = vector.load %arg11[%c16_31, %c128_32] : memref<32x256xbf16, #tpu.memory_space<vmem>>, vector<16x128xbf16>
    tpu.vector_store %arg11[%c16_31, %c128_32], %104 {strides = array<i32>} : memref<32x256xbf16, #tpu.memory_space<vmem>>, vector<16x128xbf16>,
    %c0_33 = arith.constant 0 : index
    %c0_34 = arith.constant 0 : index
    %106 = vector.load %arg11[%c0_33, %c0_34] : memref<32x256xbf16, #tpu.memory_space<vmem>>, vector<32x256xbf16>
    %c0_35 = arith.constant 0 : index
    %c0_36 = arith.constant 0 : index
    %107 = vector.load %arg4[%c0_35, %c0_36] : memref<256x256xbf16, #tpu.memory_space<vmem>>, vector<256x256xbf16>
    %cst_37 = arith.constant dense<0.000000e+00> : vector<32x256xf32>
    %108 = tpu.matmul %106, %107, %cst_37 {dimension_numbers = #tpu.dot_dimension_numbers<[1], [0], [0], [1], [0, 0, 1, 1], [], []>} : vector<32x256xbf16>, vector<256x256xbf16>, vector<32x256xf32> -> vector<32x256xf32>
    %c0_38 = arith.constant 0 : index
    %c0_39 = arith.constant 0 : index
    %109 = vector.load %arg5[%c0_38, %c0_39] : memref<1x256xf32, #tpu.memory_space<vmem>>, vector<1x256xf32>
    %110 = vector.shape_cast %109 : vector<1x256xf32> to vector<256xf32>
    %111 = vector.shape_cast %110 : vector<256xf32> to vector<1x256xf32>
    %112 = vector.broadcast %111 : vector<1x256xf32> to vector<32x256xf32>
    %113 = arith.addf %108, %112 : vector<32x256xf32>
    %114 = arith.addf %1, %113 : vector<32x256xf32>
    %cst_40 = arith.constant dense<0.000000e+00> : vector<32xf32>
    %115 = vector.multi_reduction <add>, %114, %cst_40 [1] : vector<32x256xf32> to vector<32xf32>
    %116 = vector.shape_cast %115 : vector<32xf32> to vector<32x1xf32>
    %cst_41 = arith.constant 2.560000e+02 : f32
    %117 = vector.broadcast %cst_41 : f32 to vector<32x1xf32>
    %118 = arith.divf %116, %117 : vector<32x1xf32>
    %119 = vector.broadcast %118 : vector<32x1xf32> to vector<32x256xf32>
    %120 = arith.subf %114, %119 : vector<32x256xf32>
    %121 = arith.mulf %120, %120 : vector<32x256xf32>
    %cst_42 = arith.constant dense<0.000000e+00> : vector<32xf32>
    %122 = vector.multi_reduction <add>, %121, %cst_42 [1] : vector<32x256xf32> to vector<32xf32>
    %123 = vector.shape_cast %122 : vector<32xf32> to vector<32x1xf32>
    %cst_43 = arith.constant 2.560000e+02 : f32
    %124 = vector.broadcast %cst_43 : f32 to vector<32x1xf32>
    %125 = arith.divf %123, %124 : vector<32x1xf32>
    %126 = vector.broadcast %118 : vector<32x1xf32> to vector<32x256xf32>
    %127 = arith.subf %114, %126 : vector<32x256xf32>
    %cst_44 = arith.constant 9.99999974E-6 : f32
    %128 = vector.broadcast %cst_44 : f32 to vector<32x1xf32>
    %129 = arith.addf %125, %128 : vector<32x1xf32>
    %130 = math.rsqrt %129 : vector<32x1xf32>
    %131 = vector.broadcast %130 : vector<32x1xf32> to vector<32x256xf32>
    %132 = arith.mulf %127, %131 : vector<32x256xf32>
    %133 = arith.truncf %132 : vector<32x256xf32> to vector<32x256xbf16>
    %c0_45 = arith.constant 0 : index
    %c0_46 = arith.constant 0 : index
    %134 = vector.load %arg6[%c0_45, %c0_46] : memref<256x1024xbf16, #tpu.memory_space<vmem>>, vector<256x1024xbf16>
    %cst_47 = arith.constant dense<0.000000e+00> : vector<32x1024xf32>
    %135 = tpu.matmul %133, %134, %cst_47 {dimension_numbers = #tpu.dot_dimension_numbers<[1], [0], [0], [1], [0, 0, 1, 1], [], []>} : vector<32x256xbf16>, vector<256x1024xbf16>, vector<32x1024xf32> -> vector<32x1024xf32>
    %c0_48 = arith.constant 0 : index
    %c0_49 = arith.constant 0 : index
    %136 = vector.load %arg7[%c0_48, %c0_49] : memref<1x1024xf32, #tpu.memory_space<vmem>>, vector<1x1024xf32>
    %137 = vector.shape_cast %136 : vector<1x1024xf32> to vector<1024xf32>
    %138 = vector.shape_cast %137 : vector<1024xf32> to vector<1x1024xf32>
    %139 = vector.broadcast %138 : vector<1x1024xf32> to vector<32x1024xf32>
    %140 = arith.addf %135, %139 : vector<32x1024xf32>
    %cst_50 = arith.constant 0.000000e+00 : f32
    %141 = vector.broadcast %cst_50 : f32 to vector<32x1024xf32>
    %142 = arith.maximumf %140, %141 : vector<32x1024xf32>
    %143 = arith.truncf %142 : vector<32x1024xf32> to vector<32x1024xbf16>
    %c0_51 = arith.constant 0 : index
    %c0_52 = arith.constant 0 : index
    %144 = vector.load %arg8[%c0_51, %c0_52] : memref<1024x256xbf16, #tpu.memory_space<vmem>>, vector<1024x256xbf16>
    %cst_53 = arith.constant dense<0.000000e+00> : vector<32x256xf32>
    %145 = tpu.matmul %143, %144, %cst_53 {dimension_numbers = #tpu.dot_dimension_numbers<[1], [0], [0], [1], [0, 0, 1, 1], [], []>} : vector<32x1024xbf16>, vector<1024x256xbf16>, vector<32x256xf32> -> vector<32x256xf32>
    %c0_54 = arith.constant 0 : index
    %c0_55 = arith.constant 0 : index
    %146 = vector.load %arg9[%c0_54, %c0_55] : memref<1x256xf32, #tpu.memory_space<vmem>>, vector<1x256xf32>
    %147 = vector.shape_cast %146 : vector<1x256xf32> to vector<256xf32>
    %148 = vector.shape_cast %147 : vector<256xf32> to vector<1x256xf32>
    %149 = vector.broadcast %148 : vector<1x256xf32> to vector<32x256xf32>
    %150 = arith.addf %145, %149 : vector<32x256xf32>
    %151 = arith.addf %114, %150 : vector<32x256xf32>
    %c0_56 = arith.constant 0 : index
    %c0_57 = arith.constant 0 : index
    %c0_58 = arith.constant 0 : index
    %152 = vector.load %arg10[%c0_56, %c0_57, %c0_58] : memref<1x32x256xf32, #tpu.memory_space<vmem>>, vector<1x32x256xf32>
    %153 = vector.shape_cast %152 : vector<1x32x256xf32> to vector<32x256xf32>
    %154 = vector.shape_cast %151 : vector<32x256xf32> to vector<1x32x256xf32>
    tpu.vector_store %arg10[%c0_56, %c0_57, %c0_58], %154 {strides = array<i32>} : memref<1x32x256xf32, #tpu.memory_space<vmem>>, vector<1x32x256xf32>,
    return
  }
  func.func @transform_0(%arg0: i32) -> (i32, i32, i32) {
    %c0_i32 = arith.constant 0 : i32
    %c0_i32_0 = arith.constant 0 : i32
    %c0_i32_1 = arith.constant 0 : i32
    return %arg0, %c0_i32, %c0_i32_0 : i32, i32, i32
  }
  func.func @transform_1(%arg0: i32) -> (i32, i32) {
    %c0_i32 = arith.constant 0 : i32
    %c0_i32_0 = arith.constant 0 : i32
    %c0_i32_1 = arith.constant 0 : i32
    return %c0_i32, %c0_i32_0 : i32, i32
  }
  func.func @transform_2(%arg0: i32) -> (i32, i32) {
    %c0_i32 = arith.constant 0 : i32
    %c0_i32_0 = arith.constant 0 : i32
    %c0_i32_1 = arith.constant 0 : i32
    return %c0_i32, %c0_i32_0 : i32, i32
  }
  func.func @transform_3(%arg0: i32) -> (i32, i32) {
    %c0_i32 = arith.constant 0 : i32
    %c0_i32_0 = arith.constant 0 : i32
    %c0_i32_1 = arith.constant 0 : i32
    return %c0_i32, %c0_i32_0 : i32, i32
  }
  func.func @transform_4(%arg0: i32) -> (i32, i32) {
    %c0_i32 = arith.constant 0 : i32
    %c0_i32_0 = arith.constant 0 : i32
    %c0_i32_1 = arith.constant 0 : i32
    return %c0_i32, %c0_i32_0 : i32, i32
  }
  func.func @transform_5(%arg0: i32) -> (i32, i32) {
    %c0_i32 = arith.constant 0 : i32
    %c0_i32_0 = arith.constant 0 : i32
    %c0_i32_1 = arith.constant 0 : i32
    return %c0_i32, %c0_i32_0 : i32, i32
  }
  func.func @transform_6(%arg0: i32) -> (i32, i32) {
    %c0_i32 = arith.constant 0 : i32
    %c0_i32_0 = arith.constant 0 : i32
    %c0_i32_1 = arith.constant 0 : i32
    return %c0_i32, %c0_i32_0 : i32, i32
  }
  func.func @transform_7(%arg0: i32) -> (i32, i32) {
    %c0_i32 = arith.constant 0 : i32
    %c0_i32_0 = arith.constant 0 : i32
    %c0_i32_1 = arith.constant 0 : i32
    return %c0_i32, %c0_i32_0 : i32, i32
  }
  func.func @transform_8(%arg0: i32) -> (i32, i32) {
    %c0_i32 = arith.constant 0 : i32
    %c0_i32_0 = arith.constant 0 : i32
    %c0_i32_1 = arith.constant 0 : i32
    return %c0_i32, %c0_i32_0 : i32, i32
  }
  func.func @transform_9(%arg0: i32) -> (i32, i32, i32) {
    %c0_i32 = arith.constant 0 : i32
    %c0_i32_0 = arith.constant 0 : i32
    %c0_i32_1 = arith.constant 0 : i32
    return %arg0, %c0_i32, %c0_i32_0 : i32, i32, i32
  }
}

</mosaic_0001>

<bundles_post_ra>
// kernel: tpu_custom_call.1
= control target key start
LH: loop header
LB: loop body
LE: loop exit
PB: predicated region body
PF: predicated region fallthrough
CT: control target
= control target key end

     0   :  { %14 = vsyncpa [#allocation4], 0  ;;  %s5528_s0 = inlined_call_operand.hbm [shape: f32[1,32,256], index: 0, kind: input, shape index: {}]   ;;  %s5529_s1 = inlined_call_operand.hbm [shape: bf16[256,768], index: 1, kind: input, shape index: {}]   ;;  %s5530_s2 = inlined_call_operand.vmem [shape: f32[1,768], index: 2, kind: input, shape index: {}]   ;;  %s5531_s3 = inlined_call_operand.hbm [shape: bf16[256,256], index: 3, kind: input, shape index: {}]   ;;  %s5532_s4 = inlined_call_operand.hbm [shape: f32[1,256], index: 4, kind: input, shape index: {}]   ;;  %s5533_s5 = inlined_call_operand.hbm [shape: bf16[256,1024], index: 5, kind: input, shape index: {}]   ;;  %s5534_s6 = inlined_call_operand.vmem [shape: f32[1,1024], index: 6, kind: input, shape index: {}]   ;;  %s5535_s7 = inlined_call_operand.hbm [shape: bf16[1024,256], index: 7, kind: input, shape index: {}]   ;;  %s5536_s8 = inlined_call_operand.vmem [shape: f32[1,256], index: 8, kind: input, shape index: {}]   ;;  %s5537_s9 = inlined_call_operand.hbm [shape: f32[1,32,256], index: 9, kind: output, shape index: {}]  }
   0x1   :  { %15 = vsyncpa [#allocation7], 0 }
   0x2   :  { %16 = vsyncpa [#allocation10], 0 }
   0x3   :  { %17 = vsyncpa [#allocation13], 0 }
   0x4   :  { %18 = vsyncpa [#allocation5], 0  ;;  %s4951_s30 = smov [#allocation6]   ;;  %s4787_s13 = scalar_lea.hbm %s5529_s1, 12288 }
   0x5   :  { %s36_s10 = sshll.u32 %s4951_s30, 4  ;;  %p4788_p0 = scmp.ne.s32.totalorder %s5529_s1, %s4787_s13  ;;  %s37_s10 = int_to_ptr.vmem [resolvable:$true] %s36_s10 }
   0x6   :  { %p4791_p1 = scmp.lt.u32.totalorder %s4787_s13, %s5529_s1 }
   0x8   :  { %p4793_p2 = pnand %p4791_p1, %p4788_p0 }
   0xa   :  { %4796 = shalt.err (!%p4793_p2)
}
   0xb   :  { %s4797_s18 = scalar_lea.vmem %s37_s10, 12288  ;;  %p4802_p4 = scmp.lt.s32.totalorder %s37_s10, %s37_s10 }
   0xc   :  { %p4798_p3 = scmp.ne.s32.totalorder %s37_s10, %s4797_s18  ;;  %p4803_p5 = scmp.lt.s32.totalorder %s4797_s18, %s4797_s18 }
   0xe   :  { %p4804_p6 = por %p4803_p5, %p4802_p4 }
  0x10   :  { %p4805_p7 = pnand %p4804_p6, %p4798_p3 }
  0x12   :  { %4808 = shalt.err (!%p4805_p7)
}
  0x13   :  { %s4952_s19 = smov 384   ;;  %s4953_s20 = smov 24  }
  0x14   :  { %42 = dma.hbm_to_vmem [thread:$0]  %s5529_s1, 12288, %s37_s10, [#allocation7], %s4952_s19, %s4952_s19, %s4953_s20  }
  0x15   :  { %s4954_s23 = smov [#allocation9]   ;;  %s4955_s25 = smov [#allocation3]  }
  0x16   :  { %s63_s24 = sshll.u32 %s4954_s23, 4  ;;  %s24_s26 = sshll.u32 %s4955_s25, 4  ;;  %s64_s24 = int_to_ptr.vmem [resolvable:$true] %s63_s24  ;;  %s25_s26 = int_to_ptr.vmem [resolvable:$true] %s24_s26 }
  0x17   :  { %s4809_s29 = scalar_lea.hbm %s5532_s4, 32 }
  0x18   :  { %p4810_p8 = scmp.ne.s32.totalorder %s5532_s4, %s4809_s29  ;;  %p4813_p9 = scmp.lt.u32.totalorder %s4809_s29, %s5532_s4 }
  0x1a   :  { %p4815_p10 = pnand %p4813_p9, %p4810_p8 }
  0x1c   :  { %4818 = shalt.err (!%p4815_p10)
}
  0x1d   :  { %s4819_s1 = scalar_lea.vmem %s64_s24, 32  ;;  %p4824_p12 = scmp.lt.s32.totalorder %s64_s24, %s64_s24 }
  0x1e   :  { %p4820_p11 = scmp.ne.s32.totalorder %s64_s24, %s4819_s1  ;;  %p4825_p13 = scmp.lt.s32.totalorder %s4819_s1, %s4819_s1 }
  0x20   :  { %p4826_p0 = por %p4825_p13, %p4824_p12 }
  0x22   :  { %p4827_p1 = pnand %p4826_p0, %p4820_p11 }
  0x24   :  { %4830 = shalt.err (!%p4827_p1)
}
  0x25   :  { %66 = dma.hbm_to_vmem [thread:$0]  %s5532_s4, 32, %s64_s24, [#allocation10]  }
  0x26   :  { %s4831_s17 = scalar_lea.hbm %s5528_s0, 1024 }
  0x27   :  { %p4832_p2 = scmp.ne.s32.totalorder %s5528_s0, %s4831_s17  ;;  %p4835_p3 = scmp.lt.u32.totalorder %s4831_s17, %s5528_s0 }
  0x29   :  { %p4837_p4 = pnand %p4835_p3, %p4832_p2 }
  0x2b   :  { %4840 = shalt.err (!%p4837_p4)
}
  0x2c   :  { %s4841_s22 = scalar_lea.vmem %s25_s26, 1024  ;;  %p4846_p6 = scmp.lt.s32.totalorder %s25_s26, %s25_s26 }
  0x2d   :  { %p4842_p5 = scmp.ne.s32.totalorder %s25_s26, %s4841_s22  ;;  %p4847_p7 = scmp.lt.s32.totalorder %s4841_s22, %s4841_s22 }
  0x2f   :  { %p4848_p8 = por %p4847_p7, %p4846_p6 }
  0x31   :  { %p4849_p9 = pnand %p4848_p8, %p4842_p5 }
  0x33   :  { %4852 = shalt.err (!%p4849_p9)
}
  0x34   :  { %s4956_s4 = smov 256   ;;  %s4957_s23 = smov 16  }
  0x35   :  { %30 = dma.hbm_to_vmem [thread:$0]  %s5528_s0, 1024, %s25_s26, [#allocation4], %s4956_s4, %s4956_s4, %s4957_s23  }
  0x36   :  { %s4958_s27 = smov [#allocation8]   ;;  %s4853_s11 = scalar_lea.hbm %s5531_s3, 4096 }
  0x37   :  { %s50_s28 = sshll.u32 %s4958_s27, 4  ;;  %p4854_p10 = scmp.ne.s32.totalorder %s5531_s3, %s4853_s11  ;;  %s51_s28 = int_to_ptr.vmem [resolvable:$true] %s50_s28 }
  0x38   :  { %p4857_p11 = scmp.lt.u32.totalorder %s4853_s11, %s5531_s3 }
  0x3a   :  { %p4859_p12 = pnand %p4857_p11, %p4854_p10 }
  0x3c   :  { %4862 = shalt.err (!%p4859_p12)
}
  0x3d   :  { %s4863_s14 = scalar_lea.vmem %s51_s28, 4096  ;;  %p4868_p0 = scmp.lt.s32.totalorder %s51_s28, %s51_s28 }
  0x3e   :  { %p4864_p13 = scmp.ne.s32.totalorder %s51_s28, %s4863_s14  ;;  %p4869_p1 = scmp.lt.s32.totalorder %s4863_s14, %s4863_s14 }
  0x40   :  { %p4870_p2 = por %p4869_p1, %p4868_p0 }
  0x42   :  { %p4871_p3 = pnand %p4870_p2, %p4864_p13 }
  0x44   :  { %4874 = shalt.err (!%p4871_p3)
}
  0x45   :  { %s4959_s0 = smov 128   ;;  %s4960_s26 = smov 8  }
  0x46   :  { %56 = dma.hbm_to_vmem [thread:$0]  %s5531_s3, 4096, %s51_s28, [#allocation7], %s4959_s0, %s4959_s0, %s4960_s26  }
  0x47   :  { %s4961_s17 = smov [#allocation11]   ;;  %s4875_s21 = scalar_lea.hbm %s5533_s5, 16384 }
  0x48   :  { %s72_s18 = sshll.u32 %s4961_s17, 4  ;;  %p4876_p4 = scmp.ne.s32.totalorder %s5533_s5, %s4875_s21  ;;  %s73_s18 = int_to_ptr.vmem [resolvable:$true] %s72_s18 }
  0x49   :  { %p4879_p5 = scmp.lt.u32.totalorder %s4875_s21, %s5533_s5 }
  0x4b   :  { %p4881_p6 = pnand %p4879_p5, %p4876_p4 }
  0x4d   :  { %4884 = shalt.err (!%p4881_p6)
}
  0x4e   :  { %s4885_s29 = scalar_lea.vmem %s73_s18, 16384  ;;  %p4890_p8 = scmp.lt.s32.totalorder %s73_s18, %s73_s18 }
  0x4f   :  { %p4886_p7 = scmp.ne.s32.totalorder %s73_s18, %s4885_s29  ;;  %p4891_p9 = scmp.lt.s32.totalorder %s4885_s29, %s4885_s29 }
  0x51   :  { %p4892_p10 = por %p4891_p9, %p4890_p8 }
  0x53   :  { %p4893_p11 = pnand %p4892_p10, %p4886_p7 }
  0x55   :  { %4896 = shalt.err (!%p4893_p11)
}
  0x56   :  { %s4962_s3 = smov 512   ;;  %s4963_s28 = smov 32  }
  0x57   :  { %78 = dma.hbm_to_vmem [thread:$0]  %s5533_s5, 16384, %s73_s18, [#allocation10], %s4962_s3, %s4962_s3, %s4963_s28  }
  0x58   :  { %s4964_s12 = smov [#allocation12]   ;;  %s4897_s14 = scalar_lea.hbm %s5535_s7, 16384 }
  0x59   :  { %s86_s13 = sshll.u32 %s4964_s12, 4  ;;  %p4898_p12 = scmp.ne.s32.totalorder %s5535_s7, %s4897_s14  ;;  %s87_s13 = int_to_ptr.vmem [resolvable:$true] %s86_s13 }
  0x5a   :  { %p4901_p13 = scmp.lt.u32.totalorder %s4897_s14, %s5535_s7 }
  0x5c   :  { %p4903_p0 = pnand %p4901_p13, %p4898_p12 }
  0x5e   :  { %4906 = shalt.err (!%p4903_p0)
}
  0x5f   :  { %s4907_s20 = scalar_lea.vmem %s87_s13, 16384  ;;  %p4912_p2 = scmp.lt.s32.totalorder %s87_s13, %s87_s13 }
  0x60   :  { %p4908_p1 = scmp.ne.s32.totalorder %s87_s13, %s4907_s20  ;;  %p4913_p3 = scmp.lt.s32.totalorder %s4907_s20, %s4907_s20 }
  0x62   :  { %p4914_p4 = por %p4913_p3, %p4912_p2 }
  0x64   :  { %p4915_p5 = pnand %p4914_p4, %p4908_p1 }
  0x66   :  { %4918 = shalt.err (!%p4915_p5)
}
  0x67   :  { %92 = dma.hbm_to_vmem [thread:$0]  %s5535_s7, 16384, %s87_s13, [#allocation13], %s4959_s0, %s4959_s0, %s4960_s26  }
  0x68   :  { %4941 = dma.done.wait [#allocation4], 1024  }
  0x69   :  { %4942 = vsyncadd [#allocation4], 4294966272 }
  0x6a   :  { %4943 = dma.done.wait [#allocation7], 16384  }
  0x6b   :  { %4944 = vsyncadd [#allocation7], 4294950912 }
  0x6c   :  { %4945 = dma.done.wait [#allocation10], 16416  }
  0x6d   :  { %4946 = vsyncadd [#allocation10], 4294950880 }
  0x6e   :  { %4947 = dma.done.wait [#allocation13], 16384  }
  0x6f   :  { %4948 = vsyncadd [#allocation13], 4294950912  ;;  %v114_v0 = vld [vmem:[#allocation3] sm:$0xff]  ;;  %v115_v1 = vld [vmem:[#allocation3 + $0x8] sm:$0xff]  ;;  %vm4966_vm0 = vmmov 0   ;;  %vm1011_vm1 = vcmask 130048  }
  0x70   :  { %v118_v2 = vld [vmem:[#allocation3 + $0x20] sm:$0xff]  ;;  %v122_v3 = vadd.f32 %v115_v1, %v114_v0  ;;  %v119_v4 = vld [vmem:[#allocation3 + $0x28] sm:$0xff]  ;;  %v5099_v5 = vld [vmem:[#allocation3 + $0x10] sm:$0xff] }
  0x71   :  { %v5101_v6 = vld [vmem:[#allocation3 + $0x18] sm:$0xff]  ;;  %v128_v7 = vadd.f32 %v119_v4, %v118_v2  ;;  %v5103_v8 = vld [vmem:[#allocation3 + $0x30] sm:$0xff] }
  0x72   :  { %v5105_v9 = vld [vmem:[#allocation3 + $0x38] sm:$0xff]  ;;  %123 = vadd.xlane.f32.xlu0 %v122_v3  ;;  %v125_v10 = vadd.f32 %v5101_v6, %v5099_v5  ;;  %v4350_v14 = vld [vmem:[#allocation6 + $0x34] ss:$24 sps:$4 sm:$0xff]   ;;  %v4352_v15 = vld [vmem:[#allocation6 + $0x30] ss:$24 sps:$4 sm:$0xff]  }
  0x73   :  { %129 = vadd.xlane.f32.xlu1 %v128_v7  ;;  %v131_v11 = vadd.f32 %v5105_v9, %v5103_v8  ;;  %v4347_v12 = vld [vmem:[#allocation6 + $0x4] ss:$24 sps:$4 sm:$0xff]   ;;  %v4349_v13 = vld [vmem:[#allocation6] ss:$24 sps:$4 sm:$0xff]   ;;  %v4356_v18 = vld [vmem:[#allocation6 + $0x94] ss:$24 sps:$4 sm:$0xff]  }
  0x74   :  { %799 = vmatprep.subr.bf16.mxu0 %v4347_v12  ;;  %v4353_v16 = vld [vmem:[#allocation6 + $0x64] ss:$24 sps:$4 sm:$0xff]   ;;  %v4355_v17 = vld [vmem:[#allocation6 + $0x60] ss:$24 sps:$4 sm:$0xff]   ;;  %v4358_v19 = vld [vmem:[#allocation6 + $0x90] ss:$24 sps:$4 sm:$0xff]  }
  0x75   :  { %800 = vmatpush1.bf16.msra.mxu0 %v4349_v13  ;;  %v4359_v20 = vld [vmem:[#allocation6 + $0xc4] ss:$24 sps:$4 sm:$0xff]   ;;  %v4361_v21 = vld [vmem:[#allocation6 + $0xc0] ss:$24 sps:$4 sm:$0xff]   ;;  %v4362_v22 = vld [vmem:[#allocation6 + $0xf4] ss:$24 sps:$4 sm:$0xff]  }
  0x76   :  { %126 = vadd.xlane.f32.xlu0 %v125_v10  ;;  %801 = vmatprep.subr.bf16.mxu0 %v4350_v14  ;;  %v4364_v23 = vld [vmem:[#allocation6 + $0xf0] ss:$24 sps:$4 sm:$0xff]   ;;  %v4365_v24 = vld [vmem:[#allocation6 + $0x124] ss:$24 sps:$4 sm:$0xff]   ;;  %v4367_v25 = vld [vmem:[#allocation6 + $0x120] ss:$24 sps:$4 sm:$0xff]  }
  0x77   :  { %132 = vadd.xlane.f32.xlu1 %v131_v11  ;;  %v4368_v26 = vld [vmem:[#allocation6 + $0x154] ss:$24 sps:$4 sm:$0xff]   ;;  %v4370_v27 = vld [vmem:[#allocation6 + $0x150] ss:$24 sps:$4 sm:$0xff]   ;;  %v4371_v28 = vld [vmem:[#allocation6 + $0x184] ss:$24 sps:$4 sm:$0xff]  }
  0x78   :  { %v4373_v29 = vld [vmem:[#allocation6 + $0x180] ss:$24 sps:$4 sm:$0xff]   ;;  %v4374_v30 = vld [vmem:[#allocation6 + $0x1b4] ss:$24 sps:$4 sm:$0xff]   ;;  %v4376_v31 = vld [vmem:[#allocation6 + $0x1b0] ss:$24 sps:$4 sm:$0xff]  }
  0x79   :  { %802 = vmatpush1.bf16.msra.mxu0 %v4352_v15  ;;  %v4377_v32 = vld [vmem:[#allocation6 + $0x1e4] ss:$24 sps:$4 sm:$0xff]   ;;  %v4379_v61 = vld [vmem:[#allocation6 + $0x1e0] ss:$24 sps:$4 sm:$0xff]   ;;  %v4380_v62 = vld [vmem:[#allocation6 + $0x214] ss:$24 sps:$4 sm:$0xff]  }
  0x7a   :  { %803 = vmatprep.subr.bf16.mxu0 %v4353_v16  ;;  %v4382_v63 = vld [vmem:[#allocation6 + $0x210] ss:$24 sps:$4 sm:$0xff]  }
  0x7b   :  { %v4388_v3 = vld [vmem:[#allocation6 + $0x270] ss:$24 sps:$4 sm:$0xff]  }
  0x7c   :  { %v4394_v7 = vld [vmem:[#allocation6 + $0x2d0] ss:$24 sps:$4 sm:$0xff]  }
  0x7d   :  { %804 = vmatpush1.bf16.msra.mxu0 %v4355_v17 }
  0x7e   :  { %805 = vmatprep.subr.bf16.mxu0 %v4356_v18 }
  0x81   :  { %806 = vmatpush1.bf16.msra.mxu0 %v4358_v19 }
  0x82   :  { %807 = vmatprep.subr.bf16.mxu0 %v4359_v20 }
  0x85   :  { %808 = vmatpush1.bf16.msra.mxu0 %v4361_v21 }
  0x86   :  { %809 = vmatprep.subr.bf16.mxu0 %v4362_v22 }
  0x89   :  { %810 = vmatpush1.bf16.msra.mxu0 %v4364_v23 }
  0x8a   :  { %811 = vmatprep.subr.bf16.mxu0 %v4365_v24 }
  0x8d   :  { %812 = vmatpush1.bf16.msra.mxu0 %v4367_v25 }
  0x8e   :  { %813 = vmatprep.subr.bf16.mxu0 %v4368_v26 }
  0x91   :  { %814 = vmatpush1.bf16.msra.mxu0 %v4370_v27 }
  0x92   :  { %815 = vmatprep.subr.bf16.mxu0 %v4371_v28 }
  0x95   :  { %816 = vmatpush1.bf16.msra.mxu0 %v4373_v29  ;;  %v4395_v29 = vld [vmem:[#allocation6 + $0x8] ss:$24 sps:$4 sm:$0xff]  }
  0x96   :  { %817 = vmatprep.subr.bf16.mxu0 %v4374_v30 }
  0x99   :  { %818 = vmatpush1.bf16.msra.mxu0 %v4376_v31 }
  0x9a   :  { %819 = vmatprep.subr.bf16.mxu0 %v4377_v32  ;;  %v4400_v32 = vld [vmem:[#allocation6 + $0x3c] ss:$24 sps:$4 sm:$0xff]  }
  0x9d   :  { %820 = vmatpush1.bf16.msra.mxu0 %v4379_v61  ;;  %v4431_v61 = vld [vmem:[#allocation6 + $0x248] ss:$24 sps:$4 sm:$0xff]  }
  0x9e   :  { %821 = vmatprep.subr.bf16.mxu0 %v4380_v62  ;;  %v4436_v62 = vld [vmem:[#allocation6 + $0x27c] ss:$24 sps:$4 sm:$0xff]  }
  0xa1   :  { %822 = vmatpush1.bf16.msra.mxu0 %v4382_v63  ;;  %v4434_v63 = vld [vmem:[#allocation6 + $0x278] ss:$24 sps:$4 sm:$0xff]  }
  0xff   :  { %v124_v33 = vpop.xlane.xlu0 %123 }
 0x100   :  { %v135_v34 = vmul.f32 0.00390625, %v124_v33  ;;  %v130_v35 = vpop.xlane.xlu1 %129 }
 0x101   :  { %v137_v36 = vmul.f32 0.00390625, %v130_v35 }
 0x102   :  { %v5111_v37 = vsub.f32 %v114_v0, %v135_v34  ;;  %v5113_v38 = vsub.f32 %v115_v1, %v135_v34  ;;  %v4383_v0 = vld [vmem:[#allocation6 + $0x244] ss:$24 sps:$4 sm:$0xff]   ;;  %v4385_v1 = vld [vmem:[#allocation6 + $0x240] ss:$24 sps:$4 sm:$0xff]  }
 0x103   :  { %v5115_v39 = vsub.f32 %v118_v2, %v137_v36  ;;  %v5117_v40 = vsub.f32 %v119_v4, %v137_v36  ;;  %v127_v41 = vpop.xlane.xlu0 %126  ;;  %823 = vmatprep.subr.bf16.mxu0 %v4383_v0  ;;  %v4386_v2 = vld [vmem:[#allocation6 + $0x274] ss:$24 sps:$4 sm:$0xff]   ;;  %v4389_v4 = vld [vmem:[#allocation6 + $0x2a4] ss:$24 sps:$4 sm:$0xff]   ;;  %v4398_v36 = vld [vmem:[#allocation6 + $0x38] ss:$24 sps:$4 sm:$0xff]  }
 0x104   :  { %v136_v42 = vmul.f32 0.00390625, %v127_v41  ;;  %v133_v43 = vpop.xlane.xlu1 %132  ;;  %v147_v44 = vmul.f32 %v5111_v37, %v5111_v37  ;;  %v148_v45 = vmul.f32 %v5113_v38, %v5113_v38  ;;  %824 = vmatpush1.bf16.msra.mxu0 %v4385_v1  ;;  %v4439_v0 = vld [vmem:[#allocation6 + $0x2ac] ss:$24 sps:$4 sm:$0xff]   ;;  %v4437_v1 = vld [vmem:[#allocation6 + $0x2a8] ss:$24 sps:$4 sm:$0xff]  }
 0x105   :  { %v138_v46 = vmul.f32 0.00390625, %v133_v43  ;;  %v151_v47 = vmul.f32 %v5115_v39, %v5115_v39  ;;  %v152_v48 = vmul.f32 %v5117_v40, %v5117_v40  ;;  %825 = vmatprep.subr.bf16.mxu0 %v4386_v2  ;;  %v4406_v43 = vld [vmem:[#allocation6 + $0x9c] ss:$24 sps:$4 sm:$0xff]  }
 0x106   :  { %v141_v49 = vsub.f32 %v5099_v5, %v136_v42  ;;  %v142_v50 = vsub.f32 %v5101_v6, %v136_v42  ;;  %v155_v51 = vadd.f32 %v148_v45, %v147_v44  ;;  %v4391_v5 = vld [vmem:[#allocation6 + $0x2a0] ss:$24 sps:$4 sm:$0xff]   ;;  %v4392_v6 = vld [vmem:[#allocation6 + $0x2d4] ss:$24 sps:$4 sm:$0xff]  }
 0x107   :  { %v5130_v52 = vsub.f32 %v5103_v8, %v138_v46  ;;  %v5133_v53 = vsub.f32 %v5105_v9, %v138_v46  ;;  %v161_v54 = vadd.f32 %v152_v48, %v151_v47  ;;  %v4397_v8 = vld [vmem:[#allocation6 + $0xc] ss:$24 sps:$4 sm:$0xff]   ;;  %v4401_v42 = vld [vmem:[#allocation6 + $0x68] ss:$24 sps:$4 sm:$0xff]   ;;  %v4404_v44 = vld [vmem:[#allocation6 + $0x98] ss:$24 sps:$4 sm:$0xff]  }
 0x108   :  { %156 = vadd.xlane.f32.xlu0 %v155_v51  ;;  %v149_v55 = vmul.f32 %v141_v49, %v141_v49  ;;  %v150_v56 = vmul.f32 %v142_v50, %v142_v50  ;;  %826 = vmatpush1.bf16.msra.mxu0 %v4388_v3  ;;  %v4409_v45 = vld [vmem:[#allocation6 + $0xcc] ss:$24 sps:$4 sm:$0xff]   ;;  %v4407_v46 = vld [vmem:[#allocation6 + $0xc8] ss:$24 sps:$4 sm:$0xff]   ;;  %v4412_v47 = vld [vmem:[#allocation6 + $0xfc] ss:$24 sps:$4 sm:$0xff]  }
 0x109   :  { %v153_v57 = vmul.f32 %v5130_v52, %v5130_v52  ;;  %v154_v58 = vmul.f32 %v5133_v53, %v5133_v53  ;;  %827 = vmatprep.subr.bf16.mxu0 %v4389_v4  ;;  %v4415_v48 = vld [vmem:[#allocation6 + $0x12c] ss:$24 sps:$4 sm:$0xff]   ;;  %v4416_v51 = vld [vmem:[#allocation6 + $0x158] ss:$24 sps:$4 sm:$0xff]   ;;  %v4442_v2 = vld [vmem:[#allocation6 + $0x2dc] ss:$24 sps:$4 sm:$0xff]  }
 0x10a   :  { %v158_v59 = vadd.f32 %v150_v56, %v149_v55  ;;  %v4422_v55 = vld [vmem:[#allocation6 + $0x1b8] ss:$24 sps:$4 sm:$0xff]   ;;  %v4427_v56 = vld [vmem:[#allocation6 + $0x1ec] ss:$24 sps:$4 sm:$0xff]  }
 0x10b   :  { %v164_v60 = vadd.f32 %v154_v58, %v153_v57  ;;  %v4425_v57 = vld [vmem:[#allocation6 + $0x1e8] ss:$24 sps:$4 sm:$0xff]   ;;  %v4430_v58 = vld [vmem:[#allocation6 + $0x21c] ss:$24 sps:$4 sm:$0xff]   ;;  %v4440_v3 = vld [vmem:[#allocation6 + $0x2d8] ss:$24 sps:$4 sm:$0xff]  }
 0x10c   :  { %162 = vadd.xlane.f32.xlu0 %v161_v54  ;;  %159 = vadd.xlane.f32.xlu1 %v158_v59  ;;  %v4424_v54 = vld [vmem:[#allocation6 + $0x1bc] ss:$24 sps:$4 sm:$0xff]   ;;  %v4428_v59 = vld [vmem:[#allocation6 + $0x218] ss:$24 sps:$4 sm:$0xff]  }
 0x10d   :  { %828 = vmatpush1.bf16.msra.mxu0 %v4391_v5  ;;  %v4445_v4 = vld [vmem:[#allocation6 + $0x14] ss:$24 sps:$4 sm:$0xff]   ;;  %v4443_v5 = vld [vmem:[#allocation6 + $0x10] ss:$24 sps:$4 sm:$0xff]  }
 0x10e   :  { %829 = vmatprep.subr.bf16.mxu0 %v4392_v6  ;;  %v4448_v6 = vld [vmem:[#allocation6 + $0x44] ss:$24 sps:$4 sm:$0xff]  }
 0x110   :  { %165 = vadd.xlane.f32.xlu1 %v164_v60  ;;  %v4433_v60 = vld [vmem:[#allocation6 + $0x24c] ss:$24 sps:$4 sm:$0xff]  }
 0x111   :  { %830 = vmatpush1.bf16.msra.mxu0 %v4394_v7  ;;  %v4446_v7 = vld [vmem:[#allocation6 + $0x40] ss:$24 sps:$4 sm:$0xff]  }
 0x112   :  { %852 = vmatprep.subr.bf16.mxu0 %v4397_v8  ;;  %v4451_v8 = vld [vmem:[#allocation6 + $0x74] ss:$24 sps:$4 sm:$0xff]  }
 0x195   :  { %v157_v9 = vpop.xlane.xlu0 %156 }
 0x196   :  { %v167_v10 = vmul.f32 0.00390625, %v157_v9  ;;  %v4449_v9 = vld [vmem:[#allocation6 + $0x70] ss:$24 sps:$4 sm:$0xff]  }
 0x198   :  { %v171_v11 = vadd.f32 1e-05, %v167_v10  ;;  %v4454_v10 = vld [vmem:[#allocation6 + $0xa4] ss:$24 sps:$4 sm:$0xff]  }
 0x199   :  { %v160_v12 = vpop.xlane.xlu1 %159  ;;  %v163_v13 = vpop.xlane.xlu0 %162 }
 0x19a   :  { %v168_v14 = vmul.f32 0.00390625, %v160_v12  ;;  %v169_v15 = vmul.f32 0.00390625, %v163_v13  ;;  %4731 = vrsqrt.f32 %v171_v11  ;;  %v4452_v11 = vld [vmem:[#allocation6 + $0xa0] ss:$24 sps:$4 sm:$0xff]   ;;  %v4457_v12 = vld [vmem:[#allocation6 + $0xd4] ss:$24 sps:$4 sm:$0xff]  }
 0x19b   :  { %v4455_v13 = vld [vmem:[#allocation6 + $0xd0] ss:$24 sps:$4 sm:$0xff]  }
 0x19c   :  { %v172_v16 = vadd.f32 1e-05, %v168_v14  ;;  %v173_v17 = vadd.f32 1e-05, %v169_v15  ;;  %v4460_v14 = vld [vmem:[#allocation6 + $0x104] ss:$24 sps:$4 sm:$0xff]  }
 0x19d   :  { %v166_v18 = vpop.xlane.xlu1 %165  ;;  %v4458_v15 = vld [vmem:[#allocation6 + $0x100] ss:$24 sps:$4 sm:$0xff]  }
 0x19e   :  { %4733 = vrsqrt.f32 %v172_v16  ;;  %v170_v19 = vmul.f32 0.00390625, %v166_v18  ;;  %v4463_v16 = vld [vmem:[#allocation6 + $0x134] ss:$24 sps:$4 sm:$0xff]   ;;  %v4466_v18 = vld [vmem:[#allocation6 + $0x164] ss:$24 sps:$4 sm:$0xff]  }
 0x19f   :  { %4735 = vrsqrt.f32 %v173_v17  ;;  %v4461_v17 = vld [vmem:[#allocation6 + $0x130] ss:$24 sps:$4 sm:$0xff]  }
 0x1a0   :  { %v174_v20 = vadd.f32 1e-05, %v170_v19  ;;  %v4464_v19 = vld [vmem:[#allocation6 + $0x160] ss:$24 sps:$4 sm:$0xff]  }
 0x1a2   :  { %4737 = vrsqrt.f32 %v174_v20  ;;  %v4469_v20 = vld [vmem:[#allocation6 + $0x194] ss:$24 sps:$4 sm:$0xff]  }
 0x1a4   :  { %v4732_v21 = vpop.eup %4731 }
 0x1a5   :  { %v180_v23 = vmul.f32 %v4732_v21, %v5113_v38  ;;  %v179_v25 = vmul.f32 %v4732_v21, %v5111_v37  ;;  %v4403_v37 = vld [vmem:[#allocation6 + $0x6c] ss:$24 sps:$4 sm:$0xff]   ;;  %v4467_v21 = vld [vmem:[#allocation6 + $0x190] ss:$24 sps:$4 sm:$0xff]  }
 0x1a8   :  { %v4734_v22 = vpop.eup %4733 }
 0x1a9   :  { %v182_v24 = vmul.f32 %v4734_v22, %v142_v50  ;;  %v181_v26 = vmul.f32 %v4734_v22, %v141_v49  ;;  %v4736_v27 = vpop.eup %4735  ;;  %v4413_v49 = vld [vmem:[#allocation6 + $0x128] ss:$24 sps:$4 sm:$0xff]   ;;  %v4418_v50 = vld [vmem:[#allocation6 + $0x15c] ss:$24 sps:$4 sm:$0xff]  }
 0x1aa   :  { %v184_v33 = vmul.f32 %v4736_v27, %v5117_v40  ;;  %v183_v41 = vmul.f32 %v4736_v27, %v5115_v39  ;;  %v4410_v39 = vld [vmem:[#allocation6 + $0xf8] ss:$24 sps:$4 sm:$0xff]   ;;  %v4472_v22 = vld [vmem:[#allocation6 + $0x1c4] ss:$24 sps:$4 sm:$0xff]  }
 0x1ab   :  { %v5141_v28 = vpack.c.bf16 %v182_v24, %v180_v23  ;;  %v5143_v30 = vpack.c.bf16 %v181_v26, %v179_v25  ;;  %v4470_v23 = vld [vmem:[#allocation6 + $0x1c0] ss:$24 sps:$4 sm:$0xff]   ;;  %v4475_v24 = vld [vmem:[#allocation6 + $0x1f4] ss:$24 sps:$4 sm:$0xff]   ;;  %v4473_v25 = vld [vmem:[#allocation6 + $0x1f0] ss:$24 sps:$4 sm:$0xff]  }
 0x1ac   :  { %v4738_v31 = vpop.eup %4737  ;;  %v4478_v26 = vld [vmem:[#allocation6 + $0x224] ss:$24 sps:$4 sm:$0xff]   ;;  %v4476_v27 = vld [vmem:[#allocation6 + $0x220] ss:$24 sps:$4 sm:$0xff]  }
 0x1ad   :  { %831 = vmatprep.mubr.bf16.mxu0 %v5141_v28  ;;  %v186_v34 = vmul.f32 %v4738_v31, %v5133_v53  ;;  %v185_v38 = vmul.f32 %v4738_v31, %v5130_v52  ;;  %v4421_v52 = vld [vmem:[#allocation6 + $0x18c] ss:$24 sps:$4 sm:$0xff]   ;;  %v4419_v53 = vld [vmem:[#allocation6 + $0x188] ss:$24 sps:$4 sm:$0xff]  }
 0x1ae   :  { %832 = vmatmul.mubr.bf16.vlgmr.msra.gmra.mrb[0].mxu0 %v5143_v30  ;;  %v4484_v31 = vld [vmem:[#allocation6 + $0x284] ss:$24 sps:$4 sm:$0xff]  }
 0x1af   :  { %853 = vmatpush1.bf16.msra.mxu0 %v4395_v29  ;;  %v5149_v35 = vpack.c.bf16 %v186_v34, %v184_v33  ;;  %v5154_v40 = vpack.c.bf16 %v185_v38, %v183_v41  ;;  %v4479_v29 = vld [vmem:[#allocation6 + $0x250] ss:$24 sps:$4 sm:$0xff]   ;;  %v4487_v33 = vld [vmem:[#allocation6 + $0x2b4] ss:$24 sps:$4 sm:$0xff]   ;;  %v4965_v38 = vmov 0.0   ;;  %v289_v41 = vlaneseq }
 0x1b0   :  { %854 = vmatprep.subr.bf16.mxu0 %v4400_v32  ;;  %v4482_v32 = vld [vmem:[#allocation6 + $0x280] ss:$24 sps:$4 sm:$0xff]   ;;  %v4485_v34 = vld [vmem:[#allocation6 + $0x2b0] ss:$24 sps:$4 sm:$0xff]   ;;  %4268 = vmatprep.subr.bf16.mxu1 %v4965_v38 }
 0x1b1   :  { %841 = vmatprep.mubr.bf16.mxu0 %v5149_v35  ;;  %4270 = vmatprep.mubr.msk.bf16.mxu1 %vm4966_vm0, %v4965_v38 }
 0x1b3   :  { %855 = vmatpush1.bf16.msra.mxu0 %v4398_v36  ;;  %v4490_v36 = vld [vmem:[#allocation6 + $0x2e4] ss:$24 sps:$4 sm:$0xff]  }
 0x1b4   :  { %856 = vmatprep.subr.bf16.mxu0 %v4403_v37  ;;  %v4488_v37 = vld [vmem:[#allocation6 + $0x2e0] ss:$24 sps:$4 sm:$0xff]  }
 0x1b6   :  { %842 = vmatmul.mubr.bf16.gmra.mrb[4].mxu0 %v5154_v40 }
 0x1b7   :  { %857 = vmatpush1.bf16.msra.mxu0 %v4401_v42  ;;  %884 = vmatprep.mubr.bf16.mxu0 %v5141_v28  ;;  %v5171_v42 = vshrl.u32 %v289_v41, 7 }
 0x1b8   :  { %858 = vmatprep.subr.bf16.mxu0 %v4406_v43 }
 0x1bb   :  { %859 = vmatpush1.bf16.msra.mxu0 %v4404_v44 }
 0x1bc   :  { %860 = vmatprep.subr.bf16.mxu0 %v4409_v45 }
 0x1bf   :  { %861 = vmatpush1.bf16.msra.mxu0 %v4407_v46 }
 0x1c0   :  { %862 = vmatprep.subr.bf16.mxu0 %v4412_v47 }
 0x1c3   :  { %863 = vmatpush1.bf16.msra.mxu0 %v4410_v39 }
 0x1c4   :  { %864 = vmatprep.subr.bf16.mxu0 %v4415_v48 }
 0x1c7   :  { %865 = vmatpush1.bf16.msra.mxu0 %v4413_v49 }
 0x1c8   :  { %866 = vmatprep.subr.bf16.mxu0 %v4418_v50 }
 0x1cb   :  { %867 = vmatpush1.bf16.msra.mxu0 %v4416_v51 }
 0x1cc   :  { %868 = vmatprep.subr.bf16.mxu0 %v4421_v52 }
 0x1cf   :  { %869 = vmatpush1.bf16.msra.mxu0 %v4419_v53 }
 0x1d0   :  { %870 = vmatprep.subr.bf16.mxu0 %v4424_v54 }
 0x1d3   :  { %871 = vmatpush1.bf16.msra.mxu0 %v4422_v55 }
 0x1d4   :  { %872 = vmatprep.subr.bf16.mxu0 %v4427_v56 }
 0x1d7   :  { %873 = vmatpush1.bf16.msra.mxu0 %v4425_v57 }
 0x1d8   :  { %874 = vmatprep.subr.bf16.mxu0 %v4430_v58 }
 0x1db   :  { %875 = vmatpush1.bf16.msra.mxu0 %v4428_v59 }
 0x1dc   :  { %876 = vmatprep.subr.bf16.mxu0 %v4433_v60 }
 0x1df   :  { %877 = vmatpush1.bf16.msra.mxu0 %v4431_v61 }
 0x1e0   :  { %878 = vmatprep.subr.bf16.mxu0 %v4436_v62 }
 0x1e3   :  { %879 = vmatpush1.bf16.msra.mxu0 %v4434_v63 }
 0x1e4   :  { %880 = vmatprep.subr.bf16.mxu0 %v4439_v0  ;;  %v299_v0 = vsub.s32 2, %v5171_v42 }
 0x1e7   :  { %881 = vmatpush1.bf16.msra.mxu0 %v4437_v1  ;;  %v303_v1 = vsub.s32 3, %v5171_v42 }
 0x1e8   :  { %882 = vmatprep.subr.bf16.mxu0 %v4442_v2 }
 0x1eb   :  { %883 = vmatpush1.bf16.msra.mxu0 %v4440_v3 }
 0x1ec   :  { %905 = vmatprep.subr.bf16.mxu0 %v4445_v4 }
 0x1ee   :  { %885 = vmatmul.mubr.bf16.vlgmr.msra.gmra.mrb[8].mxu0 %v5143_v30 }
 0x1ef   :  { %894 = vmatprep.mubr.bf16.mxu0 %v5149_v35  ;;  %906 = vmatpush1.bf16.msra.mxu0 %v4443_v5 }
 0x1f0   :  { %907 = vmatprep.subr.bf16.mxu0 %v4448_v6 }
 0x1f3   :  { %908 = vmatpush1.bf16.msra.mxu0 %v4446_v7 }
 0x1f4   :  { %909 = vmatprep.subr.bf16.mxu0 %v4451_v8 }
 0x1f6   :  { %895 = vmatmul.mubr.bf16.gmra.mrb[12].mxu0 %v5154_v40 }
 0x1f7   :  { %910 = vmatpush1.bf16.msra.mxu0 %v4449_v9  ;;  %937 = vmatprep.mubr.bf16.mxu0 %v5141_v28  ;;  %v4481_v28 = vld [vmem:[#allocation6 + $0x254] ss:$24 sps:$4 sm:$0xff]  }
 0x1f8   :  { %911 = vmatprep.subr.bf16.mxu0 %v4454_v10 }
 0x1fb   :  { %912 = vmatpush1.bf16.msra.mxu0 %v4452_v11 }
 0x1fc   :  { %913 = vmatprep.subr.bf16.mxu0 %v4457_v12 }
 0x1ff   :  { %914 = vmatpush1.bf16.msra.mxu0 %v4455_v13 }
 0x200   :  { %915 = vmatprep.subr.bf16.mxu0 %v4460_v14 }
 0x203   :  { %916 = vmatpush1.bf16.msra.mxu0 %v4458_v15 }
 0x204   :  { %917 = vmatprep.subr.bf16.mxu0 %v4463_v16 }
 0x207   :  { %918 = vmatpush1.bf16.msra.mxu0 %v4461_v17 }
 0x208   :  { %919 = vmatprep.subr.bf16.mxu0 %v4466_v18 }
 0x20b   :  { %920 = vmatpush1.bf16.msra.mxu0 %v4464_v19 }
 0x20c   :  { %921 = vmatprep.subr.bf16.mxu0 %v4469_v20 }
 0x20f   :  { %922 = vmatpush1.bf16.msra.mxu0 %v4467_v21 }
 0x210   :  { %923 = vmatprep.subr.bf16.mxu0 %v4472_v22 }
 0x213   :  { %924 = vmatpush1.bf16.msra.mxu0 %v4470_v23 }
 0x214   :  { %925 = vmatprep.subr.bf16.mxu0 %v4475_v24  ;;  %v307_v24 = vsub.s32 4, %v5171_v42 }
 0x217   :  { %926 = vmatpush1.bf16.msra.mxu0 %v4473_v25  ;;  %v311_v25 = vsub.s32 5, %v5171_v42 }
 0x218   :  { %927 = vmatprep.subr.bf16.mxu0 %v4478_v26 }
 0x21b   :  { %928 = vmatpush1.bf16.msra.mxu0 %v4476_v27 }
 0x21c   :  { %929 = vmatprep.subr.bf16.mxu0 %v4481_v28 }
 0x21f   :  { %930 = vmatpush1.bf16.msra.mxu0 %v4479_v29 }
 0x220   :  { %931 = vmatprep.subr.bf16.mxu0 %v4484_v31 }
 0x223   :  { %932 = vmatpush1.bf16.msra.mxu0 %v4482_v32 }
 0x224   :  { %933 = vmatprep.subr.bf16.mxu0 %v4487_v33 }
 0x227   :  { %934 = vmatpush1.bf16.msra.mxu0 %v4485_v34 }
 0x228   :  { %935 = vmatprep.subr.bf16.mxu0 %v4490_v36 }
 0x22b   :  { %936 = vmatpush1.bf16.msra.mxu0 %v4488_v37 }
 0x22c   :  { %4250 = vmatprep.subr.bf16.mxu0 %v4965_v38 }
 0x22e   :  { %938 = vmatmul.mubr.bf16.vlgmr.msra.gmra.mrb[16].mxu0 %v5143_v30  ;;  %v5174_v30 = vsub.s32 0, %v5171_v42 }
 0x22f   :  { %947 = vmatprep.mubr.bf16.mxu0 %v5149_v35  ;;  %v287_v35 = vld [vmem:[%s5530_s2] sm:$0x3f] }
 0x230   :  { %v292_v43 = vrot.slane %v287_v35, %v5174_v30  ;;  %v300_v2 = vrot.slane %v287_v35, %v299_v0  ;;  %v304_v4 = vrot.slane %v287_v35, %v303_v1  ;;  %v308_v26 = vrot.slane %v287_v35, %v307_v24 }
 0x231   :  { %v312_v28 = vrot.slane %v287_v35, %v311_v25 }
 0x236   :  { %948 = vmatmul.mubr.bf16.gmra.mrb[20].mxu0 %v5154_v40  ;;  %v5180_v40 = vsub.s32 1, %v5171_v42 }
 0x237   :  { %4252 = vmatprep.mubr.msk.bf16.mxu0 %vm4966_vm0, %v4965_v38 }
 0x238   :  { %v296_v45 = vrot.slane %v287_v35, %v5180_v40 }
 0x281   :  { %v833_v44 = vpop.f32.mrb[0].mxu0 }
 0x282   :  { %v835_v46 = vpop.f32.mrb[1].mxu0  ;;  %v834_v39 = vadd.f32 %v833_v44, %v292_v43 }
 0x283   :  { %v837_v47 = vpop.f32.mrb[2].mxu0  ;;  %v5184_v50 = vadd.f32 %v835_v46, %v296_v45 }
 0x284   :  { %v838_v48 = vadd.f32 %v837_v47, %v292_v43  ;;  %v839_v49 = vpop.f32.mrb[3].mxu0 }
 0x285   :  { %v5186_v51 = vadd.f32 %v839_v49, %v296_v45 }
 0x286   :  { %v958_v52 = vpack.c.bf16 %v838_v48, %v834_v39 }
 0x287   :  { %v959_v53 = vpack.c.bf16 %v5186_v51, %v5184_v50 }
 0x289   :  { %v843_v54 = vpop.f32.mrb[4].mxu0 }
 0x28a   :  { %v5190_v55 = vadd.f32 %v843_v54, %v292_v43  ;;  %v845_v56 = vpop.f32.mrb[5].mxu0 }
 0x28b   :  { %v5192_v57 = vadd.f32 %v845_v56, %v296_v45  ;;  %v847_v58 = vpop.f32.mrb[6].mxu0 }
 0x28c   :  { %v5194_v59 = vadd.f32 %v847_v58, %v292_v43  ;;  %v849_v60 = vpop.f32.mrb[7].mxu0 }
 0x28d   :  { %v5196_v61 = vadd.f32 %v849_v60, %v296_v45 }
 0x28e   :  { %v960_v62 = vpack.c.bf16 %v5194_v59, %v5190_v55 }
 0x28f   :  { %v961_v63 = vpack.c.bf16 %v5196_v61, %v5192_v57 }
 0x2c1   :  { %v886_v3 = vpop.f32.mrb[8].mxu0 }
 0x2c2   :  { %v888_v5 = vpop.f32.mrb[9].mxu0  ;;  %v887_v7 = vadd.f32 %v886_v3, %v300_v2 }
 0x2c3   :  { %v890_v6 = vpop.f32.mrb[10].mxu0  ;;  %v5208_v10 = vadd.f32 %v888_v5, %v304_v4 }
 0x2c4   :  { %v891_v8 = vadd.f32 %v890_v6, %v300_v2  ;;  %v892_v9 = vpop.f32.mrb[11].mxu0 }
 0x2c5   :  { %v5210_v11 = vadd.f32 %v892_v9, %v304_v4 }
 0x2c6   :  { %v962_v12 = vpack.c.bf16 %v891_v8, %v887_v7 }
 0x2c7   :  { %v963_v13 = vpack.c.bf16 %v5210_v11, %v5208_v10 }
 0x2c8   :  { %4251 = vmatpush3.bf16.xpose.msra.mxu0 %v962_v12 }
 0x2c9   :  { %v896_v14 = vpop.f32.mrb[12].mxu0  ;;  %4256 = vmatprep.subr.bf16.mxu0 %v4965_v38 }
 0x2ca   :  { %v5215_v15 = vadd.f32 %v896_v14, %v300_v2  ;;  %v898_v16 = vpop.f32.mrb[13].mxu0 }
 0x2cb   :  { %v5217_v17 = vadd.f32 %v898_v16, %v304_v4  ;;  %v900_v18 = vpop.f32.mrb[14].mxu0 }
 0x2cc   :  { %v5219_v19 = vadd.f32 %v900_v18, %v300_v2  ;;  %v902_v20 = vpop.f32.mrb[15].mxu0 }
 0x2cd   :  { %v5221_v21 = vadd.f32 %v902_v20, %v304_v4 }
 0x2ce   :  { %v964_v22 = vpack.c.bf16 %v5219_v19, %v5215_v15  ;;  %v4538_v15 = vld [vmem:[#allocation8 + $0xf4] ss:$8 sps:$4 sm:$0xff]   ;;  %v4536_v19 = vld [vmem:[#allocation8 + $0xf0] ss:$8 sps:$4 sm:$0xff]  }
 0x2cf   :  { %v965_v23 = vpack.c.bf16 %v5221_v21, %v5217_v17  ;;  %4253 = vmatmul.mubr.bf16.vlgmr.msra.gmra.mrb[24].mxu0 %v958_v52 }
 0x2d0   :  { %4258 = vmatprep.mubr.msk.bf16.mxu0 %vm4966_vm0, %v4965_v38 }
 0x301   :  { %v939_v27 = vpop.f32.mrb[16].mxu0 }
 0x302   :  { %v941_v29 = vpop.f32.mrb[17].mxu0  ;;  %v940_v32 = vadd.f32 %v939_v27, %v308_v26 }
 0x303   :  { %v943_v31 = vpop.f32.mrb[18].mxu0  ;;  %v942_v36 = vadd.f32 %v941_v29, %v312_v28 }
 0x304   :  { %v944_v33 = vadd.f32 %v943_v31, %v308_v26  ;;  %v945_v34 = vpop.f32.mrb[19].mxu0 }
 0x305   :  { %v946_v37 = vadd.f32 %v945_v34, %v312_v28 }
 0x306   :  { %v966_v41 = vpack.c.bf16 %v944_v33, %v940_v32 }
 0x307   :  { %v967_v43 = vpack.c.bf16 %v946_v37, %v942_v36 }
 0x308   :  { %4257 = vmatpush3.bf16.msra.mxu0 %v966_v41 }
 0x309   :  { %v949_v44 = vpop.f32.mrb[20].mxu0  ;;  %4269 = vmatpush3.bf16.msra.mxu1 %v967_v43  ;;  %4262 = vmatprep.subr.bf16.mxu0 %v4965_v38 }
 0x30a   :  { %v5236_v45 = vadd.f32 %v949_v44, %v308_v26  ;;  %v951_v46 = vpop.f32.mrb[21].mxu0  ;;  %4274 = vmatprep.subr.bf16.mxu1 %v4965_v38 }
 0x30b   :  { %v5239_v35 = vadd.f32 %v951_v46, %v312_v28  ;;  %v953_v47 = vpop.f32.mrb[22].mxu0 }
 0x30c   :  { %v5241_v39 = vadd.f32 %v953_v47, %v308_v26  ;;  %v955_v48 = vpop.f32.mrb[23].mxu0 }
 0x30d   :  { %v5243_v49 = vadd.f32 %v955_v48, %v312_v28 }
 0x30e   :  { %v968_v52 = vpack.c.bf16 %v5241_v39, %v5236_v45 }
 0x30f   :  { %v969_v54 = vpack.c.bf16 %v5243_v49, %v5239_v35 }
 0x3a2   :  { %v1004_v56 = vpop.f32.mrb[24].mxu0 }
 0x3a3   :  { %v4254_v58 = vpop.f32.mrb[25].mxu0  ;;  %v1012_v60 = vsel %vm1011_vm1, %v1004_v56, -inf }
 0x3a4   :  { %1013 = vmax.xlane.f32.xlu0 %v1012_v60  ;;  %v1007_v2 = vpop.f32.mrb[26].mxu0 }
 0x3a5   :  { %v4255_v3 = vpop.f32.mrb[27].mxu0  ;;  %v1015_v4 = vsel %vm1011_vm1, %v1007_v2, -inf }
 0x3a6   :  { %1016 = vmax.xlane.f32.xlu1 %v1015_v4 }
 0x431   :  { %v1014_v5 = vpop.xlane.xlu0 %1013 }
 0x432   :  { %v1018_v6 = vsub.f32 %v1004_v56, %v1014_v5  ;;  %v4491_v5 = vld [vmem:[#allocation8] ss:$8 sps:$4 sm:$0xff]  }
 0x433   :  { %v1017_v7 = vpop.xlane.xlu1 %1016 }
 0x434   :  { %v1020_v8 = vmul.f32 1.442695, %v1018_v6  ;;  %v1019_v9 = vsub.f32 %v1007_v2, %v1017_v7  ;;  %v4493_v6 = vld [vmem:[#allocation8 + $0x4] ss:$8 sps:$4 sm:$0xff]   ;;  %v4496_v7 = vld [vmem:[#allocation8 + $0x14] ss:$8 sps:$4 sm:$0xff]  }
 0x436   :  { %4739 = vpow2.f32 %v1020_v8  ;;  %v1022_v12 = vmul.f32 1.442695, %v1019_v9  ;;  %v4494_v8 = vld [vmem:[#allocation8 + $0x10] ss:$8 sps:$4 sm:$0xff]   ;;  %v4499_v9 = vld [vmem:[#allocation8 + $0x24] ss:$8 sps:$4 sm:$0xff]  }
 0x438   :  { %4741 = vpow2.f32 %v1022_v12  ;;  %v4497_v12 = vld [vmem:[#allocation8 + $0x20] ss:$8 sps:$4 sm:$0xff]  }
 0x440   :  { %v4740_v14 = vpop.eup %4739 }
 0x441   :  { %v1024_v16 = vsel %vm1011_vm1, %v4740_v14, 0.0 }
 0x442   :  { %v4742_v18 = vpop.eup %4741  ;;  %1025 = vadd.xlane.f32.xlu0 %v1024_v16  ;;  %v4500_v16 = vld [vmem:[#allocation8 + $0x30] ss:$8 sps:$4 sm:$0xff]  }
 0x443   :  { %v1027_v20 = vsel %vm1011_vm1, %v4742_v18, 0.0 }
 0x444   :  { %1028 = vadd.xlane.f32.xlu1 %v1027_v20  ;;  %v4503_v20 = vld [vmem:[#allocation8 + $0x40] ss:$8 sps:$4 sm:$0xff]  }
 0x4cf   :  { %v1026_v26 = vpop.xlane.xlu0 %1025 }
 0x4d0   :  { %4743 = vrcp.f32 %v1026_v26  ;;  %v4508_v26 = vld [vmem:[#allocation8 + $0x54] ss:$8 sps:$4 sm:$0xff]  }
 0x4d1   :  { %v1029_v27 = vpop.xlane.xlu1 %1028 }
 0x4d2   :  { %4745 = vrcp.f32 %v1029_v27  ;;  %v4506_v27 = vld [vmem:[#allocation8 + $0x50] ss:$8 sps:$4 sm:$0xff]  }
 0x4da   :  { %v4744_v28 = vpop.eup %4743 }
 0x4db   :  { %v1032_v31 = vmul.f32 %v4744_v28, %v4740_v14  ;;  %v4502_v14 = vld [vmem:[#allocation8 + $0x34] ss:$8 sps:$4 sm:$0xff]   ;;  %v4511_v28 = vld [vmem:[#allocation8 + $0x64] ss:$8 sps:$4 sm:$0xff]  }
 0x4dc   :  { %v4746_v29 = vpop.eup %4745 }
 0x4dd   :  { %v1033_v32 = vmul.f32 %v4746_v29, %v4742_v18  ;;  %v4505_v18 = vld [vmem:[#allocation8 + $0x44] ss:$8 sps:$4 sm:$0xff]   ;;  %v4509_v29 = vld [vmem:[#allocation8 + $0x60] ss:$8 sps:$4 sm:$0xff]  }
 0x4df   :  { %v1034_v33 = vpack.c.bf16 %v1033_v32, %v1032_v31  ;;  %v4514_v31 = vld [vmem:[#allocation8 + $0x74] ss:$8 sps:$4 sm:$0xff]   ;;  %v4512_v32 = vld [vmem:[#allocation8 + $0x70] ss:$8 sps:$4 sm:$0xff]  }
 0x4e1   :  { %4259 = vmatmul.mubr.msk.bf16.vlgmr.msra.gmra.mrb[28].mxu0 %vm1011_vm1, %v1034_v33  ;;  %v4517_v33 = vld [vmem:[#allocation8 + $0x84] ss:$8 sps:$4 sm:$0xff]  }
 0x4e2   :  { %4263 = vmatpush3.bf16.xpose.msra.mxu0 %v963_v13  ;;  %4264 = vmatprep.mubr.msk.bf16.mxu0 %vm4966_vm0, %v4965_v38 }
 0x4e3   :  { %1619 = vmatprep.subr.bf16.mxu0 %v4493_v6 }
 0x4e9   :  { %4265 = vmatmul.mubr.bf16.vlgmr.msra.gmra.mrb[32].mxu0 %v959_v53 }
 0x4ea   :  { %1620 = vmatpush1.bf16.msra.mxu0 %v4491_v5 }
 0x4eb   :  { %1621 = vmatprep.subr.bf16.mxu0 %v4496_v7 }
 0x4ee   :  { %1622 = vmatpush1.bf16.msra.mxu0 %v4494_v8 }
 0x4ef   :  { %1623 = vmatprep.subr.bf16.mxu0 %v4499_v9 }
 0x4f2   :  { %1624 = vmatpush1.bf16.msra.mxu0 %v4497_v12 }
 0x4f3   :  { %1625 = vmatprep.subr.bf16.mxu0 %v4502_v14 }
 0x4f6   :  { %1626 = vmatpush1.bf16.msra.mxu0 %v4500_v16 }
 0x4f7   :  { %1627 = vmatprep.subr.bf16.mxu0 %v4505_v18 }
 0x4fa   :  { %1628 = vmatpush1.bf16.msra.mxu0 %v4503_v20 }
 0x4fb   :  { %1629 = vmatprep.subr.bf16.mxu0 %v4508_v26 }
 0x4fe   :  { %1630 = vmatpush1.bf16.msra.mxu0 %v4506_v27 }
 0x4ff   :  { %1631 = vmatprep.subr.bf16.mxu0 %v4511_v28 }
 0x502   :  { %1632 = vmatpush1.bf16.msra.mxu0 %v4509_v29 }
 0x503   :  { %1633 = vmatprep.subr.bf16.mxu0 %v4514_v31 }
 0x506   :  { %1634 = vmatpush1.bf16.msra.mxu0 %v4512_v32 }
 0x507   :  { %1635 = vmatprep.subr.bf16.mxu0 %v4517_v33 }
 0x5b4   :  { %v5262_v34 = vpop.f32.mrb[28].mxu0 }
 0x5b5   :  { %v4260_v36 = vpop.f32.mrb[29].mxu0 }
 0x5b6   :  { %v5264_v37 = vpop.f32.mrb[30].mxu0  ;;  %v4515_v36 = vld [vmem:[#allocation8 + $0x80] ss:$8 sps:$4 sm:$0xff]  }
 0x5b7   :  { %v1079_v41 = vpack.c.bf16 %v5264_v37, %v5262_v34  ;;  %v4261_v43 = vpop.f32.mrb[31].mxu0  ;;  %1636 = vmatpush1.bf16.msra.mxu0 %v4515_v36 }
 0x5b8   :  { %v4520_v43 = vld [vmem:[#allocation8 + $0x94] ss:$8 sps:$4 sm:$0xff]  }
 0x5b9   :  { %1637 = vmatprep.subr.bf16.mxu0 %v4520_v43 }
 0x5bc   :  { %v1115_v44 = vpop.f32.mrb[32].mxu0 }
 0x5bd   :  { %v4266_v46 = vpop.f32.mrb[33].mxu0  ;;  %v1122_v10 = vsel %vm1011_vm1, %v1115_v44, -inf }
 0x5be   :  { %1123 = vmax.xlane.f32.xlu0 %v1122_v10  ;;  %v1118_v11 = vpop.f32.mrb[34].mxu0  ;;  %v4523_v46 = vld [vmem:[#allocation8 + $0xa4] ss:$8 sps:$4 sm:$0xff]   ;;  %v4521_v10 = vld [vmem:[#allocation8 + $0xa0] ss:$8 sps:$4 sm:$0xff]  }
 0x5bf   :  { %v4267_v13 = vpop.f32.mrb[35].mxu0  ;;  %v1125_v47 = vsel %vm1011_vm1, %v1118_v11, -inf }
 0x5c0   :  { %1126 = vmax.xlane.f32.xlu1 %v1125_v47  ;;  %v4524_v13 = vld [vmem:[#allocation8 + $0xb0] ss:$8 sps:$4 sm:$0xff]   ;;  %v4529_v47 = vld [vmem:[#allocation8 + $0xc4] ss:$8 sps:$4 sm:$0xff]  }
 0x64b   :  { %v1124_v50 = vpop.xlane.xlu0 %1123 }
 0x64c   :  { %v1128_v51 = vsub.f32 %v1115_v44, %v1124_v50  ;;  %v4518_v44 = vld [vmem:[#allocation8 + $0x90] ss:$8 sps:$4 sm:$0xff]   ;;  %v4527_v50 = vld [vmem:[#allocation8 + $0xc0] ss:$8 sps:$4 sm:$0xff]  }
 0x64d   :  { %v1127_v53 = vpop.xlane.xlu1 %1126  ;;  %1638 = vmatpush1.bf16.msra.mxu0 %v4518_v44 }
 0x64e   :  { %v1130_v48 = vmul.f32 1.442695, %v1128_v51  ;;  %v1129_v56 = vsub.f32 %v1118_v11, %v1127_v53  ;;  %1639 = vmatprep.subr.bf16.mxu0 %v4523_v46  ;;  %v4526_v11 = vld [vmem:[#allocation8 + $0xb4] ss:$8 sps:$4 sm:$0xff]   ;;  %v4530_v53 = vld [vmem:[#allocation8 + $0xd0] ss:$8 sps:$4 sm:$0xff]  }
 0x64f   :  { %v4532_v51 = vld [vmem:[#allocation8 + $0xd4] ss:$8 sps:$4 sm:$0xff]  }
 0x650   :  { %4747 = vpow2.f32 %v1130_v48  ;;  %v1132_v58 = vmul.f32 1.442695, %v1129_v56  ;;  %v4535_v48 = vld [vmem:[#allocation8 + $0xe4] ss:$8 sps:$4 sm:$0xff]   ;;  %v4533_v56 = vld [vmem:[#allocation8 + $0xe0] ss:$8 sps:$4 sm:$0xff]  }
 0x651   :  { %1640 = vmatpush1.bf16.msra.mxu0 %v4521_v10 }
 0x652   :  { %4749 = vpow2.f32 %v1132_v58  ;;  %1641 = vmatprep.subr.bf16.mxu0 %v4526_v11 }
 0x655   :  { %1642 = vmatpush1.bf16.msra.mxu0 %v4524_v13 }
 0x656   :  { %1643 = vmatprep.subr.bf16.mxu0 %v4529_v47 }
 0x659   :  { %1644 = vmatpush1.bf16.msra.mxu0 %v4527_v50 }
 0x65a   :  { %v5270_v60 = vpop.eup %4747  ;;  %1645 = vmatprep.subr.bf16.mxu0 %v4532_v51 }
 0x65b   :  { %v1134_v2 = vsel %vm1011_vm1, %v5270_v60, 0.0 }
 0x65c   :  { %v5274_v3 = vpop.eup %4749  ;;  %1135 = vadd.xlane.f32.xlu0 %v1134_v2 }
 0x65d   :  { %v1137_v4 = vsel %vm1011_vm1, %v5274_v3, 0.0  ;;  %1646 = vmatpush1.bf16.msra.mxu0 %v4530_v53 }
 0x65e   :  { %1138 = vadd.xlane.f32.xlu1 %v1137_v4  ;;  %1647 = vmatprep.subr.bf16.mxu0 %v4535_v48 }
 0x661   :  { %1648 = vmatpush1.bf16.msra.mxu0 %v4533_v56 }
 0x662   :  { %1649 = vmatprep.subr.bf16.mxu0 %v4538_v15 }
 0x665   :  { %1650 = vmatpush1.bf16.msra.mxu0 %v4536_v19 }
 0x6e9   :  { %v1136_v58 = vpop.xlane.xlu0 %1135 }
 0x6ea   :  { %4751 = vrcp.f32 %v1136_v58  ;;  %v1447_v58 = vld [vmem:[#allocation9] sm:$0x3] }
 0x6eb   :  { %v1139_v2 = vpop.xlane.xlu1 %1138 }
 0x6ec   :  { %4753 = vrcp.f32 %v1139_v2 }
 0x6f4   :  { %v4752_v4 = vpop.eup %4751 }
 0x6f5   :  { %v1142_v6 = vmul.f32 %v4752_v4, %v5270_v60  ;;  %v5321_v4 = vrot.slane %v1447_v58, %v5174_v30 }
 0x6f6   :  { %v4754_v5 = vpop.eup %4753 }
 0x6f7   :  { %v1143_v7 = vmul.f32 %v4754_v5, %v5274_v3  ;;  %v5324_v5 = vrot.slane %v1447_v58, %v5180_v40  ;;  %v1776_v58 = vld [vmem:[#allocation11 + $0xe0] sm:$0xff] }
 0x6f9   :  { %v1144_v8 = vpack.c.bf16 %v1143_v7, %v1142_v6 }
 0x6fb   :  { %4271 = vmatmul.mubr.msk.bf16.vlgmr.msra.gmra.mrb[0].mxu1 %vm1011_vm1, %v1144_v8 }
 0x6fc   :  { %4275 = vmatpush3.bf16.xpose.msra.mxu1 %v964_v22  ;;  %4276 = vmatprep.mubr.msk.bf16.mxu1 %vm4966_vm0, %v4965_v38 }
 0x6fd   :  { %4280 = vmatprep.subr.bf16.mxu1 %v4965_v38 }
 0x703   :  { %4277 = vmatmul.mubr.bf16.vlgmr.msra.gmra.mrb[4].mxu1 %v960_v62 }
 0x704   :  { %4281 = vmatpush3.bf16.msra.mxu1 %v968_v52  ;;  %4282 = vmatprep.mubr.msk.bf16.mxu1 %vm4966_vm0, %v4965_v38 }
 0x705   :  { %4286 = vmatprep.subr.bf16.mxu1 %v4965_v38 }
 0x7ce   :  { %v1182_v22 = vpop.f32.mrb[0].mxu1 }
 0x7cf   :  { %v4272_v60 = vpop.f32.mrb[1].mxu1 }
 0x7d0   :  { %v1185_v3 = vpop.f32.mrb[2].mxu1 }
 0x7d1   :  { %v1189_v9 = vpack.c.bf16 %v1185_v3, %v1182_v22  ;;  %v4273_v12 = vpop.f32.mrb[3].mxu1  ;;  %v4779_v22 = vld [vmem:[#allocation3] sm:$0xff]  ;;  %v4780_v3 = vld [vmem:[#allocation3 + $0x8] sm:$0xff] }
 0x7d3   :  { %1651 = vmatprep.mubr.bf16.mxu0 %v1189_v9 }
 0x7d4   :  { %1652 = vmatmul.mubr.bf16.vlgmr.msra.gmra.mrb[36].mxu0 %v1079_v41 }
 0x7d6   :  { %v1225_v55 = vpop.f32.mrb[4].mxu1 }
 0x7d7   :  { %v4278_v59 = vpop.f32.mrb[5].mxu1  ;;  %v1232_v62 = vsel %vm1011_vm1, %v1225_v55, -inf }
 0x7d8   :  { %1233 = vmax.xlane.f32.xlu0 %v1232_v62  ;;  %v1228_v45 = vpop.f32.mrb[6].mxu1  ;;  %v4781_v59 = vld [vmem:[#allocation3 + $0x10] sm:$0xff] }
 0x7d9   :  { %v4279_v39 = vpop.f32.mrb[7].mxu1  ;;  %v1235_v52 = vsel %vm1011_vm1, %v1228_v45, -inf }
 0x7da   :  { %1236 = vmax.xlane.f32.xlu1 %v1235_v52 }
 0x865   :  { %v1234_v14 = vpop.xlane.xlu0 %1233 }
 0x866   :  { %v1238_v16 = vsub.f32 %v1225_v55, %v1234_v14 }
 0x867   :  { %v1237_v18 = vpop.xlane.xlu1 %1236 }
 0x868   :  { %v1240_v20 = vmul.f32 1.442695, %v1238_v16  ;;  %v1239_v26 = vsub.f32 %v1228_v45, %v1237_v18  ;;  %v4782_v45 = vld [vmem:[#allocation3 + $0x18] sm:$0xff] }
 0x86a   :  { %4755 = vpow2.f32 %v1240_v20  ;;  %v1242_v27 = vmul.f32 1.442695, %v1239_v26 }
 0x86c   :  { %4757 = vpow2.f32 %v1242_v27 }
 0x874   :  { %v4756_v34 = vpop.eup %4755 }
 0x875   :  { %v1244_v37 = vsel %vm1011_vm1, %v4756_v34, 0.0 }
 0x876   :  { %v4758_v41 = vpop.eup %4757  ;;  %1245 = vadd.xlane.f32.xlu0 %v1244_v37 }
 0x877   :  { %v1247_v28 = vsel %vm1011_vm1, %v4758_v41, 0.0 }
 0x878   :  { %1248 = vadd.xlane.f32.xlu1 %v1247_v28 }
 0x8a7   :  { %v1653_v29 = vpop.f32.mrb[36].mxu0 }
 0x8a8   :  { %v1655_v31 = vpop.f32.mrb[37].mxu0  ;;  %v1654_v6 = vadd.f32 %v1653_v29, %v5321_v4 }
 0x8a9   :  { %v1657_v32 = vpop.f32.mrb[38].mxu0  ;;  %v1656_v7 = vadd.f32 %v1655_v31, %v5324_v5 }
 0x8aa   :  { %v1659_v33 = vpop.f32.mrb[39].mxu0  ;;  %v1658_v8 = vadd.f32 %v1657_v32, %v5321_v4  ;;  %v5330_v60 = vadd.f32 %v4779_v22, %v1654_v6  ;;  %v1777_v6 = vld [vmem:[#allocation11 + $0xe8] sm:$0xff]  ;;  %v1780_v22 = vld [vmem:[#allocation11 + $0x100] sm:$0xff] }
 0x8ab   :  { %v1660_v15 = vadd.f32 %v1659_v33, %v5324_v5  ;;  %v5332_v9 = vadd.f32 %v4780_v3, %v1656_v7  ;;  %v1784_v3 = vld [vmem:[#allocation11 + $0x120] sm:$0xff] }
 0x8ac   :  { %v5335_v62 = vadd.f32 %v4781_v59, %v1658_v8 }
 0x8ad   :  { %v5337_v39 = vadd.f32 %v4782_v45, %v1660_v15  ;;  %v1680_v14 = vadd.f32 %v5332_v9, %v5330_v60 }
 0x8af   :  { %v1683_v16 = vadd.f32 %v5337_v39, %v5335_v62 }
 0x903   :  { %v1246_v36 = vpop.xlane.xlu0 %1245 }
 0x904   :  { %4759 = vrcp.f32 %v1246_v36  ;;  %v1748_v36 = vld [vmem:[#allocation11] sm:$0xff] }
 0x905   :  { %v1249_v43 = vpop.xlane.xlu1 %1248 }
 0x906   :  { %4761 = vrcp.f32 %v1249_v43  ;;  %v1752_v43 = vld [vmem:[#allocation11 + $0x20] sm:$0xff] }
 0x90e   :  { %v4760_v44 = vpop.eup %4759 }
 0x90f   :  { %v1252_v10 = vmul.f32 %v4760_v44, %v4756_v34  ;;  %v1749_v44 = vld [vmem:[#allocation11 + $0x8] sm:$0xff] }
 0x910   :  { %v4762_v46 = vpop.eup %4761 }
 0x911   :  { %v1253_v11 = vmul.f32 %v4762_v46, %v4758_v41  ;;  %v3978_v46 = vcombine.low %v1748_v36, %v1752_v43 }
 0x913   :  { %v1254_v13 = vpack.c.bf16 %v1253_v11, %v1252_v10  ;;  %v3979_v10 = vcombine.high %v1748_v36, %v1752_v43  ;;  %v1753_v11 = vld [vmem:[#allocation11 + $0x28] sm:$0xff] }
 0x915   :  { %4283 = vmatmul.mubr.msk.bf16.vlgmr.msra.gmra.mrb[8].mxu1 %vm1011_vm1, %v1254_v13  ;;  %v1756_v13 = vld [vmem:[#allocation11 + $0x40] sm:$0xff] }
 0x916   :  { %4287 = vmatpush3.bf16.xpose.msra.mxu1 %v965_v23  ;;  %4288 = vmatprep.mubr.msk.bf16.mxu1 %vm4966_vm0, %v4965_v38 }
 0x917   :  { %4292 = vmatprep.subr.bf16.mxu1 %v4965_v38 }
 0x91d   :  { %4289 = vmatmul.mubr.bf16.vlgmr.msra.gmra.mrb[12].mxu1 %v961_v63 }
 0x91e   :  { %4293 = vmatpush3.bf16.msra.mxu1 %v969_v54  ;;  %4294 = vmatprep.mubr.msk.bf16.mxu1 %vm4966_vm0, %v4965_v38 }
 0x91f   :  { %2558 = vmatprep.subr.bf16.mxu1 %v3979_v10  ;;  %v1808_v10 = vld [vmem:[#allocation11 + $0x1e0] sm:$0xff] }
 0x9e8   :  { %v1292_v47 = vpop.f32.mrb[8].mxu1 }
 0x9e9   :  { %v4284_v50 = vpop.f32.mrb[9].mxu1 }
 0x9ea   :  { %v1295_v17 = vpop.f32.mrb[10].mxu1  ;;  %v3980_v50 = vcombine.low %v1749_v44, %v1753_v11 }
 0x9eb   :  { %v1299_v21 = vpack.c.bf16 %v1295_v17, %v1292_v47  ;;  %v4285_v23 = vpop.f32.mrb[11].mxu1  ;;  %v1760_v47 = vld [vmem:[#allocation11 + $0x60] sm:$0xff]  ;;  %v3981_v17 = vcombine.high %v1749_v44, %v1753_v11  ;;  %v1805_v11 = vld [vmem:[#allocation11 + $0x1c8] sm:$0xff] }
 0x9ec   :  { %v3987_v23 = vcombine.high %v1756_v13, %v1760_v47 }
 0x9ed   :  { %2611 = vmatprep.subr.bf16.mxu0 %v3981_v17 }
 0x9ee   :  { %2612 = vmatpush1.bf16.msra.mxu0 %v3980_v50 }
 0x9f0   :  { %v1335_v51 = vpop.f32.mrb[12].mxu1 }
 0x9f1   :  { %v4290_v53 = vpop.f32.mrb[13].mxu1  ;;  %v1342_v48 = vsel %vm1011_vm1, %v1335_v51, -inf }
 0x9f2   :  { %1343 = vmax.xlane.f32.xlu0 %v1342_v48  ;;  %v1338_v56 = vpop.f32.mrb[14].mxu1  ;;  %v1761_v53 = vld [vmem:[#allocation11 + $0x68] sm:$0xff]  ;;  %v1764_v48 = vld [vmem:[#allocation11 + $0x80] sm:$0xff] }
 0x9f3   :  { %v4291_v57 = vpop.f32.mrb[15].mxu1  ;;  %v1345_v61 = vsel %vm1011_vm1, %v1338_v56, -inf }
 0x9f4   :  { %1346 = vmax.xlane.f32.xlu1 %v1345_v61  ;;  %v1768_v57 = vld [vmem:[#allocation11 + $0xa0] sm:$0xff]  ;;  %v1765_v61 = vld [vmem:[#allocation11 + $0x88] sm:$0xff] }
 0x9f5   :  { %v3994_v7 = vcombine.low %v1764_v48, %v1768_v57 }
 0xa7f   :  { %v1344_v63 = vpop.xlane.xlu0 %1343 }
 0xa80   :  { %v1348_v35 = vsub.f32 %v1335_v51, %v1344_v63  ;;  %v1757_v51 = vld [vmem:[#allocation11 + $0x48] sm:$0xff] }
 0xa81   :  { %v1347_v49 = vpop.xlane.xlu1 %1346  ;;  %v1769_v63 = vld [vmem:[#allocation11 + $0xa8] sm:$0xff] }
 0xa82   :  { %v1350_v54 = vmul.f32 1.442695, %v1348_v35  ;;  %v1349_v38 = vsub.f32 %v1338_v56, %v1347_v49  ;;  %v3989_v56 = vcombine.high %v1757_v51, %v1761_v53  ;;  %v3988_v35 = vcombine.low %v1757_v51, %v1761_v53  ;;  %v1812_v51 = vld [vmem:[#allocation11 + $0x200] sm:$0xff] }
 0xa83   :  { %v3995_v49 = vcombine.high %v1764_v48, %v1768_v57  ;;  %v3996_v8 = vcombine.low %v1765_v61, %v1769_v63  ;;  %v1816_v53 = vld [vmem:[#allocation11 + $0x220] sm:$0xff]  ;;  %v1813_v48 = vld [vmem:[#allocation11 + $0x208] sm:$0xff] }
 0xa84   :  { %4763 = vpow2.f32 %v1350_v54  ;;  %v1352_v2 = vmul.f32 1.442695, %v1349_v38  ;;  %2613 = vmatprep.subr.bf16.mxu0 %v3989_v56  ;;  %v3997_v54 = vcombine.high %v1765_v61, %v1769_v63  ;;  %v1772_v38 = vld [vmem:[#allocation11 + $0xc0] sm:$0xff]  ;;  %v1817_v56 = vld [vmem:[#allocation11 + $0x228] sm:$0xff]  ;;  %v4043_v63 = vcombine.high %v1812_v51, %v1816_v53 }
 0xa85   :  { %2614 = vmatpush1.bf16.msra.mxu0 %v3988_v35  ;;  %v4003_v15 = vcombine.high %v1772_v38, %v1776_v58  ;;  %v4002_v59 = vcombine.low %v1772_v38, %v1776_v58  ;;  %v1820_v35 = vld [vmem:[#allocation11 + $0x240] sm:$0xff]  ;;  %v1825_v38 = vld [vmem:[#allocation11 + $0x268] sm:$0xff]  ;;  %v4042_v58 = vcombine.low %v1812_v51, %v1816_v53 }
 0xa86   :  { %4765 = vpow2.f32 %v1352_v2  ;;  %v1773_v2 = vld [vmem:[#allocation11 + $0xc8] sm:$0xff]  ;;  %2615 = vmatprep.subr.bf16.mxu0 %v3997_v54 }
 0xa87   :  { %v4004_v45 = vcombine.low %v1773_v2, %v1777_v6  ;;  %v1821_v54 = vld [vmem:[#allocation11 + $0x248] sm:$0xff] }
 0xa88   :  { %v1833_v53 = vld [vmem:[#allocation11 + $0x2a8] sm:$0xff] }
 0xa89   :  { %2616 = vmatpush1.bf16.msra.mxu0 %v3996_v8 }
 0xa8e   :  { %v4764_v19 = vpop.eup %4763 }
 0xa8f   :  { %v1354_v12 = vsel %vm1011_vm1, %v4764_v19, 0.0 }
 0xa90   :  { %v4766_v55 = vpop.eup %4765  ;;  %1355 = vadd.xlane.f32.xlu0 %v1354_v12  ;;  %v1781_v12 = vld [vmem:[#allocation11 + $0x108] sm:$0xff] }
 0xa91   :  { %v1357_v52 = vsel %vm1011_vm1, %v4766_v55, 0.0 }
 0xa92   :  { %1358 = vadd.xlane.f32.xlu1 %v1357_v52  ;;  %v4011_v52 = vcombine.high %v1780_v22, %v1784_v3 }
 0xa94   :  { %1681 = vadd.xlane.f32.xlu0 %v1680_v14 }
 0xa96   :  { %1684 = vadd.xlane.f32.xlu1 %v1683_v16  ;;  %v1788_v16 = vld [vmem:[#allocation11 + $0x140] sm:$0xff] }
 0xb1d   :  { %v1356_v18 = vpop.xlane.xlu0 %1355 }
 0xb1e   :  { %4767 = vrcp.f32 %v1356_v18  ;;  %v1792_v18 = vld [vmem:[#allocation11 + $0x160] sm:$0xff] }
 0xb1f   :  { %v1359_v20 = vpop.xlane.xlu1 %1358 }
 0xb20   :  { %4769 = vrcp.f32 %v1359_v20  ;;  %v1789_v20 = vld [vmem:[#allocation11 + $0x148] sm:$0xff] }
 0xb28   :  { %v4768_v26 = vpop.eup %4767 }
 0xb29   :  { %v1362_v34 = vmul.f32 %v4768_v26, %v4764_v19  ;;  %v4005_v19 = vcombine.high %v1773_v2, %v1777_v6  ;;  %v1793_v26 = vld [vmem:[#allocation11 + $0x168] sm:$0xff]  ;;  %v4044_v2 = vcombine.low %v1813_v48, %v1817_v56 }
 0xb2a   :  { %v4770_v27 = vpop.eup %4769  ;;  %v4020_v36 = vcombine.low %v1789_v20, %v1793_v26 }
 0xb2b   :  { %v1363_v37 = vmul.f32 %v4770_v27, %v4766_v55  ;;  %v1785_v55 = vld [vmem:[#allocation11 + $0x128] sm:$0xff]  ;;  %2617 = vmatprep.subr.bf16.mxu0 %v4005_v19  ;;  %v4010_v27 = vcombine.low %v1780_v22, %v1784_v3  ;;  %v1682_v19 = vpop.xlane.xlu0 %1681  ;;  %v1685_v22 = vpop.xlane.xlu1 %1684 }
 0xb2c   :  { %v4013_v14 = vcombine.high %v1781_v12, %v1785_v55  ;;  %2618 = vmatpush1.bf16.msra.mxu0 %v4004_v45  ;;  %v1692_v3 = vmul.f32 0.00390625, %v1682_v19 }
 0xb2d   :  { %v1364_v41 = vpack.c.bf16 %v1363_v37, %v1362_v34  ;;  %v4012_v34 = vcombine.low %v1781_v12, %v1785_v55  ;;  %v4019_v37 = vcombine.high %v1788_v16, %v1792_v18  ;;  %v1693_v12 = vmul.f32 0.00390625, %v1685_v22 }
 0xb2e   :  { %2619 = vmatprep.subr.bf16.mxu0 %v4013_v14  ;;  %v5350_v14 = vsub.f32 %v5332_v9, %v1692_v3 }
 0xb2f   :  { %4295 = vmatmul.mubr.msk.bf16.vlgmr.msra.gmra.mrb[16].mxu1 %vm1011_vm1, %v1364_v41  ;;  %v4021_v41 = vcombine.high %v1789_v20, %v1793_v26  ;;  %v4783_v20 = vld [vmem:[#allocation3 + $0x20] sm:$0xff] }
 0xb30   :  { %2559 = vmatpush1.bf16.msra.mxu1 %v3978_v46  ;;  %2620 = vmatpush1.bf16.msra.mxu0 %v4012_v34  ;;  %v1804_v46 = vld [vmem:[#allocation11 + $0x1c0] sm:$0xff] }
 0xb31   :  { %2560 = vmatprep.subr.bf16.mxu1 %v3987_v23  ;;  %2621 = vmatprep.subr.bf16.mxu0 %v4021_v41  ;;  %v4035_v17 = vcombine.high %v1804_v46, %v1808_v10  ;;  %v4034_v57 = vcombine.low %v1804_v46, %v1808_v10  ;;  %v5360_v41 = vsub.f32 %v5337_v39, %v1693_v12 }
 0xb32   :  { %v1705_v46 = vmul.f32 %v5350_v14, %v5350_v14 }
 0xb34   :  { %2622 = vmatpush1.bf16.msra.mxu0 %v4020_v36  ;;  %v4786_v36 = vld [vmem:[#allocation3 + $0x38] sm:$0xff] }
 0xc02   :  { %v1402_v28 = vpop.f32.mrb[16].mxu1 }
 0xc03   :  { %v4296_v29 = vpop.f32.mrb[17].mxu1 }
 0xc04   :  { %v1405_v31 = vpop.f32.mrb[18].mxu1  ;;  %v1800_v29 = vld [vmem:[#allocation11 + $0x1a0] sm:$0xff] }
 0xc05   :  { %v1409_v32 = vpack.c.bf16 %v1405_v31, %v1402_v28  ;;  %v4297_v33 = vpop.f32.mrb[19].mxu1  ;;  %v1796_v28 = vld [vmem:[#allocation11 + $0x180] sm:$0xff]  ;;  %v1797_v31 = vld [vmem:[#allocation11 + $0x188] sm:$0xff] }
 0xc06   :  { %v4018_v33 = vcombine.low %v1788_v16, %v1792_v18  ;;  %v4027_v43 = vcombine.high %v1796_v28, %v1800_v29 }
 0xc07   :  { %1661 = vmatprep.mubr.bf16.mxu0 %v1409_v32  ;;  %v1801_v32 = vld [vmem:[#allocation11 + $0x1a8] sm:$0xff] }
 0xc08   :  { %1662 = vmatmul.mubr.bf16.gmra.mrb[40].mxu0 %v1299_v21  ;;  %v3986_v21 = vcombine.low %v1756_v13, %v1760_v47  ;;  %v4029_v44 = vcombine.high %v1797_v31, %v1801_v32  ;;  %v1809_v13 = vld [vmem:[#allocation11 + $0x1e8] sm:$0xff]  ;;  %v4026_v47 = vcombine.low %v1796_v28, %v1800_v29  ;;  %v4028_v50 = vcombine.low %v1797_v31, %v1801_v32 }
 0xc09   :  { %v4037_v23 = vcombine.high %v1805_v11, %v1809_v13  ;;  %v4036_v61 = vcombine.low %v1805_v11, %v1809_v13  ;;  %v4784_v28 = vld [vmem:[#allocation3 + $0x28] sm:$0xff]  ;;  %v4785_v32 = vld [vmem:[#allocation3 + $0x30] sm:$0xff]  ;;  %v1707_v11 = vmul.f32 %v5360_v41, %v5360_v41 }
 0xc0a   :  { %2561 = vmatpush1.bf16.msra.mxu1 %v3986_v21  ;;  %2623 = vmatprep.subr.bf16.mxu0 %v4029_v44  ;;  %v4045_v21 = vcombine.high %v1813_v48, %v1817_v56 }
 0xc0b   :  { %2562 = vmatprep.subr.bf16.mxu1 %v3995_v49  ;;  %2624 = vmatpush1.bf16.msra.mxu0 %v4028_v50  ;;  %v1824_v49 = vld [vmem:[#allocation11 + $0x260] sm:$0xff] }
 0xc0c   :  { %2625 = vmatprep.subr.bf16.mxu0 %v4037_v23  ;;  %v4051_v6 = vcombine.high %v1820_v35, %v1824_v49  ;;  %v4050_v8 = vcombine.low %v1820_v35, %v1824_v49  ;;  %v1828_v50 = vld [vmem:[#allocation11 + $0x280] sm:$0xff]  ;;  %v1829_v23 = vld [vmem:[#allocation11 + $0x288] sm:$0xff] }
 0xc0d   :  { %v4060_v56 = vcombine.low %v1829_v23, %v1833_v53  ;;  %v1841_v49 = vld [vmem:[#allocation11 + $0x2e8] sm:$0xff] }
 0xc0e   :  { %2563 = vmatpush1.bf16.msra.mxu1 %v3994_v7  ;;  %v4053_v7 = vcombine.high %v1821_v54, %v1825_v38 }
 0xc0f   :  { %2564 = vmatprep.subr.bf16.mxu1 %v4003_v15  ;;  %2626 = vmatpush1.bf16.msra.mxu0 %v4036_v61  ;;  %v4052_v15 = vcombine.low %v1821_v54, %v1825_v38  ;;  %v1836_v61 = vld [vmem:[#allocation11 + $0x2c0] sm:$0xff] }
 0xc10   :  { %2627 = vmatprep.subr.bf16.mxu0 %v4045_v21  ;;  %v1837_v21 = vld [vmem:[#allocation11 + $0x2c8] sm:$0xff] }
 0xc11   :  { %v4068_v38 = vcombine.low %v1837_v21, %v1841_v49 }
 0xc12   :  { %2565 = vmatpush1.bf16.msra.mxu1 %v4002_v59 }
 0xc13   :  { %2566 = vmatprep.subr.bf16.mxu1 %v4011_v52  ;;  %2628 = vmatpush1.bf16.msra.mxu0 %v4044_v2  ;;  %v5347_v52 = vsub.f32 %v5330_v60, %v1692_v3  ;;  %v1844_v2 = vld [vmem:[#allocation11 + $0x300] sm:$0xff] }
 0xc14   :  { %2629 = vmatprep.subr.bf16.mxu0 %v4053_v7  ;;  %v1845_v7 = vld [vmem:[#allocation11 + $0x308] sm:$0xff] }
 0xc15   :  { %v1704_v44 = vmul.f32 %v5347_v52, %v5347_v52 }
 0xc16   :  { %2567 = vmatpush1.bf16.msra.mxu1 %v4010_v27 }
 0xc17   :  { %2568 = vmatprep.subr.bf16.mxu1 %v4019_v37  ;;  %2630 = vmatpush1.bf16.msra.mxu0 %v4052_v15  ;;  %v5357_v37 = vsub.f32 %v5335_v62, %v1693_v12  ;;  %v1712_v13 = vadd.f32 %v1705_v46, %v1704_v44  ;;  %v1849_v15 = vld [vmem:[#allocation11 + $0x328] sm:$0xff]  ;;  %v1852_v12 = vld [vmem:[#allocation11 + $0x340] sm:$0xff] }
 0xc18   :  { %v4076_v22 = vcombine.low %v1845_v7, %v1849_v15  ;;  %v4077_v3 = vcombine.high %v1845_v7, %v1849_v15  ;;  %v1868_v44 = vld [vmem:[#allocation11 + $0x3c0] sm:$0xff] }
 0xc19   :  { %v1872_v46 = vld [vmem:[#allocation11 + $0x3e0] sm:$0xff] }
 0xc1a   :  { %2569 = vmatpush1.bf16.msra.mxu1 %v4018_v33 }
 0xc1b   :  { %2570 = vmatprep.subr.bf16.mxu1 %v4027_v43 }
 0xc1e   :  { %2571 = vmatpush1.bf16.msra.mxu1 %v4026_v47 }
 0xc1f   :  { %2572 = vmatprep.subr.bf16.mxu1 %v4035_v17  ;;  %v1832_v17 = vld [vmem:[#allocation11 + $0x2a0] sm:$0xff] }
 0xc20   :  { %v4059_v51 = vcombine.high %v1828_v50, %v1832_v17  ;;  %v4058_v48 = vcombine.low %v1828_v50, %v1832_v17  ;;  %v4098_v17 = vcombine.low %v1868_v44, %v1872_v46 }
 0xc22   :  { %2573 = vmatpush1.bf16.msra.mxu1 %v4034_v57  ;;  %v4061_v57 = vcombine.high %v1829_v23, %v1833_v53  ;;  %v1754_v53 = vld [vmem:[#allocation11 + $0x30] sm:$0xff] }
 0xc23   :  { %2574 = vmatprep.subr.bf16.mxu1 %v4043_v63  ;;  %v1840_v63 = vld [vmem:[#allocation11 + $0x2e0] sm:$0xff] }
 0xc24   :  { %2631 = vmatprep.subr.bf16.mxu0 %v4061_v57  ;;  %v4067_v35 = vcombine.high %v1836_v61, %v1840_v63  ;;  %v4066_v54 = vcombine.low %v1836_v61, %v1840_v63  ;;  %v1755_v61 = vld [vmem:[#allocation11 + $0x38] sm:$0xff] }
 0xc25   :  { %2632 = vmatpush1.bf16.msra.mxu0 %v4060_v56 }
 0xc26   :  { %2575 = vmatpush1.bf16.msra.mxu1 %v4042_v58  ;;  %v4069_v58 = vcombine.high %v1837_v21, %v1841_v49 }
 0xc27   :  { %2576 = vmatprep.subr.bf16.mxu1 %v4051_v6  ;;  %v1848_v6 = vld [vmem:[#allocation11 + $0x320] sm:$0xff] }
 0xc28   :  { %2633 = vmatprep.subr.bf16.mxu0 %v4069_v58  ;;  %v4074_v19 = vcombine.low %v1844_v2, %v1848_v6 }
 0xc29   :  { %2634 = vmatpush1.bf16.msra.mxu0 %v4068_v38 }
 0xc2a   :  { %2577 = vmatpush1.bf16.msra.mxu1 %v4050_v8  ;;  %v4075_v8 = vcombine.high %v1844_v2, %v1848_v6  ;;  %2635 = vmatprep.subr.bf16.mxu0 %v4077_v3 }
 0xc2b   :  { %2578 = vmatprep.subr.bf16.mxu1 %v4059_v51  ;;  %v1750_v51 = vld [vmem:[#allocation11 + $0x10] sm:$0xff] }
 0xc2c   :  { %v3982_v56 = vcombine.low %v1750_v51, %v1754_v53  ;;  %v3983_v57 = vcombine.high %v1750_v51, %v1754_v53  ;;  %v1774_v53 = vld [vmem:[#allocation11 + $0xd0] sm:$0xff] }
 0xc2d   :  { %2636 = vmatpush1.bf16.msra.mxu0 %v4076_v22 }
 0xc2e   :  { %2579 = vmatpush1.bf16.msra.mxu1 %v4058_v48  ;;  %v1751_v48 = vld [vmem:[#allocation11 + $0x18] sm:$0xff] }
 0xc2f   :  { %2580 = vmatprep.subr.bf16.mxu1 %v4067_v35  ;;  %v3984_v63 = vcombine.low %v1751_v48, %v1755_v61  ;;  %v3985_v21 = vcombine.high %v1751_v48, %v1755_v61  ;;  %v1778_v48 = vld [vmem:[#allocation11 + $0xf0] sm:$0xff]  ;;  %v1779_v61 = vld [vmem:[#allocation11 + $0xf8] sm:$0xff] }
 0xc32   :  { %2581 = vmatpush1.bf16.msra.mxu1 %v4066_v54 }
 0xc33   :  { %2582 = vmatprep.subr.bf16.mxu1 %v4075_v8 }
 0xc36   :  { %2583 = vmatpush1.bf16.msra.mxu1 %v4074_v19 }
 0xcdb   :  { %v1663_v55 = vpop.f32.mrb[40].mxu0 }
 0xcdc   :  { %v1664_v59 = vadd.f32 %v1663_v55, %v5321_v4  ;;  %v1665_v45 = vpop.f32.mrb[41].mxu0  ;;  %v1856_v55 = vld [vmem:[#allocation11 + $0x360] sm:$0xff] }
 0xcdd   :  { %v1666_v16 = vadd.f32 %v1665_v45, %v5324_v5  ;;  %v1667_v18 = vpop.f32.mrb[42].mxu0  ;;  %v4083_v45 = vcombine.high %v1852_v12, %v1856_v55 }
 0xcde   :  { %v5353_v26 = vadd.f32 %v4783_v20, %v1664_v59  ;;  %v1668_v27 = vadd.f32 %v1667_v18, %v5321_v4  ;;  %v1669_v34 = vpop.f32.mrb[43].mxu0  ;;  %v1853_v59 = vld [vmem:[#allocation11 + $0x348] sm:$0xff]  ;;  %v1860_v18 = vld [vmem:[#allocation11 + $0x380] sm:$0xff] }
 0xcdf   :  { %v5362_v29 = vadd.f32 %v4784_v28, %v1666_v16  ;;  %v1670_v31 = vadd.f32 %v1669_v34, %v5324_v5  ;;  %v1706_v5 = vmul.f32 %v5357_v37, %v5357_v37  ;;  %v1857_v16 = vld [vmem:[#allocation11 + $0x368] sm:$0xff]  ;;  %v1864_v20 = vld [vmem:[#allocation11 + $0x3a0] sm:$0xff]  ;;  %2584 = vmatprep.subr.bf16.mxu1 %v4083_v45 }
 0xce0   :  { %v5365_v33 = vadd.f32 %v4785_v32, %v1668_v27  ;;  %v4082_v27 = vcombine.low %v1852_v12, %v1856_v55  ;;  %v4085_v34 = vcombine.high %v1853_v59, %v1857_v16  ;;  %v1861_v28 = vld [vmem:[#allocation11 + $0x388] sm:$0xff]  ;;  %v4084_v32 = vcombine.low %v1853_v59, %v1857_v16 }
 0xce1   :  { %v5367_v43 = vadd.f32 %v4786_v36, %v1670_v31  ;;  %v1686_v4 = vadd.f32 %v5362_v29, %v5353_v26  ;;  %v1715_v47 = vadd.f32 %v1707_v11, %v1706_v5  ;;  %v1865_v31 = vld [vmem:[#allocation11 + $0x3a8] sm:$0xff]  ;;  %v4091_v36 = vcombine.high %v1860_v18, %v1864_v20 }
 0xce2   :  { %2637 = vmatprep.subr.bf16.mxu0 %v4085_v34  ;;  %v1873_v5 = vld [vmem:[#allocation11 + $0x3e8] sm:$0xff]  ;;  %2585 = vmatpush1.bf16.msra.mxu1 %v4082_v27  ;;  %v4090_v11 = vcombine.low %v1860_v18, %v1864_v20 }
 0xce3   :  { %1687 = vadd.xlane.f32.xlu0 %v1686_v4  ;;  %v1689_v10 = vadd.f32 %v5367_v43, %v5365_v33  ;;  %v4093_v4 = vcombine.high %v1861_v28, %v1865_v31  ;;  %2638 = vmatpush1.bf16.msra.mxu0 %v4084_v32 }
 0xce4   :  { %2586 = vmatprep.subr.bf16.mxu1 %v4091_v36 }
 0xce5   :  { %1690 = vadd.xlane.f32.xlu1 %v1689_v10  ;;  %v1869_v10 = vld [vmem:[#allocation11 + $0x3c8] sm:$0xff]  ;;  %2639 = vmatprep.subr.bf16.mxu0 %v4093_v4 }
 0xce6   :  { %v4101_v50 = vcombine.high %v1869_v10, %v1873_v5  ;;  %2587 = vmatpush1.bf16.msra.mxu1 %v4090_v11  ;;  %v4100_v23 = vcombine.low %v1869_v10, %v1873_v5  ;;  %v1763_v10 = vld [vmem:[#allocation11 + $0x78] sm:$0xff] }
 0xce7   :  { %1713 = vadd.xlane.f32.xlu0 %v1712_v13  ;;  %v4092_v13 = vcombine.low %v1861_v28, %v1865_v31  ;;  %v1758_v28 = vld [vmem:[#allocation11 + $0x50] sm:$0xff] }
 0xce9   :  { %1716 = vadd.xlane.f32.xlu1 %v1715_v47  ;;  %v4099_v47 = vcombine.high %v1868_v44, %v1872_v46  ;;  %2640 = vmatpush1.bf16.msra.mxu0 %v4092_v13  ;;  %v1762_v44 = vld [vmem:[#allocation11 + $0x70] sm:$0xff]  ;;  %v1759_v46 = vld [vmem:[#allocation11 + $0x58] sm:$0xff] }
 0xcea   :  { %2641 = vmatprep.subr.bf16.mxu0 %v4101_v50  ;;  %v3991_v13 = vcombine.high %v1758_v28, %v1762_v44  ;;  %v1766_v50 = vld [vmem:[#allocation11 + $0x90] sm:$0xff] }
 0xceb   :  { %2588 = vmatprep.subr.bf16.mxu1 %v4099_v47  ;;  %v3993_v47 = vcombine.high %v1759_v46, %v1763_v10 }
 0xcec   :  { %2589 = vmatpush1.bf16.msra.mxu1 %v4098_v17  ;;  %v1771_v17 = vld [vmem:[#allocation11 + $0xb8] sm:$0xff] }
 0xced   :  { %2642 = vmatpush1.bf16.msra.mxu0 %v4100_v23  ;;  %2664 = vmatprep.subr.bf16.mxu1 %v3983_v57  ;;  %v1775_v57 = vld [vmem:[#allocation11 + $0xd8] sm:$0xff] }
 0xcee   :  { %2717 = vmatprep.subr.bf16.mxu0 %v3985_v21 }
 0xd70   :  { %v1688_v35 = vpop.xlane.xlu0 %1687 }
 0xd71   :  { %v1694_v49 = vmul.f32 0.00390625, %v1688_v35 }
 0xd72   :  { %v1691_v54 = vpop.xlane.xlu1 %1690 }
 0xd73   :  { %v5382_v38 = vsub.f32 %v5353_v26, %v1694_v49  ;;  %v5385_v58 = vsub.f32 %v5362_v29, %v1694_v49  ;;  %v1695_v2 = vmul.f32 0.00390625, %v1691_v54  ;;  %v4007_v49 = vcombine.high %v1774_v53, %v1778_v48 }
 0xd74   :  { %v1714_v6 = vpop.xlane.xlu0 %1713  ;;  %v4009_v54 = vcombine.high %v1775_v57, %v1779_v61 }
 0xd75   :  { %v5388_v7 = vsub.f32 %v5365_v33, %v1695_v2  ;;  %v5391_v8 = vsub.f32 %v5367_v43, %v1695_v2  ;;  %v1724_v15 = vmul.f32 0.00390625, %v1714_v6  ;;  %v1708_v19 = vmul.f32 %v5382_v38, %v5382_v38  ;;  %v1783_v2 = vld [vmem:[#allocation11 + $0x118] sm:$0xff] }
 0xd76   :  { %v1717_v22 = vpop.xlane.xlu1 %1716  ;;  %v1709_v3 = vmul.f32 %v5385_v58, %v5385_v58  ;;  %v1787_v6 = vld [vmem:[#allocation11 + $0x138] sm:$0xff] }
 0xd77   :  { %v1728_v12 = vadd.f32 1e-05, %v1724_v15  ;;  %v1725_v55 = vmul.f32 0.00390625, %v1717_v22  ;;  %v1710_v59 = vmul.f32 %v5388_v7, %v5388_v7  ;;  %v1711_v45 = vmul.f32 %v5391_v8, %v5391_v8 }
 0xd78   :  { %v1718_v16 = vadd.f32 %v1709_v3, %v1708_v19  ;;  %v4006_v15 = vcombine.low %v1774_v53, %v1778_v48  ;;  %v4008_v19 = vcombine.low %v1775_v57, %v1779_v61  ;;  %v4017_v3 = vcombine.high %v1783_v2, %v1787_v6  ;;  %v1819_v53 = vld [vmem:[#allocation11 + $0x238] sm:$0xff] }
 0xd79   :  { %4771 = vrsqrt.f32 %v1728_v12  ;;  %v1729_v18 = vadd.f32 1e-05, %v1725_v55  ;;  %v1721_v20 = vadd.f32 %v1711_v45, %v1710_v59  ;;  %v1790_v12 = vld [vmem:[#allocation11 + $0x150] sm:$0xff]  ;;  %v1791_v59 = vld [vmem:[#allocation11 + $0x158] sm:$0xff] }
 0xd7a   :  { %1719 = vadd.xlane.f32.xlu0 %v1718_v16  ;;  %v1794_v55 = vld [vmem:[#allocation11 + $0x170] sm:$0xff]  ;;  %v1795_v45 = vld [vmem:[#allocation11 + $0x178] sm:$0xff] }
 0xd7b   :  { %4773 = vrsqrt.f32 %v1729_v18  ;;  %1722 = vadd.xlane.f32.xlu1 %v1721_v20  ;;  %v4016_v18 = vcombine.low %v1783_v2, %v1787_v6  ;;  %v4023_v20 = vcombine.high %v1790_v12, %v1794_v55 }
 0xd83   :  { %v4772_v27 = vpop.eup %4771 }
 0xd84   :  { %v1737_v31 = vmul.f32 %v4772_v27, %v5350_v14  ;;  %v1736_v36 = vmul.f32 %v4772_v27, %v5347_v52  ;;  %v1770_v14 = vld [vmem:[#allocation11 + $0xb0] sm:$0xff]  ;;  %v3990_v52 = vcombine.low %v1758_v28, %v1762_v44  ;;  %v4025_v27 = vcombine.high %v1791_v59, %v1795_v45 }
 0xd85   :  { %v4774_v34 = vpop.eup %4773  ;;  %v3999_v23 = vcombine.high %v1766_v50, %v1770_v14  ;;  %v3998_v21 = vcombine.low %v1766_v50, %v1770_v14  ;;  %v1802_v28 = vld [vmem:[#allocation11 + $0x1b0] sm:$0xff]  ;;  %v1811_v50 = vld [vmem:[#allocation11 + $0x1f8] sm:$0xff] }
 0xd86   :  { %v1739_v32 = vmul.f32 %v4774_v34, %v5360_v41  ;;  %v1738_v4 = vmul.f32 %v4774_v34, %v5357_v37  ;;  %v1767_v41 = vld [vmem:[#allocation11 + $0x98] sm:$0xff]  ;;  %v3992_v37 = vcombine.low %v1759_v46, %v1763_v10  ;;  %v1798_v34 = vld [vmem:[#allocation11 + $0x190] sm:$0xff] }
 0xd87   :  { %v4001_v51 = vcombine.high %v1767_v41, %v1771_v17  ;;  %v4000_v35 = vcombine.low %v1767_v41, %v1771_v17  ;;  %v4031_v44 = vcombine.high %v1798_v34, %v1802_v28  ;;  %v1806_v10 = vld [vmem:[#allocation11 + $0x1d0] sm:$0xff]  ;;  %v4030_v14 = vcombine.low %v1798_v34, %v1802_v28  ;;  %v1843_v34 = vld [vmem:[#allocation11 + $0x2f8] sm:$0xff] }
 0xd88   :  { %v5405_v5 = vpack.c.bf16 %v1739_v32, %v1737_v31  ;;  %v5407_v11 = vpack.c.bf16 %v1738_v4, %v1736_v36  ;;  %v1799_v31 = vld [vmem:[#allocation11 + $0x198] sm:$0xff]  ;;  %v4022_v36 = vcombine.low %v1790_v12, %v1794_v55  ;;  %v4024_v4 = vcombine.low %v1791_v59, %v1795_v45 }
 0xd89   :  { %v1803_v32 = vld [vmem:[#allocation11 + $0x1b8] sm:$0xff] }
 0xd8a   :  { %2590 = vmatprep.mubr.bf16.mxu1 %v5405_v5  ;;  %2643 = vmatprep.mubr.bf16.mxu0 %v5405_v5  ;;  %v4033_v46 = vcombine.high %v1799_v31, %v1803_v32  ;;  %v4032_v41 = vcombine.low %v1799_v31, %v1803_v32  ;;  %v1835_v12 = vld [vmem:[#allocation11 + $0x2b8] sm:$0xff] }
 0xd8b   :  { %2591 = vmatmul.mubr.bf16.vlgmr.msra.gmra.mrb[20].mxu1 %v5407_v11  ;;  %2644 = vmatmul.mubr.bf16.vlgmr.msra.gmra.mrb[44].mxu0 %v5407_v11 }
 0xd8c   :  { %2665 = vmatpush1.bf16.msra.mxu1 %v3982_v56  ;;  %2718 = vmatpush1.bf16.msra.mxu0 %v3984_v63  ;;  %v1782_v56 = vld [vmem:[#allocation11 + $0x110] sm:$0xff] }
 0xd8d   :  { %2666 = vmatprep.subr.bf16.mxu1 %v3991_v13  ;;  %2719 = vmatprep.subr.bf16.mxu0 %v3993_v47  ;;  %v1786_v63 = vld [vmem:[#allocation11 + $0x130] sm:$0xff]  ;;  %v1807_v47 = vld [vmem:[#allocation11 + $0x1d8] sm:$0xff] }
 0xd8e   :  { %v4015_v22 = vcombine.high %v1782_v56, %v1786_v63  ;;  %v4014_v16 = vcombine.low %v1782_v56, %v1786_v63  ;;  %v1810_v13 = vld [vmem:[#allocation11 + $0x1f0] sm:$0xff]  ;;  %v4040_v57 = vcombine.low %v1807_v47, %v1811_v50  ;;  %v1827_v56 = vld [vmem:[#allocation11 + $0x278] sm:$0xff] }
 0xd8f   :  { %v4039_v17 = vcombine.high %v1806_v10, %v1810_v13  ;;  %v4038_v48 = vcombine.low %v1806_v10, %v1810_v13  ;;  %v1851_v10 = vld [vmem:[#allocation11 + $0x338] sm:$0xff] }
 0xd90   :  { %2667 = vmatpush1.bf16.msra.mxu1 %v3990_v52  ;;  %2720 = vmatpush1.bf16.msra.mxu0 %v3992_v37  ;;  %v4041_v52 = vcombine.high %v1807_v47, %v1811_v50  ;;  %v1814_v37 = vld [vmem:[#allocation11 + $0x210] sm:$0xff] }
 0xd91   :  { %2668 = vmatprep.subr.bf16.mxu1 %v3999_v23  ;;  %2721 = vmatprep.subr.bf16.mxu0 %v4001_v51  ;;  %v1818_v23 = vld [vmem:[#allocation11 + $0x230] sm:$0xff]  ;;  %v1815_v51 = vld [vmem:[#allocation11 + $0x218] sm:$0xff] }
 0xd92   :  { %v4047_v61 = vcombine.high %v1814_v37, %v1818_v23  ;;  %v4046_v63 = vcombine.low %v1814_v37, %v1818_v23  ;;  %v4048_v2 = vcombine.low %v1815_v51, %v1819_v53  ;;  %v1859_v37 = vld [vmem:[#allocation11 + $0x378] sm:$0xff] }
 0xd94   :  { %2669 = vmatpush1.bf16.msra.mxu1 %v3998_v21  ;;  %2722 = vmatpush1.bf16.msra.mxu0 %v4000_v35  ;;  %v4049_v21 = vcombine.high %v1815_v51, %v1819_v53  ;;  %v1822_v35 = vld [vmem:[#allocation11 + $0x250] sm:$0xff] }
 0xd95   :  { %2670 = vmatprep.subr.bf16.mxu1 %v4007_v49  ;;  %2723 = vmatprep.subr.bf16.mxu0 %v4009_v54  ;;  %v1826_v49 = vld [vmem:[#allocation11 + $0x270] sm:$0xff]  ;;  %v1823_v54 = vld [vmem:[#allocation11 + $0x258] sm:$0xff] }
 0xd96   :  { %v4055_v6 = vcombine.high %v1822_v35, %v1826_v49  ;;  %v4054_v55 = vcombine.low %v1822_v35, %v1826_v49  ;;  %v4056_v59 = vcombine.low %v1823_v54, %v1827_v56  ;;  %v1867_v35 = vld [vmem:[#allocation11 + $0x3b8] sm:$0xff] }
 0xd98   :  { %2671 = vmatpush1.bf16.msra.mxu1 %v4006_v15  ;;  %2724 = vmatpush1.bf16.msra.mxu0 %v4008_v19  ;;  %v4057_v15 = vcombine.high %v1823_v54, %v1827_v56  ;;  %v1830_v19 = vld [vmem:[#allocation11 + $0x290] sm:$0xff] }
 0xd99   :  { %2672 = vmatprep.subr.bf16.mxu1 %v4015_v22  ;;  %2725 = vmatprep.subr.bf16.mxu0 %v4017_v3  ;;  %v1834_v22 = vld [vmem:[#allocation11 + $0x2b0] sm:$0xff]  ;;  %v1831_v3 = vld [vmem:[#allocation11 + $0x298] sm:$0xff] }
 0xd9a   :  { %v4063_v45 = vcombine.high %v1830_v19, %v1834_v22  ;;  %v4062_v28 = vcombine.low %v1830_v19, %v1834_v22  ;;  %v4064_v31 = vcombine.low %v1831_v3, %v1835_v12  ;;  %v1875_v19 = vld [vmem:[#allocation11 + $0x3f8] sm:$0xff] }
 0xd9c   :  { %2673 = vmatpush1.bf16.msra.mxu1 %v4014_v16  ;;  %2726 = vmatpush1.bf16.msra.mxu0 %v4016_v18  ;;  %v4065_v16 = vcombine.high %v1831_v3, %v1835_v12  ;;  %v1838_v18 = vld [vmem:[#allocation11 + $0x2d0] sm:$0xff] }
 0xd9d   :  { %2674 = vmatprep.subr.bf16.mxu1 %v4023_v20  ;;  %2727 = vmatprep.subr.bf16.mxu0 %v4025_v27  ;;  %v1842_v20 = vld [vmem:[#allocation11 + $0x2f0] sm:$0xff]  ;;  %v1839_v27 = vld [vmem:[#allocation11 + $0x2d8] sm:$0xff] }
 0xd9e   :  { %v4071_v32 = vcombine.high %v1838_v18, %v1842_v20  ;;  %v4070_v13 = vcombine.low %v1838_v18, %v1842_v20  ;;  %v4072_v47 = vcombine.low %v1839_v27, %v1843_v34 }
 0xda0   :  { %2675 = vmatpush1.bf16.msra.mxu1 %v4022_v36  ;;  %2728 = vmatpush1.bf16.msra.mxu0 %v4024_v4  ;;  %v4073_v36 = vcombine.high %v1839_v27, %v1843_v34  ;;  %v1846_v4 = vld [vmem:[#allocation11 + $0x310] sm:$0xff] }
 0xda1   :  { %2676 = vmatprep.subr.bf16.mxu1 %v4031_v44  ;;  %2729 = vmatprep.subr.bf16.mxu0 %v4033_v46  ;;  %v1850_v44 = vld [vmem:[#allocation11 + $0x330] sm:$0xff]  ;;  %v1847_v46 = vld [vmem:[#allocation11 + $0x318] sm:$0xff] }
 0xda2   :  { %v4079_v50 = vcombine.high %v1846_v4, %v1850_v44  ;;  %v4078_v23 = vcombine.low %v1846_v4, %v1850_v44  ;;  %v4080_v51 = vcombine.low %v1847_v46, %v1851_v10 }
 0xda4   :  { %2677 = vmatpush1.bf16.msra.mxu1 %v4030_v14  ;;  %2730 = vmatpush1.bf16.msra.mxu0 %v4032_v41  ;;  %v4081_v14 = vcombine.high %v1847_v46, %v1851_v10  ;;  %v1854_v41 = vld [vmem:[#allocation11 + $0x350] sm:$0xff] }
 0xda5   :  { %2678 = vmatprep.subr.bf16.mxu1 %v4039_v17  ;;  %2731 = vmatprep.subr.bf16.mxu0 %v4041_v52  ;;  %v1858_v17 = vld [vmem:[#allocation11 + $0x370] sm:$0xff]  ;;  %v1855_v52 = vld [vmem:[#allocation11 + $0x358] sm:$0xff] }
 0xda6   :  { %v4087_v53 = vcombine.high %v1854_v41, %v1858_v17  ;;  %v4086_v49 = vcombine.low %v1854_v41, %v1858_v17  ;;  %v4088_v54 = vcombine.low %v1855_v52, %v1859_v37  ;;  %v4553_v41 = vld [vmem:[#allocation12 + $0x44] ss:$8 sps:$4 sm:$0xff]   ;;  %v4551_v17 = vld [vmem:[#allocation12 + $0x40] ss:$8 sps:$4 sm:$0xff]  }
 0xda8   :  { %2679 = vmatpush1.bf16.msra.mxu1 %v4038_v48  ;;  %2732 = vmatpush1.bf16.msra.mxu0 %v4040_v57  ;;  %v4089_v48 = vcombine.high %v1855_v52, %v1859_v37  ;;  %v1862_v57 = vld [vmem:[#allocation11 + $0x390] sm:$0xff]  ;;  %v4559_v37 = vld [vmem:[#allocation12 + $0x64] ss:$8 sps:$4 sm:$0xff]  }
 0xda9   :  { %2680 = vmatprep.subr.bf16.mxu1 %v4047_v61  ;;  %2733 = vmatprep.subr.bf16.mxu0 %v4049_v21  ;;  %v1866_v61 = vld [vmem:[#allocation11 + $0x3b0] sm:$0xff]  ;;  %v1863_v21 = vld [vmem:[#allocation11 + $0x398] sm:$0xff] }
 0xdaa   :  { %v4095_v56 = vcombine.high %v1862_v57, %v1866_v61  ;;  %v4094_v22 = vcombine.low %v1862_v57, %v1866_v61  ;;  %v4096_v3 = vcombine.low %v1863_v21, %v1867_v35  ;;  %v4554_v52 = vld [vmem:[#allocation12 + $0x50] ss:$8 sps:$4 sm:$0xff]   ;;  %v4563_v57 = vld [vmem:[#allocation12 + $0x80] ss:$8 sps:$4 sm:$0xff]   ;;  %v4568_v61 = vld [vmem:[#allocation12 + $0x94] ss:$8 sps:$4 sm:$0xff]  }
 0xdac   :  { %2681 = vmatpush1.bf16.msra.mxu1 %v4046_v63  ;;  %2734 = vmatpush1.bf16.msra.mxu0 %v4048_v2  ;;  %v4097_v63 = vcombine.high %v1863_v21, %v1867_v35  ;;  %v1870_v2 = vld [vmem:[#allocation11 + $0x3d0] sm:$0xff]  ;;  %v4571_v35 = vld [vmem:[#allocation12 + $0xa4] ss:$8 sps:$4 sm:$0xff]  }
 0xdad   :  { %2682 = vmatprep.subr.bf16.mxu1 %v4055_v6  ;;  %2735 = vmatprep.subr.bf16.mxu0 %v4057_v15  ;;  %v1874_v6 = vld [vmem:[#allocation11 + $0x3f0] sm:$0xff]  ;;  %v1871_v15 = vld [vmem:[#allocation11 + $0x3d8] sm:$0xff] }
 0xdae   :  { %v4103_v12 = vcombine.high %v1870_v2, %v1874_v6  ;;  %v4566_v21 = vld [vmem:[#allocation12 + $0x90] ss:$8 sps:$4 sm:$0xff]  }
 0xdb0   :  { %2683 = vmatpush1.bf16.msra.mxu1 %v4054_v55  ;;  %2736 = vmatpush1.bf16.msra.mxu0 %v4056_v59  ;;  %v4105_v55 = vcombine.high %v1871_v15, %v1875_v19  ;;  %v4102_v59 = vcombine.low %v1870_v2, %v1874_v6  ;;  %v4575_v2 = vld [vmem:[#allocation12 + $0xc0] ss:$8 sps:$4 sm:$0xff]   ;;  %v4580_v6 = vld [vmem:[#allocation12 + $0xd4] ss:$8 sps:$4 sm:$0xff]  }
 0xdb1   :  { %2684 = vmatprep.subr.bf16.mxu1 %v4063_v45  ;;  %2737 = vmatprep.subr.bf16.mxu0 %v4065_v16  ;;  %v4104_v45 = vcombine.low %v1871_v15, %v1875_v19  ;;  %v4541_v16 = vld [vmem:[#allocation12 + $0x4] ss:$8 sps:$4 sm:$0xff]   ;;  %v4578_v15 = vld [vmem:[#allocation12 + $0xd0] ss:$8 sps:$4 sm:$0xff]  }
 0xdb2   :  { %v5424_v19 = vld [vmem:[%s5534_s6] sm:$0xff] }
 0xdb4   :  { %2685 = vmatpush1.bf16.msra.mxu1 %v4062_v28  ;;  %2738 = vmatpush1.bf16.msra.mxu0 %v4064_v31 }
 0xdb5   :  { %2686 = vmatprep.subr.bf16.mxu1 %v4071_v32  ;;  %2739 = vmatprep.subr.bf16.mxu0 %v4073_v36 }
 0xdb8   :  { %2687 = vmatpush1.bf16.msra.mxu1 %v4070_v13  ;;  %2740 = vmatpush1.bf16.msra.mxu0 %v4072_v47 }
 0xdb9   :  { %2688 = vmatprep.subr.bf16.mxu1 %v4079_v50  ;;  %2741 = vmatprep.subr.bf16.mxu0 %v4081_v14  ;;  %v4539_v50 = vld [vmem:[#allocation12] ss:$8 sps:$4 sm:$0xff]   ;;  %v4544_v14 = vld [vmem:[#allocation12 + $0x14] ss:$8 sps:$4 sm:$0xff]  }
 0xdbc   :  { %2689 = vmatpush1.bf16.msra.mxu1 %v4078_v23  ;;  %2742 = vmatpush1.bf16.msra.mxu0 %v4080_v51  ;;  %v4557_v23 = vld [vmem:[#allocation12 + $0x60] ss:$8 sps:$4 sm:$0xff]   ;;  %v4562_v51 = vld [vmem:[#allocation12 + $0x74] ss:$8 sps:$4 sm:$0xff]  }
 0xdbd   :  { %2690 = vmatprep.subr.bf16.mxu1 %v4087_v53  ;;  %2743 = vmatprep.subr.bf16.mxu0 %v4089_v48  ;;  %v4560_v53 = vld [vmem:[#allocation12 + $0x70] ss:$8 sps:$4 sm:$0xff]   ;;  %v4565_v48 = vld [vmem:[#allocation12 + $0x84] ss:$8 sps:$4 sm:$0xff]  }
 0xdc0   :  { %2691 = vmatpush1.bf16.msra.mxu1 %v4086_v49  ;;  %2744 = vmatpush1.bf16.msra.mxu0 %v4088_v54  ;;  %v4569_v49 = vld [vmem:[#allocation12 + $0xa0] ss:$8 sps:$4 sm:$0xff]   ;;  %v4574_v54 = vld [vmem:[#allocation12 + $0xb4] ss:$8 sps:$4 sm:$0xff]  }
 0xdc1   :  { %2692 = vmatprep.subr.bf16.mxu1 %v4095_v56  ;;  %2745 = vmatprep.subr.bf16.mxu0 %v4097_v63  ;;  %v4572_v56 = vld [vmem:[#allocation12 + $0xb0] ss:$8 sps:$4 sm:$0xff]   ;;  %v4577_v63 = vld [vmem:[#allocation12 + $0xc4] ss:$8 sps:$4 sm:$0xff]  }
 0xdc4   :  { %2693 = vmatpush1.bf16.msra.mxu1 %v4094_v22  ;;  %2746 = vmatpush1.bf16.msra.mxu0 %v4096_v3  ;;  %v4583_v22 = vld [vmem:[#allocation12 + $0xe4] ss:$8 sps:$4 sm:$0xff]   ;;  %v5428_v3 = vrot.slane %v5424_v19, %v5174_v30 }
 0xdc5   :  { %2694 = vmatprep.subr.bf16.mxu1 %v4103_v12  ;;  %2747 = vmatprep.subr.bf16.mxu0 %v4105_v55  ;;  %v5433_v12 = vrot.slane %v5424_v19, %v299_v0  ;;  %v4581_v55 = vld [vmem:[#allocation12 + $0xe0] ss:$8 sps:$4 sm:$0xff]  }
 0xdc8   :  { %2695 = vmatpush1.bf16.msra.mxu1 %v4102_v59  ;;  %2748 = vmatpush1.bf16.msra.mxu0 %v4104_v45  ;;  %v5437_v59 = vrot.slane %v5424_v19, %v5180_v40  ;;  %v5442_v45 = vrot.slane %v5424_v19, %v303_v1  ;;  %v4589_v1 = vld [vmem:[#allocation12 + $0x104] ss:$8 sps:$4 sm:$0xff]  }
 0xdc9   :  { %3598 = vmatprep.subr.bf16.mxu1 %v4541_v16  ;;  %v4586_v16 = vld [vmem:[#allocation12 + $0xf4] ss:$8 sps:$4 sm:$0xff]  }
 0xe07   :  { %v1720_v18 = vpop.xlane.xlu0 %1719 }
 0xe08   :  { %v1726_v20 = vmul.f32 0.00390625, %v1720_v18  ;;  %v1723_v27 = vpop.xlane.xlu1 %1722 }
 0xe09   :  { %v1727_v34 = vmul.f32 0.00390625, %v1723_v27 }
 0xe0a   :  { %v1730_v28 = vadd.f32 1e-05, %v1726_v20 }
 0xe0b   :  { %v1731_v31 = vadd.f32 1e-05, %v1727_v34 }
 0xe0c   :  { %4775 = vrsqrt.f32 %v1730_v28 }
 0xe0d   :  { %4777 = vrsqrt.f32 %v1731_v31  ;;  %v4584_v31 = vld [vmem:[#allocation12 + $0xf0] ss:$8 sps:$4 sm:$0xff]  }
 0xe16   :  { %v4776_v32 = vpop.eup %4775 }
 0xe17   :  { %v4778_v36 = vpop.eup %4777  ;;  %v1741_v4 = vmul.f32 %v4776_v32, %v5385_v58  ;;  %v1740_v46 = vmul.f32 %v4776_v32, %v5382_v38  ;;  %v4542_v38 = vld [vmem:[#allocation12 + $0x10] ss:$8 sps:$4 sm:$0xff]   ;;  %v4547_v58 = vld [vmem:[#allocation12 + $0x24] ss:$8 sps:$4 sm:$0xff]  }
 0xe18   :  { %v1743_v44 = vmul.f32 %v4778_v36, %v5391_v8  ;;  %v1742_v10 = vmul.f32 %v4778_v36, %v5388_v7  ;;  %v4545_v7 = vld [vmem:[#allocation12 + $0x20] ss:$8 sps:$4 sm:$0xff]   ;;  %v4550_v8 = vld [vmem:[#allocation12 + $0x34] ss:$8 sps:$4 sm:$0xff]  }
 0xe1a   :  { %v1747_v13 = vpack.c.bf16 %v1743_v44, %v1741_v4  ;;  %v1746_v47 = vpack.c.bf16 %v1742_v10, %v1740_v46 }
 0xe1c   :  { %2600 = vmatprep.mubr.bf16.mxu1 %v1747_v13  ;;  %2653 = vmatprep.mubr.bf16.mxu0 %v1747_v13 }
 0xe1d   :  { %2601 = vmatmul.mubr.bf16.gmra.mrb[24].mxu1 %v1746_v47  ;;  %2654 = vmatmul.mubr.bf16.gmra.mrb[48].mxu0 %v1746_v47 }
 0xe1e   :  { %2696 = vmatprep.mubr.bf16.mxu1 %v5405_v5  ;;  %2749 = vmatprep.mubr.bf16.mxu0 %v5405_v5  ;;  %v4548_v5 = vld [vmem:[#allocation12 + $0x30] ss:$8 sps:$4 sm:$0xff]  }
 0xe25   :  { %2697 = vmatmul.mubr.bf16.vlgmr.msra.gmra.mrb[28].mxu1 %v5407_v11  ;;  %2750 = vmatmul.mubr.bf16.vlgmr.msra.gmra.mrb[52].mxu0 %v5407_v11  ;;  %v4556_v11 = vld [vmem:[#allocation12 + $0x54] ss:$8 sps:$4 sm:$0xff]  }
 0xe26   :  { %2706 = vmatprep.mubr.bf16.mxu1 %v1747_v13  ;;  %2759 = vmatprep.mubr.bf16.mxu0 %v1747_v13 }
 0xe27   :  { %3599 = vmatpush1.bf16.msra.mxu1 %v4539_v50 }
 0xe28   :  { %3600 = vmatprep.subr.bf16.mxu1 %v4544_v14 }
 0xe2b   :  { %3601 = vmatpush1.bf16.msra.mxu1 %v4542_v38 }
 0xe2c   :  { %3602 = vmatprep.subr.bf16.mxu1 %v4547_v58 }
 0xe2d   :  { %2707 = vmatmul.mubr.bf16.gmra.mrb[32].mxu1 %v1746_v47  ;;  %2760 = vmatmul.mubr.bf16.gmra.mrb[56].mxu0 %v1746_v47 }
 0xe2f   :  { %3603 = vmatpush1.bf16.msra.mxu1 %v4545_v7 }
 0xe30   :  { %3604 = vmatprep.subr.bf16.mxu1 %v4550_v8 }
 0xe33   :  { %3605 = vmatpush1.bf16.msra.mxu1 %v4548_v5 }
 0xe34   :  { %3606 = vmatprep.subr.bf16.mxu1 %v4553_v41 }
 0xe37   :  { %3607 = vmatpush1.bf16.msra.mxu1 %v4551_v17 }
 0xe38   :  { %3608 = vmatprep.subr.bf16.mxu1 %v4556_v11 }
 0xe3b   :  { %3609 = vmatpush1.bf16.msra.mxu1 %v4554_v52 }
 0xe3c   :  { %3610 = vmatprep.subr.bf16.mxu1 %v4559_v37 }
 0xe3f   :  { %3611 = vmatpush1.bf16.msra.mxu1 %v4557_v23 }
 0xe40   :  { %3612 = vmatprep.subr.bf16.mxu1 %v4562_v51 }
 0xe43   :  { %3613 = vmatpush1.bf16.msra.mxu1 %v4560_v53  ;;  %v4587_v53 = vld [vmem:[#allocation12 + $0x100] ss:$8 sps:$4 sm:$0xff]  }
 0xe44   :  { %3614 = vmatprep.subr.bf16.mxu1 %v4565_v48  ;;  %v4592_v48 = vld [vmem:[#allocation12 + $0x114] ss:$8 sps:$4 sm:$0xff]  }
 0xe47   :  { %3615 = vmatpush1.bf16.msra.mxu1 %v4563_v57  ;;  %v4590_v57 = vld [vmem:[#allocation12 + $0x110] ss:$8 sps:$4 sm:$0xff]  }
 0xe48   :  { %3616 = vmatprep.subr.bf16.mxu1 %v4568_v61  ;;  %v4595_v61 = vld [vmem:[#allocation12 + $0x124] ss:$8 sps:$4 sm:$0xff]  }
 0xe4b   :  { %3617 = vmatpush1.bf16.msra.mxu1 %v4566_v21  ;;  %v4593_v21 = vld [vmem:[#allocation12 + $0x120] ss:$8 sps:$4 sm:$0xff]  }
 0xe4c   :  { %3618 = vmatprep.subr.bf16.mxu1 %v4571_v35  ;;  %v4598_v35 = vld [vmem:[#allocation12 + $0x134] ss:$8 sps:$4 sm:$0xff]  }
 0xe4f   :  { %3619 = vmatpush1.bf16.msra.mxu1 %v4569_v49  ;;  %v4596_v49 = vld [vmem:[#allocation12 + $0x130] ss:$8 sps:$4 sm:$0xff]  }
 0xe50   :  { %3620 = vmatprep.subr.bf16.mxu1 %v4574_v54  ;;  %v4601_v54 = vld [vmem:[#allocation12 + $0x144] ss:$8 sps:$4 sm:$0xff]  }
 0xe53   :  { %3621 = vmatpush1.bf16.msra.mxu1 %v4572_v56  ;;  %v4599_v56 = vld [vmem:[#allocation12 + $0x140] ss:$8 sps:$4 sm:$0xff]  }
 0xe54   :  { %3622 = vmatprep.subr.bf16.mxu1 %v4577_v63  ;;  %v4604_v63 = vld [vmem:[#allocation12 + $0x154] ss:$8 sps:$4 sm:$0xff]  }
 0xe57   :  { %3623 = vmatpush1.bf16.msra.mxu1 %v4575_v2  ;;  %v4602_v2 = vld [vmem:[#allocation12 + $0x150] ss:$8 sps:$4 sm:$0xff]  }
 0xe58   :  { %3624 = vmatprep.subr.bf16.mxu1 %v4580_v6  ;;  %v4607_v6 = vld [vmem:[#allocation12 + $0x164] ss:$8 sps:$4 sm:$0xff]  }
 0xe5b   :  { %3625 = vmatpush1.bf16.msra.mxu1 %v4578_v15  ;;  %v4605_v15 = vld [vmem:[#allocation12 + $0x160] ss:$8 sps:$4 sm:$0xff]  }
 0xe5c   :  { %3626 = vmatprep.subr.bf16.mxu1 %v4583_v22  ;;  %v4610_v22 = vld [vmem:[#allocation12 + $0x174] ss:$8 sps:$4 sm:$0xff]  }
 0xe5e   :  { %v2592_v18 = vpop.f32.mrb[20].mxu1  ;;  %v2645_v20 = vpop.f32.mrb[44].mxu0 }
 0xe5f   :  { %v2593_v27 = vadd.f32 %v2592_v18, %v5428_v3  ;;  %v2646_v0 = vadd.f32 %v2645_v20, %v5433_v12  ;;  %v2594_v34 = vpop.f32.mrb[21].mxu1  ;;  %v2647_v28 = vpop.f32.mrb[45].mxu0  ;;  %3627 = vmatpush1.bf16.msra.mxu1 %v4581_v55  ;;  %v4608_v55 = vld [vmem:[#allocation12 + $0x170] ss:$8 sps:$4 sm:$0xff]   ;;  %v4611_v18 = vld [vmem:[#allocation12 + $0x180] ss:$8 sps:$4 sm:$0xff]  }
 0xe60   :  { %v2595_v32 = vadd.f32 %v2594_v34, %v5437_v59  ;;  %v2648_v36 = vadd.f32 %v2647_v28, %v5442_v45  ;;  %v2596_v4 = vpop.f32.mrb[22].mxu1  ;;  %v2649_v44 = vpop.f32.mrb[46].mxu0  ;;  %3628 = vmatprep.subr.bf16.mxu1 %v4586_v16  ;;  %v4613_v16 = vld [vmem:[#allocation12 + $0x184] ss:$8 sps:$4 sm:$0xff]   ;;  %v4616_v20 = vld [vmem:[#allocation12 + $0x194] ss:$8 sps:$4 sm:$0xff]  }
 0xe61   :  { %v2597_v46 = vadd.f32 %v2596_v4, %v5428_v3  ;;  %v2650_v10 = vadd.f32 %v2649_v44, %v5433_v12  ;;  %v2598_v13 = vpop.f32.mrb[23].mxu1  ;;  %v2651_v47 = vpop.f32.mrb[47].mxu0  ;;  %v2770_v38 = vmax.f32 %v2593_v27, 0.0  ;;  %v2772_v58 = vmax.f32 %v2646_v0, 0.0  ;;  %v4614_v27 = vld [vmem:[#allocation12 + $0x190] ss:$8 sps:$4 sm:$0xff]  }
 0xe62   :  { %v2599_v50 = vadd.f32 %v2598_v13, %v5437_v59  ;;  %v2652_v14 = vadd.f32 %v2651_v47, %v5442_v45  ;;  %v2771_v5 = vmax.f32 %v2595_v32, 0.0  ;;  %v2773_v41 = vmax.f32 %v2648_v36, 0.0  ;;  %v4619_v0 = vld [vmem:[#allocation12 + $0x1a4] ss:$8 sps:$4 sm:$0xff]   ;;  %v4617_v34 = vld [vmem:[#allocation12 + $0x1a0] ss:$8 sps:$4 sm:$0xff]  }
 0xe63   :  { %v2778_v7 = vmax.f32 %v2597_v46, 0.0  ;;  %v2780_v8 = vmax.f32 %v2650_v10, 0.0  ;;  %3629 = vmatpush1.bf16.msra.mxu1 %v4584_v31  ;;  %v4622_v28 = vld [vmem:[#allocation12 + $0x1b4] ss:$8 sps:$4 sm:$0xff]   ;;  %v4620_v31 = vld [vmem:[#allocation12 + $0x1b0] ss:$8 sps:$4 sm:$0xff]  }
 0xe64   :  { %v2779_v17 = vmax.f32 %v2599_v50, 0.0  ;;  %v2781_v11 = vmax.f32 %v2652_v14, 0.0  ;;  %3651 = vmatprep.subr.bf16.mxu1 %v4589_v1  ;;  %v4625_v32 = vld [vmem:[#allocation12 + $0x1c4] ss:$8 sps:$4 sm:$0xff]   ;;  %v4623_v36 = vld [vmem:[#allocation12 + $0x1c0] ss:$8 sps:$4 sm:$0xff]  }
 0xe65   :  { %v2802_v52 = vpack.c.bf16 %v2778_v7, %v2770_v38  ;;  %v5452_v37 = vpack.c.bf16 %v2780_v8, %v2772_v58  ;;  %v4628_v4 = vld [vmem:[#allocation12 + $0x1d4] ss:$8 sps:$4 sm:$0xff]   ;;  %v4626_v44 = vld [vmem:[#allocation12 + $0x1d0] ss:$8 sps:$4 sm:$0xff]   ;;  %v4631_v1 = vld [vmem:[#allocation12 + $0x1e4] ss:$8 sps:$4 sm:$0xff]  }
 0xe66   :  { %v2803_v23 = vpack.c.bf16 %v2779_v17, %v2771_v5  ;;  %v5454_v51 = vpack.c.bf16 %v2781_v11, %v2773_v41  ;;  %v4629_v46 = vld [vmem:[#allocation12 + $0x1e0] ss:$8 sps:$4 sm:$0xff]   ;;  %v4634_v10 = vld [vmem:[#allocation12 + $0x1f4] ss:$8 sps:$4 sm:$0xff]   ;;  %v4632_v13 = vld [vmem:[#allocation12 + $0x1f0] ss:$8 sps:$4 sm:$0xff]  }
 0xe67   :  { %v4637_v47 = vld [vmem:[#allocation12 + $0x204] ss:$8 sps:$4 sm:$0xff]   ;;  %v1904_v50 = vsub.s32 6, %v5171_v42  ;;  %v1908_v58 = vsub.s32 7, %v5171_v42 }
 0xe68   :  { %3630 = vmatprep.mubr.bf16.mxu1 %v2803_v23 }
 0xe69   :  { %3631 = vmatmul.mubr.bf16.vlgmr.msra.gmra.mrb[36].mxu1 %v2802_v52 }
 0xe6a   :  { %3652 = vmatpush1.bf16.msra.mxu1 %v4587_v53 }
 0xe6b   :  { %3653 = vmatprep.subr.bf16.mxu1 %v4592_v48 }
 0xe6e   :  { %3654 = vmatpush1.bf16.msra.mxu1 %v4590_v57 }
 0xe6f   :  { %3655 = vmatprep.subr.bf16.mxu1 %v4595_v61 }
 0xe72   :  { %3656 = vmatpush1.bf16.msra.mxu1 %v4593_v21  ;;  %v1897_v21 = vrot.slane %v5424_v19, %v307_v24 }
 0xe73   :  { %3657 = vmatprep.subr.bf16.mxu1 %v4598_v35  ;;  %v1905_v35 = vrot.slane %v5424_v19, %v1904_v50 }
 0xe76   :  { %3658 = vmatpush1.bf16.msra.mxu1 %v4596_v49 }
 0xe77   :  { %3659 = vmatprep.subr.bf16.mxu1 %v4601_v54 }
 0xe7a   :  { %3660 = vmatpush1.bf16.msra.mxu1 %v4599_v56  ;;  %v1901_v56 = vrot.slane %v5424_v19, %v311_v25 }
 0xe7b   :  { %3661 = vmatprep.subr.bf16.mxu1 %v4604_v63 }
 0xe7e   :  { %3662 = vmatpush1.bf16.msra.mxu1 %v4602_v2 }
 0xe7f   :  { %3663 = vmatprep.subr.bf16.mxu1 %v4607_v6 }
 0xe82   :  { %3664 = vmatpush1.bf16.msra.mxu1 %v4605_v15 }
 0xe83   :  { %3665 = vmatprep.subr.bf16.mxu1 %v4610_v22 }
 0xe86   :  { %3666 = vmatpush1.bf16.msra.mxu1 %v4608_v55 }
 0xe87   :  { %3667 = vmatprep.subr.bf16.mxu1 %v4613_v16 }
 0xe8a   :  { %3668 = vmatpush1.bf16.msra.mxu1 %v4611_v18 }
 0xe8b   :  { %3669 = vmatprep.subr.bf16.mxu1 %v4616_v20 }
 0xe8e   :  { %3670 = vmatpush1.bf16.msra.mxu1 %v4614_v27 }
 0xe8f   :  { %3671 = vmatprep.subr.bf16.mxu1 %v4619_v0 }
 0xe92   :  { %3672 = vmatpush1.bf16.msra.mxu1 %v4617_v34 }
 0xe93   :  { %3673 = vmatprep.subr.bf16.mxu1 %v4622_v28 }
 0xe96   :  { %3674 = vmatpush1.bf16.msra.mxu1 %v4620_v31 }
 0xe97   :  { %3675 = vmatprep.subr.bf16.mxu1 %v4625_v32 }
 0xe9a   :  { %3676 = vmatpush1.bf16.msra.mxu1 %v4623_v36 }
 0xe9b   :  { %3677 = vmatprep.subr.bf16.mxu1 %v4628_v4 }
 0xe9e   :  { %3678 = vmatpush1.bf16.msra.mxu1 %v4626_v44 }
 0xe9f   :  { %3679 = vmatprep.subr.bf16.mxu1 %v4631_v1 }
 0xea2   :  { %3680 = vmatpush1.bf16.msra.mxu1 %v4629_v46 }
 0xea3   :  { %3681 = vmatprep.subr.bf16.mxu1 %v4634_v10 }
 0xea6   :  { %3682 = vmatpush1.bf16.msra.mxu1 %v4632_v13 }
 0xea7   :  { %3704 = vmatprep.subr.bf16.mxu1 %v4637_v47 }
 0xef0   :  { %v2602_v14 = vpop.f32.mrb[24].mxu1  ;;  %v2655_v38 = vpop.f32.mrb[48].mxu0 }
 0xef1   :  { %v2603_v7 = vadd.f32 %v2602_v14, %v5428_v3  ;;  %v2656_v8 = vadd.f32 %v2655_v38, %v5433_v12  ;;  %v2604_v5 = vpop.f32.mrb[25].mxu1  ;;  %v2657_v41 = vpop.f32.mrb[49].mxu0 }
 0xef2   :  { %v2605_v17 = vadd.f32 %v2604_v5, %v5437_v59  ;;  %v2658_v11 = vadd.f32 %v2657_v41, %v5442_v45  ;;  %v2606_v52 = vpop.f32.mrb[26].mxu1  ;;  %v2659_v23 = vpop.f32.mrb[50].mxu0 }
 0xef3   :  { %v2607_v53 = vadd.f32 %v2606_v52, %v5428_v3  ;;  %v2660_v48 = vadd.f32 %v2659_v23, %v5433_v12  ;;  %v2608_v57 = vpop.f32.mrb[27].mxu1  ;;  %v2661_v61 = vpop.f32.mrb[51].mxu0  ;;  %v1909_v3 = vrot.slane %v5424_v19, %v1908_v58  ;;  %v2786_v63 = vmax.f32 %v2603_v7, 0.0 }
 0xef4   :  { %v2609_v49 = vadd.f32 %v2608_v57, %v5437_v59  ;;  %v2662_v54 = vadd.f32 %v2661_v61, %v5442_v45  ;;  %v2788_v12 = vmax.f32 %v2656_v8, 0.0  ;;  %v2787_v15 = vmax.f32 %v2605_v17, 0.0 }
 0xef5   :  { %v2794_v2 = vmax.f32 %v2607_v53, 0.0  ;;  %v2796_v6 = vmax.f32 %v2660_v48, 0.0  ;;  %v2789_v22 = vmax.f32 %v2658_v11, 0.0  ;;  %v4635_v53 = vld [vmem:[#allocation12 + $0x200] ss:$8 sps:$4 sm:$0xff]  }
 0xef6   :  { %v2795_v55 = vmax.f32 %v2609_v49, 0.0  ;;  %v2797_v24 = vmax.f32 %v2662_v54, 0.0  ;;  %v4640_v49 = vld [vmem:[#allocation12 + $0x214] ss:$8 sps:$4 sm:$0xff]  }
 0xef7   :  { %v2810_v16 = vpack.c.bf16 %v2794_v2, %v2786_v63  ;;  %v5474_v18 = vpack.c.bf16 %v2796_v6, %v2788_v12 }
 0xef8   :  { %v2811_v59 = vpack.c.bf16 %v2795_v55, %v2787_v15  ;;  %v2813_v20 = vpack.c.bf16 %v2797_v24, %v2789_v22  ;;  %v2698_v45 = vpop.f32.mrb[28].mxu1  ;;  %v2751_v27 = vpop.f32.mrb[52].mxu0 }
 0xef9   :  { %v2699_v42 = vadd.f32 %v2698_v45, %v1897_v21  ;;  %v2752_v0 = vadd.f32 %v2751_v27, %v1905_v35  ;;  %v2700_v25 = vpop.f32.mrb[29].mxu1  ;;  %v2753_v34 = vpop.f32.mrb[53].mxu0 }
 0xefa   :  { %v2701_v19 = vadd.f32 %v2700_v25, %v1901_v56  ;;  %v2754_v28 = vadd.f32 %v2753_v34, %v1909_v3  ;;  %v2702_v31 = vpop.f32.mrb[30].mxu1  ;;  %v2755_v32 = vpop.f32.mrb[54].mxu0  ;;  %3640 = vmatprep.mubr.bf16.mxu1 %v2811_v59  ;;  %v4638_v59 = vld [vmem:[#allocation12 + $0x210] ss:$8 sps:$4 sm:$0xff]   ;;  %v4643_v25 = vld [vmem:[#allocation12 + $0x224] ss:$8 sps:$4 sm:$0xff]  }
 0xefb   :  { %v2703_v36 = vadd.f32 %v2702_v31, %v1897_v21  ;;  %v2756_v4 = vadd.f32 %v2755_v32, %v1905_v35  ;;  %v2704_v44 = vpop.f32.mrb[31].mxu1  ;;  %v2757_v1 = vpop.f32.mrb[55].mxu0  ;;  %3641 = vmatmul.mubr.bf16.gmra.mrb[40].mxu1 %v2810_v16  ;;  %v2774_v13 = vmax.f32 %v2699_v42, 0.0  ;;  %v2776_v47 = vmax.f32 %v2752_v0, 0.0  ;;  %v4644_v32 = vld [vmem:[#allocation12 + $0x230] ss:$8 sps:$4 sm:$0xff]  }
 0xefc   :  { %v2705_v46 = vadd.f32 %v2704_v44, %v1901_v56  ;;  %v2758_v10 = vadd.f32 %v2757_v1, %v1909_v3  ;;  %3683 = vmatprep.mubr.bf16.mxu1 %v5454_v51  ;;  %v2775_v38 = vmax.f32 %v2701_v19, 0.0  ;;  %v2777_v58 = vmax.f32 %v2754_v28, 0.0  ;;  %v4652_v44 = vld [vmem:[#allocation12 + $0x254] ss:$8 sps:$4 sm:$0xff]   ;;  %v4650_v1 = vld [vmem:[#allocation12 + $0x250] ss:$8 sps:$4 sm:$0xff]  }
 0xefd   :  { %v2782_v50 = vmax.f32 %v2703_v36, 0.0  ;;  %v2784_v14 = vmax.f32 %v2756_v4, 0.0  ;;  %v4649_v36 = vld [vmem:[#allocation12 + $0x244] ss:$8 sps:$4 sm:$0xff]   ;;  %v4647_v4 = vld [vmem:[#allocation12 + $0x240] ss:$8 sps:$4 sm:$0xff]  }
 0xefe   :  { %v2783_v7 = vmax.f32 %v2705_v46, 0.0  ;;  %v2785_v8 = vmax.f32 %v2758_v10, 0.0  ;;  %v4655_v46 = vld [vmem:[#allocation12 + $0x264] ss:$8 sps:$4 sm:$0xff]   ;;  %v4653_v10 = vld [vmem:[#allocation12 + $0x260] ss:$8 sps:$4 sm:$0xff]  }
 0xeff   :  { %v5477_v5 = vpack.c.bf16 %v2782_v50, %v2774_v13  ;;  %v5479_v41 = vpack.c.bf16 %v2784_v14, %v2776_v47  ;;  %v4658_v13 = vld [vmem:[#allocation12 + $0x274] ss:$8 sps:$4 sm:$0xff]   ;;  %v4656_v47 = vld [vmem:[#allocation12 + $0x270] ss:$8 sps:$4 sm:$0xff]   ;;  %v4659_v50 = vld [vmem:[#allocation12 + $0x280] ss:$8 sps:$4 sm:$0xff]  }
 0xf00   :  { %v2807_v17 = vpack.c.bf16 %v2783_v7, %v2775_v38  ;;  %v5481_v11 = vpack.c.bf16 %v2785_v8, %v2777_v58  ;;  %v2708_v52 = vpop.f32.mrb[32].mxu1  ;;  %v2761_v23 = vpop.f32.mrb[56].mxu0  ;;  %v4664_v14 = vld [vmem:[#allocation12 + $0x294] ss:$8 sps:$4 sm:$0xff]   ;;  %v4662_v38 = vld [vmem:[#allocation12 + $0x290] ss:$8 sps:$4 sm:$0xff]  }
 0xf01   :  { %v2709_v48 = vadd.f32 %v2708_v52, %v1897_v21  ;;  %v2762_v51 = vadd.f32 %v2761_v23, %v1905_v35  ;;  %v2710_v57 = vpop.f32.mrb[33].mxu1  ;;  %v2763_v61 = vpop.f32.mrb[57].mxu0  ;;  %v4667_v58 = vld [vmem:[#allocation12 + $0x2a4] ss:$8 sps:$4 sm:$0xff]   ;;  %v4665_v7 = vld [vmem:[#allocation12 + $0x2a0] ss:$8 sps:$4 sm:$0xff]  }
 0xf02   :  { %v2711_v54 = vadd.f32 %v2710_v57, %v1901_v56  ;;  %v2764_v63 = vadd.f32 %v2763_v61, %v1909_v3  ;;  %v2712_v12 = vpop.f32.mrb[34].mxu1  ;;  %v2765_v2 = vpop.f32.mrb[58].mxu0  ;;  %v4670_v8 = vld [vmem:[#allocation12 + $0x2b4] ss:$8 sps:$4 sm:$0xff]   ;;  %v4673_v52 = vld [vmem:[#allocation12 + $0x2c4] ss:$8 sps:$4 sm:$0xff]  }
 0xf03   :  { %v2713_v6 = vadd.f32 %v2712_v12, %v1897_v21  ;;  %v2766_v15 = vadd.f32 %v2765_v2, %v1905_v35  ;;  %v2714_v22 = vpop.f32.mrb[35].mxu1  ;;  %v2767_v55 = vpop.f32.mrb[59].mxu0  ;;  %3684 = vmatmul.mubr.bf16.vlgmr.msra.gmra.mrb[36].mxu1 %v5452_v37  ;;  %v2790_v45 = vmax.f32 %v2709_v48, 0.0  ;;  %v2792_v27 = vmax.f32 %v2762_v51, 0.0  ;;  %v4671_v23 = vld [vmem:[#allocation12 + $0x2c0] ss:$8 sps:$4 sm:$0xff]  }
 0xf04   :  { %v2715_v24 = vadd.f32 %v2714_v22, %v1901_v56  ;;  %v2768_v16 = vadd.f32 %v2767_v55, %v1909_v3  ;;  %3705 = vmatpush1.bf16.msra.mxu1 %v4635_v53  ;;  %3693 = vmatprep.mubr.bf16.mxu1 %v2813_v20  ;;  %v2791_v34 = vmax.f32 %v2711_v54, 0.0  ;;  %v2793_v19 = vmax.f32 %v2764_v63, 0.0  ;;  %v4641_v3 = vld [vmem:[#allocation12 + $0x220] ss:$8 sps:$4 sm:$0xff]   ;;  %v4646_v20 = vld [vmem:[#allocation12 + $0x234] ss:$8 sps:$4 sm:$0xff]  }
 0xf05   :  { %v2798_v42 = vmax.f32 %v2713_v6, 0.0  ;;  %v2800_v0 = vmax.f32 %v2766_v15, 0.0  ;;  %3706 = vmatprep.subr.bf16.mxu1 %v4640_v49  ;;  %v4676_v53 = vld [vmem:[#allocation12 + $0x2d4] ss:$8 sps:$4 sm:$0xff]   ;;  %v4674_v48 = vld [vmem:[#allocation12 + $0x2d0] ss:$8 sps:$4 sm:$0xff]  }
 0xf06   :  { %v2799_v28 = vmax.f32 %v2715_v24, 0.0  ;;  %v2801_v21 = vmax.f32 %v2768_v16, 0.0  ;;  %v4679_v51 = vld [vmem:[#allocation12 + $0x2e4] ss:$8 sps:$4 sm:$0xff]   ;;  %v4677_v57 = vld [vmem:[#allocation12 + $0x2e0] ss:$8 sps:$4 sm:$0xff]  }
 0xf07   :  { %v5484_v35 = vpack.c.bf16 %v2798_v42, %v2790_v45  ;;  %v5486_v31 = vpack.c.bf16 %v2800_v0, %v2792_v27  ;;  %v4682_v61 = vld [vmem:[#allocation12 + $0x2f4] ss:$8 sps:$4 sm:$0xff]   ;;  %v4680_v49 = vld [vmem:[#allocation12 + $0x2f0] ss:$8 sps:$4 sm:$0xff]   ;;  %v4685_v54 = vld [vmem:[#allocation12 + $0x304] ss:$8 sps:$4 sm:$0xff]  }
 0xf08   :  { %v5488_v37 = vpack.c.bf16 %v2799_v28, %v2791_v34  ;;  %v5490_v56 = vpack.c.bf16 %v2801_v21, %v2793_v19  ;;  %3707 = vmatpush1.bf16.msra.mxu1 %v4638_v59  ;;  %v4683_v63 = vld [vmem:[#allocation12 + $0x300] ss:$8 sps:$4 sm:$0xff]   ;;  %v4688_v12 = vld [vmem:[#allocation12 + $0x314] ss:$8 sps:$4 sm:$0xff]   ;;  %v4686_v2 = vld [vmem:[#allocation12 + $0x310] ss:$8 sps:$4 sm:$0xff]  }
 0xf09   :  { %3708 = vmatprep.subr.bf16.mxu1 %v4643_v25  ;;  %v4691_v6 = vld [vmem:[#allocation12 + $0x324] ss:$8 sps:$4 sm:$0xff]   ;;  %v4689_v15 = vld [vmem:[#allocation12 + $0x320] ss:$8 sps:$4 sm:$0xff]   ;;  %v4694_v22 = vld [vmem:[#allocation12 + $0x334] ss:$8 sps:$4 sm:$0xff]  }
 0xf0a   :  { %v4692_v55 = vld [vmem:[#allocation12 + $0x330] ss:$8 sps:$4 sm:$0xff]   ;;  %v4697_v24 = vld [vmem:[#allocation12 + $0x344] ss:$8 sps:$4 sm:$0xff]   ;;  %v4700_v16 = vld [vmem:[#allocation12 + $0x354] ss:$8 sps:$4 sm:$0xff]  }
 0xf0b   :  { %3694 = vmatmul.mubr.bf16.gmra.mrb[40].mxu1 %v5474_v18  ;;  %v4661_v18 = vld [vmem:[#allocation12 + $0x284] ss:$8 sps:$4 sm:$0xff]   ;;  %v4698_v59 = vld [vmem:[#allocation12 + $0x350] ss:$8 sps:$4 sm:$0xff]   ;;  %v4701_v27 = vld [vmem:[#allocation12 + $0x360] ss:$8 sps:$4 sm:$0xff]  }
 0xf0c   :  { %3709 = vmatpush1.bf16.msra.mxu1 %v4641_v3  ;;  %3736 = vmatprep.mubr.bf16.mxu1 %v2807_v17  ;;  %v4668_v17 = vld [vmem:[#allocation12 + $0x2b0] ss:$8 sps:$4 sm:$0xff]   ;;  %v4703_v45 = vld [vmem:[#allocation12 + $0x364] ss:$8 sps:$4 sm:$0xff]   ;;  %v4706_v42 = vld [vmem:[#allocation12 + $0x374] ss:$8 sps:$4 sm:$0xff]  }
 0xf0d   :  { %3710 = vmatprep.subr.bf16.mxu1 %v4646_v20  ;;  %v4704_v0 = vld [vmem:[#allocation12 + $0x370] ss:$8 sps:$4 sm:$0xff]   ;;  %v4709_v25 = vld [vmem:[#allocation12 + $0x384] ss:$8 sps:$4 sm:$0xff]   ;;  %v4712_v34 = vld [vmem:[#allocation12 + $0x394] ss:$8 sps:$4 sm:$0xff]  }
 0xf0e   :  { %v4710_v19 = vld [vmem:[#allocation12 + $0x390] ss:$8 sps:$4 sm:$0xff]   ;;  %v4715_v28 = vld [vmem:[#allocation12 + $0x3a4] ss:$8 sps:$4 sm:$0xff]   ;;  %v4713_v21 = vld [vmem:[#allocation12 + $0x3a0] ss:$8 sps:$4 sm:$0xff]  }
 0xf0f   :  { %v4721_v3 = vld [vmem:[#allocation12 + $0x3c4] ss:$8 sps:$4 sm:$0xff]   ;;  %v4719_v20 = vld [vmem:[#allocation12 + $0x3c0] ss:$8 sps:$4 sm:$0xff]  }
 0xf10   :  { %3711 = vmatpush1.bf16.msra.mxu1 %v4644_v32  ;;  %v4724_v32 = vld [vmem:[#allocation12 + $0x3d4] ss:$8 sps:$4 sm:$0xff]  }
 0xf11   :  { %3712 = vmatprep.subr.bf16.mxu1 %v4649_v36  ;;  %v4722_v36 = vld [vmem:[#allocation12 + $0x3d0] ss:$8 sps:$4 sm:$0xff]  }
 0xf14   :  { %3713 = vmatpush1.bf16.msra.mxu1 %v4647_v4  ;;  %v4727_v4 = vld [vmem:[#allocation12 + $0x3e4] ss:$8 sps:$4 sm:$0xff]  }
 0xf15   :  { %3714 = vmatprep.subr.bf16.mxu1 %v4652_v44  ;;  %v4725_v44 = vld [vmem:[#allocation12 + $0x3e0] ss:$8 sps:$4 sm:$0xff]  }
 0xf18   :  { %3715 = vmatpush1.bf16.msra.mxu1 %v4650_v1  ;;  %v4730_v1 = vld [vmem:[#allocation12 + $0x3f4] ss:$8 sps:$4 sm:$0xff]  }
 0xf19   :  { %3716 = vmatprep.subr.bf16.mxu1 %v4655_v46  ;;  %v4728_v46 = vld [vmem:[#allocation12 + $0x3f0] ss:$8 sps:$4 sm:$0xff]  }
 0xf1c   :  { %3717 = vmatpush1.bf16.msra.mxu1 %v4653_v10  ;;  %v2946_v10 = vld [vmem:[%s5536_s8] sm:$0x3]  ;;  %s4967_s8 = smov [#allocation14]  }
 0xf1d   :  { %3718 = vmatprep.subr.bf16.mxu1 %v4658_v13  ;;  %v2951_v13 = vrot.slane %v2946_v10, %v5174_v30  ;;  %s3831_s22 = sshll.u32 %s4967_s8, 4  ;;  %s3832_s22 = int_to_ptr.vmem [resolvable:$true] %s3831_s22 }
 0xf1e   :  { %s4919_s24 = scalar_lea.vmem %s3832_s22, 1024  ;;  %p4924_p7 = scmp.lt.s32.totalorder %s3832_s22, %s3832_s22 }
 0xf1f   :  { %p4920_p6 = scmp.ne.s32.totalorder %s3832_s22, %s4919_s24  ;;  %p4925_p8 = scmp.lt.s32.totalorder %s4919_s24, %s4919_s24 }
 0xf20   :  { %3719 = vmatpush1.bf16.msra.mxu1 %v4656_v47  ;;  %v2955_v47 = vrot.slane %v2946_v10, %v5180_v40 }
 0xf21   :  { %3720 = vmatprep.subr.bf16.mxu1 %v4661_v18  ;;  %p4926_p9 = por %p4925_p8, %p4924_p7 }
 0xf23   :  { %p4927_p10 = pnand %p4926_p9, %p4920_p6 }
 0xf24   :  { %3721 = vmatpush1.bf16.msra.mxu1 %v4659_v50 }
 0xf25   :  { %3722 = vmatprep.subr.bf16.mxu1 %v4664_v14 }
 0xf28   :  { %3723 = vmatpush1.bf16.msra.mxu1 %v4662_v38 }
 0xf29   :  { %3724 = vmatprep.subr.bf16.mxu1 %v4667_v58 }
 0xf2c   :  { %3725 = vmatpush1.bf16.msra.mxu1 %v4665_v7 }
 0xf2d   :  { %3726 = vmatprep.subr.bf16.mxu1 %v4670_v8 }
 0xf30   :  { %3727 = vmatpush1.bf16.msra.mxu1 %v4668_v17 }
 0xf31   :  { %3728 = vmatprep.subr.bf16.mxu1 %v4673_v52 }
 0xf34   :  { %3729 = vmatpush1.bf16.msra.mxu1 %v4671_v23 }
 0xf35   :  { %3730 = vmatprep.subr.bf16.mxu1 %v4676_v53 }
 0xf38   :  { %3731 = vmatpush1.bf16.msra.mxu1 %v4674_v48 }
 0xf39   :  { %3732 = vmatprep.subr.bf16.mxu1 %v4679_v51 }
 0xf3c   :  { %3733 = vmatpush1.bf16.msra.mxu1 %v4677_v57 }
 0xf3d   :  { %3734 = vmatprep.subr.bf16.mxu1 %v4682_v61 }
 0xf40   :  { %3735 = vmatpush1.bf16.msra.mxu1 %v4680_v49 }
 0xf41   :  { %3757 = vmatprep.subr.bf16.mxu1 %v4685_v54 }
 0xf43   :  { %3737 = vmatmul.mubr.bf16.vlgmr.msra.gmra.mrb[36].mxu1 %v5477_v5  ;;  %v4695_v5 = vld [vmem:[#allocation12 + $0x340] ss:$8 sps:$4 sm:$0xff]  }
 0xf44   :  { %3746 = vmatprep.mubr.bf16.mxu1 %v5488_v37  ;;  %3758 = vmatpush1.bf16.msra.mxu1 %v4683_v63  ;;  %v4716_v37 = vld [vmem:[#allocation12 + $0x3b0] ss:$8 sps:$4 sm:$0xff]  }
 0xf45   :  { %3759 = vmatprep.subr.bf16.mxu1 %v4688_v12 }
 0xf48   :  { %3760 = vmatpush1.bf16.msra.mxu1 %v4686_v2 }
 0xf49   :  { %3761 = vmatprep.subr.bf16.mxu1 %v4691_v6 }
 0xf4b   :  { %3747 = vmatmul.mubr.bf16.gmra.mrb[40].mxu1 %v5484_v35  ;;  %v4718_v35 = vld [vmem:[#allocation12 + $0x3b4] ss:$8 sps:$4 sm:$0xff]  }
 0xf4c   :  { %3762 = vmatpush1.bf16.msra.mxu1 %v4689_v15  ;;  %3789 = vmatprep.mubr.bf16.mxu1 %v5481_v11  ;;  %v4707_v11 = vld [vmem:[#allocation12 + $0x380] ss:$8 sps:$4 sm:$0xff]  }
 0xf4d   :  { %3763 = vmatprep.subr.bf16.mxu1 %v4694_v22 }
 0xf50   :  { %3764 = vmatpush1.bf16.msra.mxu1 %v4692_v55 }
 0xf51   :  { %3765 = vmatprep.subr.bf16.mxu1 %v4697_v24 }
 0xf54   :  { %3766 = vmatpush1.bf16.msra.mxu1 %v4695_v5 }
 0xf55   :  { %3767 = vmatprep.subr.bf16.mxu1 %v4700_v16 }
 0xf58   :  { %3768 = vmatpush1.bf16.msra.mxu1 %v4698_v59 }
 0xf59   :  { %3769 = vmatprep.subr.bf16.mxu1 %v4703_v45 }
 0xf5c   :  { %3770 = vmatpush1.bf16.msra.mxu1 %v4701_v27 }
 0xf5d   :  { %3771 = vmatprep.subr.bf16.mxu1 %v4706_v42 }
 0xf60   :  { %3772 = vmatpush1.bf16.msra.mxu1 %v4704_v0 }
 0xf61   :  { %3773 = vmatprep.subr.bf16.mxu1 %v4709_v25 }
 0xf64   :  { %3774 = vmatpush1.bf16.msra.mxu1 %v4707_v11 }
 0xf65   :  { %3775 = vmatprep.subr.bf16.mxu1 %v4712_v34 }
 0xf68   :  { %3776 = vmatpush1.bf16.msra.mxu1 %v4710_v19 }
 0xf69   :  { %3777 = vmatprep.subr.bf16.mxu1 %v4715_v28 }
 0xf6c   :  { %3778 = vmatpush1.bf16.msra.mxu1 %v4713_v21 }
 0xf6d   :  { %3779 = vmatprep.subr.bf16.mxu1 %v4718_v35 }
 0xf70   :  { %3780 = vmatpush1.bf16.msra.mxu1 %v4716_v37 }
 0xf71   :  { %3781 = vmatprep.subr.bf16.mxu1 %v4721_v3 }
 0xf74   :  { %3782 = vmatpush1.bf16.msra.mxu1 %v4719_v20 }
 0xf75   :  { %3783 = vmatprep.subr.bf16.mxu1 %v4724_v32 }
 0xf78   :  { %3784 = vmatpush1.bf16.msra.mxu1 %v4722_v36 }
 0xf79   :  { %3785 = vmatprep.subr.bf16.mxu1 %v4727_v4 }
 0xf7c   :  { %3786 = vmatpush1.bf16.msra.mxu1 %v4725_v44 }
 0xf7d   :  { %3787 = vmatprep.subr.bf16.mxu1 %v4730_v1 }
 0xf80   :  { %3788 = vmatpush1.bf16.msra.mxu1 %v4728_v46 }
 0xf83   :  { %3790 = vmatmul.mubr.bf16.vlgmr.msra.gmra.mrb[36].mxu1 %v5479_v41 }
 0xf84   :  { %3799 = vmatprep.mubr.bf16.mxu1 %v5490_v56 }
 0xf8b   :  { %3800 = vmatmul.mubr.bf16.gmra.mrb[40].mxu1 %v5486_v31 }
0x1056   :  { %v3791_v18 = vpop.f32.mrb[36].mxu1 }
0x1057   :  { %v4298_v50 = vadd.f32 %v3791_v18, %v2951_v13  ;;  %v3793_v14 = vpop.f32.mrb[37].mxu1 }
0x1058   :  { %v4299_v38 = vadd.f32 %v3793_v14, %v2955_v47  ;;  %v3795_v58 = vpop.f32.mrb[38].mxu1 }
0x1059   :  { %v3810_v7 = vadd.f32 %v4298_v50, %v5330_v60  ;;  %v4300_v41 = vadd.f32 %v3795_v58, %v2951_v13  ;;  %v3797_v8 = vpop.f32.mrb[39].mxu1 }
0x105a   :  { %v3811_v56 = vadd.f32 %v4299_v38, %v5332_v9  ;;  %v4301_v31 = vadd.f32 %v3797_v8, %v2955_v47 }
0x105b   :  { %3818 = vst [vmem:[#allocation14] sm:$0xff] %v3810_v7  ;;  %v3812_v17 = vadd.f32 %v4300_v41, %v5335_v62 }
0x105c   :  { %3819 = vst [vmem:[#allocation14 + $0x8] sm:$0xff] %v3811_v56  ;;  %v3813_v30 = vadd.f32 %v4301_v31, %v5337_v39 }
0x105d   :  { %3820 = vst [vmem:[#allocation14 + $0x10] sm:$0xff] %v3812_v17 }
0x105e   :  { %3821 = vst [vmem:[#allocation14 + $0x18] sm:$0xff] %v3813_v30  ;;  %v3801_v40 = vpop.f32.mrb[40].mxu1 }
0x105f   :  { %v4302_v52 = vadd.f32 %v3801_v40, %v2951_v13  ;;  %v3803_v23 = vpop.f32.mrb[41].mxu1 }
0x1060   :  { %v4303_v53 = vadd.f32 %v3803_v23, %v2955_v47  ;;  %v3805_v48 = vpop.f32.mrb[42].mxu1 }
0x1061   :  { %v3814_v60 = vadd.f32 %v4302_v52, %v5353_v26  ;;  %v4304_v51 = vadd.f32 %v3805_v48, %v2951_v13  ;;  %v3807_v57 = vpop.f32.mrb[43].mxu1 }
0x1062   :  { %v3815_v9 = vadd.f32 %v4303_v53, %v5362_v29  ;;  %v4305_v61 = vadd.f32 %v3807_v57, %v2955_v47 }
0x1063   :  { %3822 = vst [vmem:[#allocation14 + $0x20] sm:$0xff] %v3814_v60  ;;  %v3816_v62 = vadd.f32 %v4304_v51, %v5365_v33 }
0x1064   :  { %3823 = vst [vmem:[#allocation14 + $0x28] sm:$0xff] %v3815_v9  ;;  %v3817_v39 = vadd.f32 %v4305_v61, %v5367_v43 }
0x1065   :  { %3824 = vst [vmem:[#allocation14 + $0x30] sm:$0xff] %v3816_v62 }
0x1066   :  { %3825 = vst [vmem:[#allocation14 + $0x38] sm:$0xff] %v3817_v39 }
0x1067   :  { %4930 = shalt.err (!%p4927_p10)
}
0x1068   :  { %s4931_s29 = scalar_lea.hbm %s5537_s9, 1024 }
0x1069   :  { %p4932_p11 = scmp.ne.s32.totalorder %s5537_s9, %s4931_s29  ;;  %p4935_p12 = scmp.lt.u32.totalorder %s4931_s29, %s5537_s9 }
0x106b   :  { %p4937_p13 = pnand %p4935_p12, %p4932_p11 }
0x106d   :  { %4940 = shalt.err (!%p4937_p13)
}
0x106e   :  { %3837 = dma.vmem_to_hbm [thread:$0]  %s3832_s22, 1024, %s5537_s9, [#allocation5], %s4956_s4, %s4956_s4, %s4957_s23  }
0x106f   :  { %4949 = dma.done.wait [#allocation5], 1024  }
0x1070   :  { %4950 = vsyncadd [#allocation5], 4294966272 }
0x1071   :  { %3841 = vsyncpa [#allocation4], 1 }
0x1072   :  { %3842 = vsyncpa [#allocation7], 1 }
0x1073   :  { %3843 = vsyncpa [#allocation10], 1 }
0x1074   :  { %3844 = vsyncpa [#allocation13], 1 }
0x1075   :  { %3845 = vsyncpa [#allocation5], 1 }

</bundles_post_ra>
